<compile_context>
chip_gen: v7x
topology: tpu7x:2x2x1
jax: 0.10.0
libtpu: 0.0.40
codegen_flags: <defaults>
</compile_context>

<pallas_src>
import functools

import jax
import jax.numpy as jnp
from jax.experimental import pallas as pl
from jax.experimental.pallas import tpu as pltpu


LANES = 128   # every channel dim is zero-padded to 128 lanes (TPU lane width)


# ------------------------------ small helpers -------------------------------

def _pad_axis(x, target, axis):
    pad = target - x.shape[axis]
    if pad <= 0:
        return x
    widths = [(0, 0)] * x.ndim
    widths[axis] = (0, pad)
    return jnp.pad(x, widths)


# ---------------- in-kernel building blocks (traced / inlined) ----------------

def _expand_into_halo(x, ew, es, eb, hpad, H, W):
    """1x1 expand conv + BN + ReLU6 on an (H*W, C) bf16 value; result written
    into the (H+2, W+2, C) zero-haloed f32 VMEM scratch `hpad`."""
    C = LANES
    f32 = jnp.float32
    Wp = W + 2
    # zero the 1-pixel halo (scratch persists across grid steps -> re-zero)
    hpad[0:1, :, :] = jnp.zeros((1, Wp, C), f32)
    hpad[H + 1:H + 2, :, :] = jnp.zeros((1, Wp, C), f32)
    hpad[:, 0:1, :] = jnp.zeros((H + 2, 1, C), f32)
    hpad[:, W + 1:W + 2, :] = jnp.zeros((H + 2, 1, C), f32)
    h = jnp.dot(x, ew, preferred_element_type=f32)      # MXU, f32 accumulate
    h = jnp.clip(h * es + eb, 0.0, 6.0)
    for r in range(H):
        hpad[r + 1, 1:W + 1, :] = h[r * W:(r + 1) * W, :]


def _depthwise3x3_s1(hpad, dww, dws, dwb, out_scr, H, W):
    """3x3 stride-1 depthwise + BN + ReLU6 from the padded scratch into a flat
    (H*W, C) bf16 scratch (MXU operand for the following 1x1 projection)."""
    C = LANES
    f32 = jnp.float32
    for r in range(H):
        acc = jnp.zeros((W, C), f32)
        for dy in range(3):
            row = hpad[r + dy]                            # (W+2, C) f32
            for dx in range(3):
                acc = acc + row[dx:dx + W, :] * dww[3 * dy + dx]
        acc = jnp.clip(acc * dws + dwb, 0.0, 6.0)
        out_scr[r * W:(r + 1) * W, :] = acc.astype(out_scr.dtype)


# ------------------ call 1: stem conv + block1 (stride 1) --------------------

def _stage1_kernel(patches_ref, sw_ref, ss_ref, sb_ref,
                   ew_ref, es_ref, eb_ref, dw_ref, ds_ref, db_ref,
                   pw_ref, ps_ref, pb_ref,
                   o_ref, stem_out, hpad, dwout, *, H, W):
    f32 = jnp.float32

    # stem 3x3 stride-2 conv (im2col matmul) + folded BN + ReLU6
    s = jnp.dot(patches_ref[...], sw_ref[...], preferred_element_type=f32)
    s = jnp.clip(s * ss_ref[...] + sb_ref[...], 0.0, 6.0)
    stem_out[...] = s.astype(stem_out.dtype)

    # block1: expand 1x1 -> depthwise 3x3 (s=1) -> project 1x1 + residual
    _expand_into_halo(stem_out[...], ew_ref[...], es_ref[...], eb_ref[...],
                      hpad, H, W)
    _depthwise3x3_s1(hpad, dw_ref[...], ds_ref[...], db_ref[...], dwout, H, W)
    p = jnp.dot(dwout[...], pw_ref[...], preferred_element_type=f32)
    p = p * ps_ref[...] + pb_ref[...] + stem_out[...].astype(f32)   # residual
    o_ref[...] = p.astype(o_ref.dtype)


def _stage1(patches, p, H, W):
    n, M, C = patches.shape
    assert M == H * W and C == LANES
    full = lambda i: (0, 0)
    kern = functools.partial(_stage1_kernel, H=H, W=W)
    b1 = p["block1"]
    return pl.pallas_call(
        kern,
        grid=(n,),
        in_specs=[
            pl.BlockSpec((None, M, C), lambda i: (i, 0, 0)),
            pl.BlockSpec((C, C), full), pl.BlockSpec((1, C), full),
            pl.BlockSpec((1, C), full),
            pl.BlockSpec((C, C), full), pl.BlockSpec((1, C), full),
            pl.BlockSpec((1, C), full),
            pl.BlockSpec((9, C), full), pl.BlockSpec((1, C), full),
            pl.BlockSpec((1, C), full),
            pl.BlockSpec((C, C), full), pl.BlockSpec((1, C), full),
            pl.BlockSpec((1, C), full),
        ],
        out_specs=pl.BlockSpec((None, M, C), lambda i: (i, 0, 0)),
        out_shape=jax.ShapeDtypeStruct((n, M, C), jnp.bfloat16),
        scratch_shapes=[
            pltpu.VMEM((M, C), jnp.bfloat16),              # stem out / residual
            pltpu.VMEM((H + 2, W + 2, C), jnp.float32),    # padded expanded act
            pltpu.VMEM((M, C), jnp.bfloat16),              # depthwise output
        ],
        compiler_params=pltpu.CompilerParams(
            dimension_semantics=("parallel",)),
    )(patches, p["stem_w"], p["stem_s"], p["stem_b"],
      b1["exp_w"], b1["exp_s"], b1["exp_b"],
      b1["dw_w"], b1["dw_s"], b1["dw_b"],
      b1["proj_w"], b1["proj_s"], b1["proj_b"])


# ------ call 2: block2 (stride 2) + block3 (stride 1) + head conv + pool ------

def _stage2_kernel(xe_ref, xo_ref,
                   e2w, e2s, e2b, d2w, d2s, d2b, p2w, p2s, p2b,
                   e3w, e3s, e3b, d3w, d3s, d3b, p3w, p3s, p3b,
                   hw_ref, hs_ref, hb_ref,
                   o_ref,
                   e_scr, od_scr, dw2out, b2_out, hpad3, dw3out, *, H, W):
    """block2 -> block3 -> head, all intermediates in VMEM (one image).

    Stride-2 depthwise via column-parity decomposition of the padded expanded
    activation P (zero pad = 1):
      E[r, q]  = P[r, 2q]    (from the ODD input columns, + zero left pad)
      Od[r, q] = P[r, 2q+1]  (from the EVEN input columns)
      out[o, j] = sum_dy E[2o+dy, j]*w[dy,0] + Od[2o+dy, j]*w[dy,1]
                       + E[2o+dy, j+1]*w[dy,2]  -- contiguous slices only.
    """
    C = LANES
    f32 = jnp.float32
    Wo, Ho = W // 2, H // 2

    # --- block2 expand on even / odd input columns into parity-split scratches
    e_scr[0:1, :, :] = jnp.zeros((1, Wo + 1, C), f32)
    e_scr[H + 1:H + 2, :, :] = jnp.zeros((1, Wo + 1, C), f32)
    e_scr[:, 0:1, :] = jnp.zeros((H + 2, 1, C), f32)
    od_scr[0:1, :, :] = jnp.zeros((1, Wo, C), f32)
    od_scr[H + 1:H + 2, :, :] = jnp.zeros((1, Wo, C), f32)

    ew, es, eb = e2w[...], e2s[...], e2b[...]
    he = jnp.clip(jnp.dot(xe_ref[...], ew, preferred_element_type=f32) * es + eb,
                  0.0, 6.0)
    ho = jnp.clip(jnp.dot(xo_ref[...], ew, preferred_element_type=f32) * es + eb,
                  0.0, 6.0)
    for r in range(H):
        od_scr[r + 1, 0:Wo, :] = he[r * Wo:(r + 1) * Wo, :]
        e_scr[r + 1, 1:Wo + 1, :] = ho[r * Wo:(r + 1) * Wo, :]

    # --- block2 direct stride-2 depthwise 3x3 + BN + ReLU6
    dww, dws, dwb = d2w[...], d2s[...], d2b[...]
    for o in range(Ho):
        acc = jnp.zeros((Wo, C), f32)
        for dy in range(3):
            er = e_scr[2 * o + dy]           # (Wo+1, C)
            orow = od_scr[2 * o + dy]        # (Wo, C)
            acc = acc + er[0:Wo, :] * dww[3 * dy + 0]
            acc = acc + orow * dww[3 * dy + 1]
            acc = acc + er[1:Wo + 1, :] * dww[3 * dy + 2]
        acc = jnp.clip(acc * dws + dwb, 0.0, 6.0)
        dw2out[o * Wo:(o + 1) * Wo, :] = acc.astype(dw2out.dtype)

    # --- block2 project 1x1 + BN (linear bottleneck, no residual on stride 2)
    b2 = jnp.dot(dw2out[...], p2w[...], preferred_element_type=f32)
    b2 = b2 * p2s[...] + p2b[...]
    b2_out[...] = b2.astype(b2_out.dtype)

    # --- block3 (stride 1, residual): expand -> depthwise 3x3 -> project
    _expand_into_halo(b2_out[...], e3w[...], e3s[...], e3b[...], hpad3, Ho, Wo)
    _depthwise3x3_s1(hpad3, d3w[...], d3s[...], d3b[...], dw3out, Ho, Wo)
    b3 = jnp.dot(dw3out[...], p3w[...], preferred_element_type=f32)
    b3 = b3 * p3s[...] + p3b[...] + b2_out[...].astype(f32)

    # --- head 1x1 conv + BN + ReLU6 + global average pool (never hits HBM)
    hact = jnp.dot(b3.astype(jnp.bfloat16), hw_ref[...],
                   preferred_element_type=f32)
    hact = jnp.clip(hact * hs_ref[...] + hb_ref[...], 0.0, 6.0)
    o_ref[...] = (jnp.sum(hact, axis=0, keepdims=True)
                  * (1.0 / (Ho * Wo))).astype(o_ref.dtype)


def _stage2(xe, xo, p, H, W):
    n, M, C = xe.shape
    Wo, Ho = W // 2, H // 2
    assert M == H * Wo and C == LANES
    full = lambda i: (0, 0)
    kern = functools.partial(_stage2_kernel, H=H, W=W)
    b2, b3 = p["block2"], p["block3"]

    def wspec(r):
        return pl.BlockSpec((r, C), full)

    def block_specs():
        return [wspec(C), wspec(1), wspec(1),     # expand
                wspec(9), wspec(1), wspec(1),     # depthwise
                wspec(C), wspec(1), wspec(1)]     # project

    return pl.pallas_call(
        kern,
        grid=(n,),
        in_specs=([pl.BlockSpec((None, M, C), lambda i: (i, 0, 0)),
                   pl.BlockSpec((None, M, C), lambda i: (i, 0, 0))]
                  + block_specs() + block_specs()
                  + [wspec(C), wspec(1), wspec(1)]),
        out_specs=pl.BlockSpec((None, 1, C), lambda i: (i, 0, 0)),
        out_shape=jax.ShapeDtypeStruct((n, 1, C), jnp.bfloat16),
        scratch_shapes=[
            pltpu.VMEM((H + 2, Wo + 1, C), jnp.float32),   # even-index plane E
            pltpu.VMEM((H + 2, Wo, C), jnp.float32),       # odd-index plane Od
            pltpu.VMEM((Ho * Wo, C), jnp.bfloat16),        # block2 depthwise out
            pltpu.VMEM((Ho * Wo, C), jnp.bfloat16),        # block2 out / residual
            pltpu.VMEM((Ho + 2, Wo + 2, C), jnp.float32),  # block3 expanded act
            pltpu.VMEM((Ho * Wo, C), jnp.bfloat16),        # block3 depthwise out
        ],
        compiler_params=pltpu.CompilerParams(
            dimension_semantics=("parallel",)),
    )(xe, xo,
      b2["exp_w"], b2["exp_s"], b2["exp_b"],
      b2["dw_w"], b2["dw_s"], b2["dw_b"],
      b2["proj_w"], b2["proj_s"], b2["proj_b"],
      b3["exp_w"], b3["exp_s"], b3["exp_b"],
      b3["dw_w"], b3["dw_s"], b3["dw_b"],
      b3["proj_w"], b3["proj_s"], b3["proj_b"],
      p["head_w"], p["head_s"], p["head_b"])


# --------------------------------- backbone ----------------------------------

def _backbone(images_nchw, params):
    x = images_nchw.astype(jnp.float32)         # bf16/fp16 -> f32 (as in module)
    x = jnp.transpose(x, (0, 2, 3, 1))          # NCHW -> NHWC (torch permute)
    n, h, w, cin = x.shape
    assert h % 4 == 0 and w % 4 == 0 and 9 * cin <= LANES

    # ---- stem im2col (tiny raw image; stays in XLA), K zero-padded to 128 ----
    # TODO(synk): im2col of the 3-channel input stays in XLA; it is a few KB.
    h1, w1 = h // 2, w // 2
    xp = jnp.pad(x, ((0, 0), (1, 1), (1, 1), (0, 0)))
    cols = [xp[:, dy:dy + 2 * h1:2, dx:dx + 2 * w1:2, :]
            for dy in range(3) for dx in range(3)]
    patches = jnp.stack(cols, axis=3).reshape(n, h1 * w1, 9 * cin)
    patches = _pad_axis(patches, LANES, 2).astype(jnp.bfloat16)

    # ---- call 1: stem conv + block1 fused, gridded over the batch ----
    y1 = _stage1(patches, params, h1, w1)               # (n, h1*w1, 128) bf16

    # ---- column-parity split feeding the stride-2 block (tiny XLA slice) ----
    w1o = w1 // 2
    y4 = y1.reshape(n, h1, w1, LANES)
    xe = y4[:, :, 0::2, :].reshape(n, h1 * w1o, LANES)
    xo = y4[:, :, 1::2, :].reshape(n, h1 * w1o, LANES)

    # ---- call 2: block2 + block3 + head conv + global average pool fused ----
    return _stage2(xe, xo, params, h1, w1)              # (n, 1, 128) bf16


# -------------------------------- parameters ---------------------------------

def _init_params(key, hidden=128):
    keys = iter(jax.random.split(key, 64))
    C = LANES

    def nrm(shape, scale=0.1):
        return scale * jax.random.normal(next(keys), shape, jnp.float32)

    def bn(c_real):  # folded-BN scale/bias, zero-padded to 128 lanes
        s = 1.0 + 0.05 * jax.random.normal(next(keys), (c_real,), jnp.float32)
        b = 0.05 * jax.random.normal(next(keys), (c_real,), jnp.float32)
        return (_pad_axis(s, C, 0).reshape(1, C),
                _pad_axis(b, C, 0).reshape(1, C))

    def pw(cin, cout):  # 1x1 conv weight, zero-padded, bf16 for the MXU
        w = nrm((cin, cout))
        return _pad_axis(_pad_axis(w, C, 0), C, 1).astype(jnp.bfloat16)

    def block(cin, cexp, cout):
        exp_s, exp_b = bn(cexp)
        dw_s, dw_b = bn(cexp)
        proj_s, proj_b = bn(cout)
        dw = _pad_axis(nrm((9, cexp)), C, 1)            # (9, 128) f32 taps
        return dict(exp_w=pw(cin, cexp), exp_s=exp_s, exp_b=exp_b,
                    dw_w=dw, dw_s=dw_s, dw_b=dw_b,
                    proj_w=pw(cexp, cout), proj_s=proj_s, proj_b=proj_b)

    stem_s, stem_b = bn(16)
    head_s, head_b = bn(hidden)
    return dict(
        stem_w=pw(27, 16), stem_s=stem_s, stem_b=stem_b,   # 9*3 taps -> 16 ch
        block1=block(16, 64, 16),
        block2=block(16, 64, 24),
        block3=block(24, 96, 24),
        head_w=pw(24, hidden), head_s=head_s, head_b=head_b,
    )


# ------------------------------ module wrapper --------------------------------

class MobileNetV2VisionTower:
    """JAX/Pallas replacement for the TFLite-backed vision tower."""

    def __init__(self, vision_tower="synthetic/mobilenet_v2_0.35_128",
                 hidden_size=128, key=None):
        # TODO(synk): the real TFLite interpreter / pretrained checkpoint and
        # CLIPImageProcessor cannot be loaded here; weights are synthetic.
        assert hidden_size <= LANES
        self.vision_tower_name = vision_tower
        self._hidden_size = hidden_size
        self.params = _init_params(
            key if key is not None else jax.random.PRNGKey(0), hidden_size)
        self.is_loaded = True
        self._forward = jax.jit(_backbone)

    def __call__(self, images):
        if isinstance(images, (list, tuple)):
            return [self._process_single_image(im) for im in images]
        return self._process_single_image(images)

    def _process_single_image(self, image):
        orig_dtype = image.dtype
        feats = self._forward(image, self.params)        # (N, 1, 128) bf16
        feats = feats[..., :self._hidden_size]           # (N, 1, hidden)
        return feats.astype(orig_dtype)                  # cast back, as in module

    @property
    def hidden_size(self):
        return self._hidden_size


# ----------------------------------- main -------------------------------------

if __name__ == "__main__":
    tower = MobileNetV2VisionTower()
    images = jax.random.normal(jax.random.PRNGKey(0), (2, 3, 16, 16),
                               jnp.float32).astype(jnp.bfloat16)   # NCHW, torch-like
    out = tower(images)
    out = jax.block_until_ready(out)
    assert out.shape == (2, 1, tower.hidden_size), out.shape
    assert out.dtype == jnp.bfloat16, out.dtype
    assert bool(jnp.all(jnp.isfinite(out.astype(jnp.float32))))
    print("KERNEL_OK")
</pallas_src>

<mosaic_0001>
module attributes {stable_mosaic.version = 11 : i64} {
  func.func @_stage1_kernel(%arg0: i32, %arg1: memref<1x64x128xbf16, #tpu.memory_space<vmem>>, %arg2: memref<128x128xbf16, #tpu.memory_space<vmem>>, %arg3: memref<1x128xf32, #tpu.memory_space<vmem>>, %arg4: memref<1x128xf32, #tpu.memory_space<vmem>>, %arg5: memref<128x128xbf16, #tpu.memory_space<vmem>>, %arg6: memref<1x128xf32, #tpu.memory_space<vmem>>, %arg7: memref<1x128xf32, #tpu.memory_space<vmem>>, %arg8: memref<9x128xf32, #tpu.memory_space<vmem>>, %arg9: memref<1x128xf32, #tpu.memory_space<vmem>>, %arg10: memref<1x128xf32, #tpu.memory_space<vmem>>, %arg11: memref<128x128xbf16, #tpu.memory_space<vmem>>, %arg12: memref<1x128xf32, #tpu.memory_space<vmem>>, %arg13: memref<1x128xf32, #tpu.memory_space<vmem>>, %arg14: memref<1x64x128xbf16, #tpu.memory_space<vmem>>, %arg15: memref<64x128xbf16, #tpu.memory_space<vmem>>, %arg16: memref<10x10x128xf32, #tpu.memory_space<vmem>>, %arg17: memref<64x128xbf16, #tpu.memory_space<vmem>>) attributes {dimension_semantics = [#tpu.dimension_semantics<parallel>], iteration_bounds = array<i64: 2>, scalar_prefetch = 0 : i64, scratch_operands = 3 : i64, tpu.core_type = #tpu.core_type<tc>, window_params = [{transform_indices = @transform_0, window_bounds = array<i64: 1, 64, 128>}, {pipeline_mode = #tpu.pipeline_mode<synchronous>, transform_indices = @transform_1, window_bounds = array<i64: 128, 128>}, {pipeline_mode = #tpu.pipeline_mode<synchronous>, transform_indices = @transform_2, window_bounds = array<i64: 1, 128>}, {pipeline_mode = #tpu.pipeline_mode<synchronous>, transform_indices = @transform_3, window_bounds = array<i64: 1, 128>}, {pipeline_mode = #tpu.pipeline_mode<synchronous>, transform_indices = @transform_4, window_bounds = array<i64: 128, 128>}, {pipeline_mode = #tpu.pipeline_mode<synchronous>, transform_indices = @transform_5, window_bounds = array<i64: 1, 128>}, {pipeline_mode = #tpu.pipeline_mode<synchronous>, transform_indices = @transform_6, window_bounds = array<i64: 1, 128>}, {pipeline_mode = #tpu.pipeline_mode<synchronous>, transform_indices = @transform_7, window_bounds = array<i64: 9, 128>}, {pipeline_mode = #tpu.pipeline_mode<synchronous>, transform_indices = @transform_8, window_bounds = array<i64: 1, 128>}, {pipeline_mode = #tpu.pipeline_mode<synchronous>, transform_indices = @transform_9, window_bounds = array<i64: 1, 128>}, {pipeline_mode = #tpu.pipeline_mode<synchronous>, transform_indices = @transform_10, window_bounds = array<i64: 128, 128>}, {pipeline_mode = #tpu.pipeline_mode<synchronous>, transform_indices = @transform_11, window_bounds = array<i64: 1, 128>}, {pipeline_mode = #tpu.pipeline_mode<synchronous>, transform_indices = @transform_12, window_bounds = array<i64: 1, 128>}, {transform_indices = @transform_13, window_bounds = array<i64: 1, 64, 128>}]} {
    %c0 = arith.constant 0 : index
    %c0_0 = arith.constant 0 : index
    %c0_1 = arith.constant 0 : index
    %0 = vector.load %arg1[%c0, %c0_0, %c0_1] : memref<1x64x128xbf16, #tpu.memory_space<vmem>>, vector<1x64x128xbf16>
    %1 = vector.shape_cast %0 : vector<1x64x128xbf16> to vector<64x128xbf16>
    %c0_2 = arith.constant 0 : index
    %c0_3 = arith.constant 0 : index
    %2 = vector.load %arg2[%c0_2, %c0_3] : memref<128x128xbf16, #tpu.memory_space<vmem>>, vector<128x128xbf16>
    %cst = arith.constant dense<0.000000e+00> : vector<64x128xf32>
    %3 = tpu.matmul %1, %2, %cst {dimension_numbers = #tpu.dot_dimension_numbers<[1], [0], [0], [1], [0, 0, 1, 1], [], []>} : vector<64x128xbf16>, vector<128x128xbf16>, vector<64x128xf32> -> vector<64x128xf32>
    %c0_4 = arith.constant 0 : index
    %c0_5 = arith.constant 0 : index
    %4 = vector.load %arg3[%c0_4, %c0_5] : memref<1x128xf32, #tpu.memory_space<vmem>>, vector<1x128xf32>
    %5 = vector.broadcast %4 : vector<1x128xf32> to vector<64x128xf32>
    %6 = arith.mulf %3, %5 : vector<64x128xf32>
    %c0_6 = arith.constant 0 : index
    %c0_7 = arith.constant 0 : index
    %7 = vector.load %arg4[%c0_6, %c0_7] : memref<1x128xf32, #tpu.memory_space<vmem>>, vector<1x128xf32>
    %8 = vector.broadcast %7 : vector<1x128xf32> to vector<64x128xf32>
    %9 = arith.addf %6, %8 : vector<64x128xf32>
    %cst_8 = arith.constant 0.000000e+00 : f32
    %cst_9 = arith.constant 6.000000e+00 : f32
    %10 = vector.broadcast %cst_8 : f32 to vector<64x128xf32>
    %11 = arith.maximumf %10, %9 : vector<64x128xf32>
    %12 = vector.broadcast %cst_9 : f32 to vector<64x128xf32>
    %13 = arith.minimumf %12, %11 : vector<64x128xf32>
    %14 = arith.truncf %13 : vector<64x128xf32> to vector<64x128xbf16>
    %c0_10 = arith.constant 0 : index
    %c0_11 = arith.constant 0 : index
    %15 = vector.load %arg15[%c0_10, %c0_11] : memref<64x128xbf16, #tpu.memory_space<vmem>>, vector<64x128xbf16>
    tpu.vector_store %arg15[%c0_10, %c0_11], %14 {strides = array<i32>} : memref<64x128xbf16, #tpu.memory_space<vmem>>, vector<64x128xbf16>,
    %c0_12 = arith.constant 0 : index
    %c0_13 = arith.constant 0 : index
    %16 = vector.load %arg15[%c0_12, %c0_13] : memref<64x128xbf16, #tpu.memory_space<vmem>>, vector<64x128xbf16>
    %c0_14 = arith.constant 0 : index
    %c0_15 = arith.constant 0 : index
    %17 = vector.load %arg5[%c0_14, %c0_15] : memref<128x128xbf16, #tpu.memory_space<vmem>>, vector<128x128xbf16>
    %c0_16 = arith.constant 0 : index
    %c0_17 = arith.constant 0 : index
    %18 = vector.load %arg6[%c0_16, %c0_17] : memref<1x128xf32, #tpu.memory_space<vmem>>, vector<1x128xf32>
    %c0_18 = arith.constant 0 : index
    %c0_19 = arith.constant 0 : index
    %19 = vector.load %arg7[%c0_18, %c0_19] : memref<1x128xf32, #tpu.memory_space<vmem>>, vector<1x128xf32>
    %cst_20 = arith.constant 0.000000e+00 : f32
    %20 = vector.broadcast %cst_20 : f32 to vector<1x10x128xf32>
    %c0_21 = arith.constant 0 : index
    %c0_22 = arith.constant 0 : index
    %c0_23 = arith.constant 0 : index
    %21 = vector.load %arg16[%c0_21, %c0_22, %c0_23] : memref<10x10x128xf32, #tpu.memory_space<vmem>>, vector<1x10x128xf32>
    tpu.vector_store %arg16[%c0_21, %c0_22, %c0_23], %20 {strides = array<i32>} : memref<10x10x128xf32, #tpu.memory_space<vmem>>, vector<1x10x128xf32>,
    %cst_24 = arith.constant 0.000000e+00 : f32
    %22 = vector.broadcast %cst_24 : f32 to vector<1x10x128xf32>
    %c9 = arith.constant 9 : index
    %c0_25 = arith.constant 0 : index
    %c0_26 = arith.constant 0 : index
    %23 = vector.load %arg16[%c9, %c0_25, %c0_26] : memref<10x10x128xf32, #tpu.memory_space<vmem>>, vector<1x10x128xf32>
    tpu.vector_store %arg16[%c9, %c0_25, %c0_26], %22 {strides = array<i32>} : memref<10x10x128xf32, #tpu.memory_space<vmem>>, vector<1x10x128xf32>,
    %cst_27 = arith.constant 0.000000e+00 : f32
    %24 = vector.broadcast %cst_27 : f32 to vector<10x1x128xf32>
    %c0_28 = arith.constant 0 : index
    %c0_29 = arith.constant 0 : index
    %c0_30 = arith.constant 0 : index
    %25 = vector.load %arg16[%c0_28, %c0_29, %c0_30] : memref<10x10x128xf32, #tpu.memory_space<vmem>>, vector<10x1x128xf32>
    tpu.vector_store %arg16[%c0_28, %c0_29, %c0_30], %24 {strides = array<i32>} : memref<10x10x128xf32, #tpu.memory_space<vmem>>, vector<10x1x128xf32>,
    %cst_31 = arith.constant 0.000000e+00 : f32
    %26 = vector.broadcast %cst_31 : f32 to vector<10x1x128xf32>
    %c0_32 = arith.constant 0 : index
    %c9_33 = arith.constant 9 : index
    %c0_34 = arith.constant 0 : index
    %27 = vector.load %arg16[%c0_32, %c9_33, %c0_34] : memref<10x10x128xf32, #tpu.memory_space<vmem>>, vector<10x1x128xf32>
    tpu.vector_store %arg16[%c0_32, %c9_33, %c0_34], %26 {strides = array<i32>} : memref<10x10x128xf32, #tpu.memory_space<vmem>>, vector<10x1x128xf32>,
    %cst_35 = arith.constant dense<0.000000e+00> : vector<64x128xf32>
    %28 = tpu.matmul %16, %17, %cst_35 {dimension_numbers = #tpu.dot_dimension_numbers<[1], [0], [0], [1], [0, 0, 1, 1], [], []>} : vector<64x128xbf16>, vector<128x128xbf16>, vector<64x128xf32> -> vector<64x128xf32>
    %29 = vector.broadcast %18 : vector<1x128xf32> to vector<64x128xf32>
    %30 = arith.mulf %28, %29 : vector<64x128xf32>
    %31 = vector.broadcast %19 : vector<1x128xf32> to vector<64x128xf32>
    %32 = arith.addf %30, %31 : vector<64x128xf32>
    %cst_36 = arith.constant 0.000000e+00 : f32
    %cst_37 = arith.constant 6.000000e+00 : f32
    %33 = vector.broadcast %cst_36 : f32 to vector<64x128xf32>
    %34 = arith.maximumf %33, %32 : vector<64x128xf32>
    %35 = vector.broadcast %cst_37 : f32 to vector<64x128xf32>
    %36 = arith.minimumf %35, %34 : vector<64x128xf32>
    %37 = vector.extract_strided_slice %36 {offsets = [0, 0], sizes = [8, 128], strides = [1, 1]} : vector<64x128xf32> to vector<8x128xf32>
    %c1 = arith.constant 1 : index
    %c1_38 = arith.constant 1 : index
    %c0_39 = arith.constant 0 : index
    %38 = vector.load %arg16[%c1, %c1_38, %c0_39] : memref<10x10x128xf32, #tpu.memory_space<vmem>>, vector<1x8x128xf32>
    %39 = vector.shape_cast %38 : vector<1x8x128xf32> to vector<8x128xf32>
    %40 = vector.shape_cast %37 : vector<8x128xf32> to vector<1x8x128xf32>
    tpu.vector_store %arg16[%c1, %c1_38, %c0_39], %40 {strides = array<i32>} : memref<10x10x128xf32, #tpu.memory_space<vmem>>, vector<1x8x128xf32>,
    %41 = vector.extract_strided_slice %36 {offsets = [8, 0], sizes = [8, 128], strides = [1, 1]} : vector<64x128xf32> to vector<8x128xf32>
    %c2 = arith.constant 2 : index
    %c1_40 = arith.constant 1 : index
    %c0_41 = arith.constant 0 : index
    %42 = vector.load %arg16[%c2, %c1_40, %c0_41] : memref<10x10x128xf32, #tpu.memory_space<vmem>>, vector<1x8x128xf32>
    %43 = vector.shape_cast %42 : vector<1x8x128xf32> to vector<8x128xf32>
    %44 = vector.shape_cast %41 : vector<8x128xf32> to vector<1x8x128xf32>
    tpu.vector_store %arg16[%c2, %c1_40, %c0_41], %44 {strides = array<i32>} : memref<10x10x128xf32, #tpu.memory_space<vmem>>, vector<1x8x128xf32>,
    %45 = vector.extract_strided_slice %36 {offsets = [16, 0], sizes = [8, 128], strides = [1, 1]} : vector<64x128xf32> to vector<8x128xf32>
    %c3 = arith.constant 3 : index
    %c1_42 = arith.constant 1 : index
    %c0_43 = arith.constant 0 : index
    %46 = vector.load %arg16[%c3, %c1_42, %c0_43] : memref<10x10x128xf32, #tpu.memory_space<vmem>>, vector<1x8x128xf32>
    %47 = vector.shape_cast %46 : vector<1x8x128xf32> to vector<8x128xf32>
    %48 = vector.shape_cast %45 : vector<8x128xf32> to vector<1x8x128xf32>
    tpu.vector_store %arg16[%c3, %c1_42, %c0_43], %48 {strides = array<i32>} : memref<10x10x128xf32, #tpu.memory_space<vmem>>, vector<1x8x128xf32>,
    %49 = vector.extract_strided_slice %36 {offsets = [24, 0], sizes = [8, 128], strides = [1, 1]} : vector<64x128xf32> to vector<8x128xf32>
    %c4 = arith.constant 4 : index
    %c1_44 = arith.constant 1 : index
    %c0_45 = arith.constant 0 : index
    %50 = vector.load %arg16[%c4, %c1_44, %c0_45] : memref<10x10x128xf32, #tpu.memory_space<vmem>>, vector<1x8x128xf32>
    %51 = vector.shape_cast %50 : vector<1x8x128xf32> to vector<8x128xf32>
    %52 = vector.shape_cast %49 : vector<8x128xf32> to vector<1x8x128xf32>
    tpu.vector_store %arg16[%c4, %c1_44, %c0_45], %52 {strides = array<i32>} : memref<10x10x128xf32, #tpu.memory_space<vmem>>, vector<1x8x128xf32>,
    %53 = vector.extract_strided_slice %36 {offsets = [32, 0], sizes = [8, 128], strides = [1, 1]} : vector<64x128xf32> to vector<8x128xf32>
    %c5 = arith.constant 5 : index
    %c1_46 = arith.constant 1 : index
    %c0_47 = arith.constant 0 : index
    %54 = vector.load %arg16[%c5, %c1_46, %c0_47] : memref<10x10x128xf32, #tpu.memory_space<vmem>>, vector<1x8x128xf32>
    %55 = vector.shape_cast %54 : vector<1x8x128xf32> to vector<8x128xf32>
    %56 = vector.shape_cast %53 : vector<8x128xf32> to vector<1x8x128xf32>
    tpu.vector_store %arg16[%c5, %c1_46, %c0_47], %56 {strides = array<i32>} : memref<10x10x128xf32, #tpu.memory_space<vmem>>, vector<1x8x128xf32>,
    %57 = vector.extract_strided_slice %36 {offsets = [40, 0], sizes = [8, 128], strides = [1, 1]} : vector<64x128xf32> to vector<8x128xf32>
    %c6 = arith.constant 6 : index
    %c1_48 = arith.constant 1 : index
    %c0_49 = arith.constant 0 : index
    %58 = vector.load %arg16[%c6, %c1_48, %c0_49] : memref<10x10x128xf32, #tpu.memory_space<vmem>>, vector<1x8x128xf32>
    %59 = vector.shape_cast %58 : vector<1x8x128xf32> to vector<8x128xf32>
    %60 = vector.shape_cast %57 : vector<8x128xf32> to vector<1x8x128xf32>
    tpu.vector_store %arg16[%c6, %c1_48, %c0_49], %60 {strides = array<i32>} : memref<10x10x128xf32, #tpu.memory_space<vmem>>, vector<1x8x128xf32>,
    %61 = vector.extract_strided_slice %36 {offsets = [48, 0], sizes = [8, 128], strides = [1, 1]} : vector<64x128xf32> to vector<8x128xf32>
    %c7 = arith.constant 7 : index
    %c1_50 = arith.constant 1 : index
    %c0_51 = arith.constant 0 : index
    %62 = vector.load %arg16[%c7, %c1_50, %c0_51] : memref<10x10x128xf32, #tpu.memory_space<vmem>>, vector<1x8x128xf32>
    %63 = vector.shape_cast %62 : vector<1x8x128xf32> to vector<8x128xf32>
    %64 = vector.shape_cast %61 : vector<8x128xf32> to vector<1x8x128xf32>
    tpu.vector_store %arg16[%c7, %c1_50, %c0_51], %64 {strides = array<i32>} : memref<10x10x128xf32, #tpu.memory_space<vmem>>, vector<1x8x128xf32>,
    %65 = vector.extract_strided_slice %36 {offsets = [56, 0], sizes = [8, 128], strides = [1, 1]} : vector<64x128xf32> to vector<8x128xf32>
    %c8 = arith.constant 8 : index
    %c1_52 = arith.constant 1 : index
    %c0_53 = arith.constant 0 : index
    %66 = vector.load %arg16[%c8, %c1_52, %c0_53] : memref<10x10x128xf32, #tpu.memory_space<vmem>>, vector<1x8x128xf32>
    %67 = vector.shape_cast %66 : vector<1x8x128xf32> to vector<8x128xf32>
    %68 = vector.shape_cast %65 : vector<8x128xf32> to vector<1x8x128xf32>
    tpu.vector_store %arg16[%c8, %c1_52, %c0_53], %68 {strides = array<i32>} : memref<10x10x128xf32, #tpu.memory_space<vmem>>, vector<1x8x128xf32>,
    %c0_54 = arith.constant 0 : index
    %c0_55 = arith.constant 0 : index
    %69 = vector.load %arg8[%c0_54, %c0_55] : memref<9x128xf32, #tpu.memory_space<vmem>>, vector<9x128xf32>
    %c0_56 = arith.constant 0 : index
    %c0_57 = arith.constant 0 : index
    %70 = vector.load %arg9[%c0_56, %c0_57] : memref<1x128xf32, #tpu.memory_space<vmem>>, vector<1x128xf32>
    %c0_58 = arith.constant 0 : index
    %c0_59 = arith.constant 0 : index
    %71 = vector.load %arg10[%c0_58, %c0_59] : memref<1x128xf32, #tpu.memory_space<vmem>>, vector<1x128xf32>
    %cst_60 = arith.constant 0.000000e+00 : f32
    %72 = vector.broadcast %cst_60 : f32 to vector<8x128xf32>
    %c0_61 = arith.constant 0 : index
    %c0_62 = arith.constant 0 : index
    %c0_63 = arith.constant 0 : index
    %73 = vector.load %arg16[%c0_61, %c0_62, %c0_63] : memref<10x10x128xf32, #tpu.memory_space<vmem>>, vector<1x10x128xf32>
    %74 = vector.shape_cast %73 : vector<1x10x128xf32> to vector<10x128xf32>
    %75 = vector.extract_strided_slice %74 {offsets = [0, 0], sizes = [8, 128], strides = [1, 1]} : vector<10x128xf32> to vector<8x128xf32>
    %76 = vector.extract_strided_slice %69 {offsets = [0, 0], sizes = [1, 128], strides = [1, 1]} : vector<9x128xf32> to vector<1x128xf32>
    %77 = vector.shape_cast %76 : vector<1x128xf32> to vector<128xf32>
    %78 = vector.shape_cast %77 : vector<128xf32> to vector<1x128xf32>
    %79 = vector.broadcast %78 : vector<1x128xf32> to vector<8x128xf32>
    %80 = arith.mulf %75, %79 : vector<8x128xf32>
    %81 = arith.addf %72, %80 : vector<8x128xf32>
    %82 = vector.extract_strided_slice %74 {offsets = [1, 0], sizes = [8, 128], strides = [1, 1]} : vector<10x128xf32> to vector<8x128xf32>
    %83 = vector.extract_strided_slice %69 {offsets = [1, 0], sizes = [1, 128], strides = [1, 1]} : vector<9x128xf32> to vector<1x128xf32>
    %84 = vector.shape_cast %83 : vector<1x128xf32> to vector<128xf32>
    %85 = vector.shape_cast %84 : vector<128xf32> to vector<1x128xf32>
    %86 = vector.broadcast %85 : vector<1x128xf32> to vector<8x128xf32>
    %87 = arith.mulf %82, %86 : vector<8x128xf32>
    %88 = arith.addf %81, %87 : vector<8x128xf32>
    %89 = vector.extract_strided_slice %74 {offsets = [2, 0], sizes = [8, 128], strides = [1, 1]} : vector<10x128xf32> to vector<8x128xf32>
    %90 = vector.extract_strided_slice %69 {offsets = [2, 0], sizes = [1, 128], strides = [1, 1]} : vector<9x128xf32> to vector<1x128xf32>
    %91 = vector.shape_cast %90 : vector<1x128xf32> to vector<128xf32>
    %92 = vector.shape_cast %91 : vector<128xf32> to vector<1x128xf32>
    %93 = vector.broadcast %92 : vector<1x128xf32> to vector<8x128xf32>
    %94 = arith.mulf %89, %93 : vector<8x128xf32>
    %95 = arith.addf %88, %94 : vector<8x128xf32>
    %c1_64 = arith.constant 1 : index
    %c0_65 = arith.constant 0 : index
    %c0_66 = arith.constant 0 : index
    %96 = vector.load %arg16[%c1_64, %c0_65, %c0_66] : memref<10x10x128xf32, #tpu.memory_space<vmem>>, vector<1x10x128xf32>
    %97 = vector.shape_cast %96 : vector<1x10x128xf32> to vector<10x128xf32>
    %98 = vector.extract_strided_slice %97 {offsets = [0, 0], sizes = [8, 128], strides = [1, 1]} : vector<10x128xf32> to vector<8x128xf32>
    %99 = vector.extract_strided_slice %69 {offsets = [3, 0], sizes = [1, 128], strides = [1, 1]} : vector<9x128xf32> to vector<1x128xf32>
    %100 = vector.shape_cast %99 : vector<1x128xf32> to vector<128xf32>
    %101 = vector.shape_cast %100 : vector<128xf32> to vector<1x128xf32>
    %102 = vector.broadcast %101 : vector<1x128xf32> to vector<8x128xf32>
    %103 = arith.mulf %98, %102 : vector<8x128xf32>
    %104 = arith.addf %95, %103 : vector<8x128xf32>
    %105 = vector.extract_strided_slice %97 {offsets = [1, 0], sizes = [8, 128], strides = [1, 1]} : vector<10x128xf32> to vector<8x128xf32>
    %106 = vector.extract_strided_slice %69 {offsets = [4, 0], sizes = [1, 128], strides = [1, 1]} : vector<9x128xf32> to vector<1x128xf32>
    %107 = vector.shape_cast %106 : vector<1x128xf32> to vector<128xf32>
    %108 = vector.shape_cast %107 : vector<128xf32> to vector<1x128xf32>
    %109 = vector.broadcast %108 : vector<1x128xf32> to vector<8x128xf32>
    %110 = arith.mulf %105, %109 : vector<8x128xf32>
    %111 = arith.addf %104, %110 : vector<8x128xf32>
    %112 = vector.extract_strided_slice %97 {offsets = [2, 0], sizes = [8, 128], strides = [1, 1]} : vector<10x128xf32> to vector<8x128xf32>
    %113 = vector.extract_strided_slice %69 {offsets = [5, 0], sizes = [1, 128], strides = [1, 1]} : vector<9x128xf32> to vector<1x128xf32>
    %114 = vector.shape_cast %113 : vector<1x128xf32> to vector<128xf32>
    %115 = vector.shape_cast %114 : vector<128xf32> to vector<1x128xf32>
    %116 = vector.broadcast %115 : vector<1x128xf32> to vector<8x128xf32>
    %117 = arith.mulf %112, %116 : vector<8x128xf32>
    %118 = arith.addf %111, %117 : vector<8x128xf32>
    %c2_67 = arith.constant 2 : index
    %c0_68 = arith.constant 0 : index
    %c0_69 = arith.constant 0 : index
    %119 = vector.load %arg16[%c2_67, %c0_68, %c0_69] : memref<10x10x128xf32, #tpu.memory_space<vmem>>, vector<1x10x128xf32>
    %120 = vector.shape_cast %119 : vector<1x10x128xf32> to vector<10x128xf32>
    %121 = vector.extract_strided_slice %120 {offsets = [0, 0], sizes = [8, 128], strides = [1, 1]} : vector<10x128xf32> to vector<8x128xf32>
    %122 = vector.extract_strided_slice %69 {offsets = [6, 0], sizes = [1, 128], strides = [1, 1]} : vector<9x128xf32> to vector<1x128xf32>
    %123 = vector.shape_cast %122 : vector<1x128xf32> to vector<128xf32>
    %124 = vector.shape_cast %123 : vector<128xf32> to vector<1x128xf32>
    %125 = vector.broadcast %124 : vector<1x128xf32> to vector<8x128xf32>
    %126 = arith.mulf %121, %125 : vector<8x128xf32>
    %127 = arith.addf %118, %126 : vector<8x128xf32>
    %128 = vector.extract_strided_slice %120 {offsets = [1, 0], sizes = [8, 128], strides = [1, 1]} : vector<10x128xf32> to vector<8x128xf32>
    %129 = vector.extract_strided_slice %69 {offsets = [7, 0], sizes = [1, 128], strides = [1, 1]} : vector<9x128xf32> to vector<1x128xf32>
    %130 = vector.shape_cast %129 : vector<1x128xf32> to vector<128xf32>
    %131 = vector.shape_cast %130 : vector<128xf32> to vector<1x128xf32>
    %132 = vector.broadcast %131 : vector<1x128xf32> to vector<8x128xf32>
    %133 = arith.mulf %128, %132 : vector<8x128xf32>
    %134 = arith.addf %127, %133 : vector<8x128xf32>
    %135 = vector.extract_strided_slice %120 {offsets = [2, 0], sizes = [8, 128], strides = [1, 1]} : vector<10x128xf32> to vector<8x128xf32>
    %136 = vector.extract_strided_slice %69 {offsets = [8, 0], sizes = [1, 128], strides = [1, 1]} : vector<9x128xf32> to vector<1x128xf32>
    %137 = vector.shape_cast %136 : vector<1x128xf32> to vector<128xf32>
    %138 = vector.shape_cast %137 : vector<128xf32> to vector<1x128xf32>
    %139 = vector.broadcast %138 : vector<1x128xf32> to vector<8x128xf32>
    %140 = arith.mulf %135, %139 : vector<8x128xf32>
    %141 = arith.addf %134, %140 : vector<8x128xf32>
    %142 = vector.broadcast %70 : vector<1x128xf32> to vector<8x128xf32>
    %143 = arith.mulf %141, %142 : vector<8x128xf32>
    %144 = vector.broadcast %71 : vector<1x128xf32> to vector<8x128xf32>
    %145 = arith.addf %143, %144 : vector<8x128xf32>
    %cst_70 = arith.constant 0.000000e+00 : f32
    %cst_71 = arith.constant 6.000000e+00 : f32
    %146 = vector.broadcast %cst_70 : f32 to vector<8x128xf32>
    %147 = arith.maximumf %146, %145 : vector<8x128xf32>
    %148 = vector.broadcast %cst_71 : f32 to vector<8x128xf32>
    %149 = arith.minimumf %148, %147 : vector<8x128xf32>
    %150 = arith.truncf %149 : vector<8x128xf32> to vector<8x128xbf16>
    %c0_72 = arith.constant 0 : index
    %c0_73 = arith.constant 0 : index
    %151 = vector.load %arg17[%c0_72, %c0_73] : memref<64x128xbf16, #tpu.memory_space<vmem>>, vector<8x128xbf16>
    tpu.vector_store %arg17[%c0_72, %c0_73], %150 {strides = array<i32>} : memref<64x128xbf16, #tpu.memory_space<vmem>>, vector<8x128xbf16>,
    %cst_74 = arith.constant 0.000000e+00 : f32
    %152 = vector.broadcast %cst_74 : f32 to vector<8x128xf32>
    %c1_75 = arith.constant 1 : index
    %c0_76 = arith.constant 0 : index
    %c0_77 = arith.constant 0 : index
    %153 = vector.load %arg16[%c1_75, %c0_76, %c0_77] : memref<10x10x128xf32, #tpu.memory_space<vmem>>, vector<1x10x128xf32>
    %154 = vector.shape_cast %153 : vector<1x10x128xf32> to vector<10x128xf32>
    %155 = vector.extract_strided_slice %154 {offsets = [0, 0], sizes = [8, 128], strides = [1, 1]} : vector<10x128xf32> to vector<8x128xf32>
    %156 = vector.extract_strided_slice %69 {offsets = [0, 0], sizes = [1, 128], strides = [1, 1]} : vector<9x128xf32> to vector<1x128xf32>
    %157 = vector.shape_cast %156 : vector<1x128xf32> to vector<128xf32>
    %158 = vector.shape_cast %157 : vector<128xf32> to vector<1x128xf32>
    %159 = vector.broadcast %158 : vector<1x128xf32> to vector<8x128xf32>
    %160 = arith.mulf %155, %159 : vector<8x128xf32>
    %161 = arith.addf %152, %160 : vector<8x128xf32>
    %162 = vector.extract_strided_slice %154 {offsets = [1, 0], sizes = [8, 128], strides = [1, 1]} : vector<10x128xf32> to vector<8x128xf32>
    %163 = vector.extract_strided_slice %69 {offsets = [1, 0], sizes = [1, 128], strides = [1, 1]} : vector<9x128xf32> to vector<1x128xf32>
    %164 = vector.shape_cast %163 : vector<1x128xf32> to vector<128xf32>
    %165 = vector.shape_cast %164 : vector<128xf32> to vector<1x128xf32>
    %166 = vector.broadcast %165 : vector<1x128xf32> to vector<8x128xf32>
    %167 = arith.mulf %162, %166 : vector<8x128xf32>
    %168 = arith.addf %161, %167 : vector<8x128xf32>
    %169 = vector.extract_strided_slice %154 {offsets = [2, 0], sizes = [8, 128], strides = [1, 1]} : vector<10x128xf32> to vector<8x128xf32>
    %170 = vector.extract_strided_slice %69 {offsets = [2, 0], sizes = [1, 128], strides = [1, 1]} : vector<9x128xf32> to vector<1x128xf32>
    %171 = vector.shape_cast %170 : vector<1x128xf32> to vector<128xf32>
    %172 = vector.shape_cast %171 : vector<128xf32> to vector<1x128xf32>
    %173 = vector.broadcast %172 : vector<1x128xf32> to vector<8x128xf32>
    %174 = arith.mulf %169, %173 : vector<8x128xf32>
    %175 = arith.addf %168, %174 : vector<8x128xf32>
    %c2_78 = arith.constant 2 : index
    %c0_79 = arith.constant 0 : index
    %c0_80 = arith.constant 0 : index
    %176 = vector.load %arg16[%c2_78, %c0_79, %c0_80] : memref<10x10x128xf32, #tpu.memory_space<vmem>>, vector<1x10x128xf32>
    %177 = vector.shape_cast %176 : vector<1x10x128xf32> to vector<10x128xf32>
    %178 = vector.extract_strided_slice %177 {offsets = [0, 0], sizes = [8, 128], strides = [1, 1]} : vector<10x128xf32> to vector<8x128xf32>
    %179 = vector.extract_strided_slice %69 {offsets = [3, 0], sizes = [1, 128], strides = [1, 1]} : vector<9x128xf32> to vector<1x128xf32>
    %180 = vector.shape_cast %179 : vector<1x128xf32> to vector<128xf32>
    %181 = vector.shape_cast %180 : vector<128xf32> to vector<1x128xf32>
    %182 = vector.broadcast %181 : vector<1x128xf32> to vector<8x128xf32>
    %183 = arith.mulf %178, %182 : vector<8x128xf32>
    %184 = arith.addf %175, %183 : vector<8x128xf32>
    %185 = vector.extract_strided_slice %177 {offsets = [1, 0], sizes = [8, 128], strides = [1, 1]} : vector<10x128xf32> to vector<8x128xf32>
    %186 = vector.extract_strided_slice %69 {offsets = [4, 0], sizes = [1, 128], strides = [1, 1]} : vector<9x128xf32> to vector<1x128xf32>
    %187 = vector.shape_cast %186 : vector<1x128xf32> to vector<128xf32>
    %188 = vector.shape_cast %187 : vector<128xf32> to vector<1x128xf32>
    %189 = vector.broadcast %188 : vector<1x128xf32> to vector<8x128xf32>
    %190 = arith.mulf %185, %189 : vector<8x128xf32>
    %191 = arith.addf %184, %190 : vector<8x128xf32>
    %192 = vector.extract_strided_slice %177 {offsets = [2, 0], sizes = [8, 128], strides = [1, 1]} : vector<10x128xf32> to vector<8x128xf32>
    %193 = vector.extract_strided_slice %69 {offsets = [5, 0], sizes = [1, 128], strides = [1, 1]} : vector<9x128xf32> to vector<1x128xf32>
    %194 = vector.shape_cast %193 : vector<1x128xf32> to vector<128xf32>
    %195 = vector.shape_cast %194 : vector<128xf32> to vector<1x128xf32>
    %196 = vector.broadcast %195 : vector<1x128xf32> to vector<8x128xf32>
    %197 = arith.mulf %192, %196 : vector<8x128xf32>
    %198 = arith.addf %191, %197 : vector<8x128xf32>
    %c3_81 = arith.constant 3 : index
    %c0_82 = arith.constant 0 : index
    %c0_83 = arith.constant 0 : index
    %199 = vector.load %arg16[%c3_81, %c0_82, %c0_83] : memref<10x10x128xf32, #tpu.memory_space<vmem>>, vector<1x10x128xf32>
    %200 = vector.shape_cast %199 : vector<1x10x128xf32> to vector<10x128xf32>
    %201 = vector.extract_strided_slice %200 {offsets = [0, 0], sizes = [8, 128], strides = [1, 1]} : vector<10x128xf32> to vector<8x128xf32>
    %202 = vector.extract_strided_slice %69 {offsets = [6, 0], sizes = [1, 128], strides = [1, 1]} : vector<9x128xf32> to vector<1x128xf32>
    %203 = vector.shape_cast %202 : vector<1x128xf32> to vector<128xf32>
    %204 = vector.shape_cast %203 : vector<128xf32> to vector<1x128xf32>
    %205 = vector.broadcast %204 : vector<1x128xf32> to vector<8x128xf32>
    %206 = arith.mulf %201, %205 : vector<8x128xf32>
    %207 = arith.addf %198, %206 : vector<8x128xf32>
    %208 = vector.extract_strided_slice %200 {offsets = [1, 0], sizes = [8, 128], strides = [1, 1]} : vector<10x128xf32> to vector<8x128xf32>
    %209 = vector.extract_strided_slice %69 {offsets = [7, 0], sizes = [1, 128], strides = [1, 1]} : vector<9x128xf32> to vector<1x128xf32>
    %210 = vector.shape_cast %209 : vector<1x128xf32> to vector<128xf32>
    %211 = vector.shape_cast %210 : vector<128xf32> to vector<1x128xf32>
    %212 = vector.broadcast %211 : vector<1x128xf32> to vector<8x128xf32>
    %213 = arith.mulf %208, %212 : vector<8x128xf32>
    %214 = arith.addf %207, %213 : vector<8x128xf32>
    %215 = vector.extract_strided_slice %200 {offsets = [2, 0], sizes = [8, 128], strides = [1, 1]} : vector<10x128xf32> to vector<8x128xf32>
    %216 = vector.extract_strided_slice %69 {offsets = [8, 0], sizes = [1, 128], strides = [1, 1]} : vector<9x128xf32> to vector<1x128xf32>
    %217 = vector.shape_cast %216 : vector<1x128xf32> to vector<128xf32>
    %218 = vector.shape_cast %217 : vector<128xf32> to vector<1x128xf32>
    %219 = vector.broadcast %218 : vector<1x128xf32> to vector<8x128xf32>
    %220 = arith.mulf %215, %219 : vector<8x128xf32>
    %221 = arith.addf %214, %220 : vector<8x128xf32>
    %222 = vector.broadcast %70 : vector<1x128xf32> to vector<8x128xf32>
    %223 = arith.mulf %221, %222 : vector<8x128xf32>
    %224 = vector.broadcast %71 : vector<1x128xf32> to vector<8x128xf32>
    %225 = arith.addf %223, %224 : vector<8x128xf32>
    %cst_84 = arith.constant 0.000000e+00 : f32
    %cst_85 = arith.constant 6.000000e+00 : f32
    %226 = vector.broadcast %cst_84 : f32 to vector<8x128xf32>
    %227 = arith.maximumf %226, %225 : vector<8x128xf32>
    %228 = vector.broadcast %cst_85 : f32 to vector<8x128xf32>
    %229 = arith.minimumf %228, %227 : vector<8x128xf32>
    %230 = arith.truncf %229 : vector<8x128xf32> to vector<8x128xbf16>
    %c8_86 = arith.constant 8 : index
    %c0_87 = arith.constant 0 : index
    %231 = vector.load %arg17[%c8_86, %c0_87] : memref<64x128xbf16, #tpu.memory_space<vmem>>, vector<8x128xbf16>
    tpu.vector_store %arg17[%c8_86, %c0_87], %230 {strides = array<i32>} : memref<64x128xbf16, #tpu.memory_space<vmem>>, vector<8x128xbf16>,
    %cst_88 = arith.constant 0.000000e+00 : f32
    %232 = vector.broadcast %cst_88 : f32 to vector<8x128xf32>
    %c2_89 = arith.constant 2 : index
    %c0_90 = arith.constant 0 : index
    %c0_91 = arith.constant 0 : index
    %233 = vector.load %arg16[%c2_89, %c0_90, %c0_91] : memref<10x10x128xf32, #tpu.memory_space<vmem>>, vector<1x10x128xf32>
    %234 = vector.shape_cast %233 : vector<1x10x128xf32> to vector<10x128xf32>
    %235 = vector.extract_strided_slice %234 {offsets = [0, 0], sizes = [8, 128], strides = [1, 1]} : vector<10x128xf32> to vector<8x128xf32>
    %236 = vector.extract_strided_slice %69 {offsets = [0, 0], sizes = [1, 128], strides = [1, 1]} : vector<9x128xf32> to vector<1x128xf32>
    %237 = vector.shape_cast %236 : vector<1x128xf32> to vector<128xf32>
    %238 = vector.shape_cast %237 : vector<128xf32> to vector<1x128xf32>
    %239 = vector.broadcast %238 : vector<1x128xf32> to vector<8x128xf32>
    %240 = arith.mulf %235, %239 : vector<8x128xf32>
    %241 = arith.addf %232, %240 : vector<8x128xf32>
    %242 = vector.extract_strided_slice %234 {offsets = [1, 0], sizes = [8, 128], strides = [1, 1]} : vector<10x128xf32> to vector<8x128xf32>
    %243 = vector.extract_strided_slice %69 {offsets = [1, 0], sizes = [1, 128], strides = [1, 1]} : vector<9x128xf32> to vector<1x128xf32>
    %244 = vector.shape_cast %243 : vector<1x128xf32> to vector<128xf32>
    %245 = vector.shape_cast %244 : vector<128xf32> to vector<1x128xf32>
    %246 = vector.broadcast %245 : vector<1x128xf32> to vector<8x128xf32>
    %247 = arith.mulf %242, %246 : vector<8x128xf32>
    %248 = arith.addf %241, %247 : vector<8x128xf32>
    %249 = vector.extract_strided_slice %234 {offsets = [2, 0], sizes = [8, 128], strides = [1, 1]} : vector<10x128xf32> to vector<8x128xf32>
    %250 = vector.extract_strided_slice %69 {offsets = [2, 0], sizes = [1, 128], strides = [1, 1]} : vector<9x128xf32> to vector<1x128xf32>
    %251 = vector.shape_cast %250 : vector<1x128xf32> to vector<128xf32>
    %252 = vector.shape_cast %251 : vector<128xf32> to vector<1x128xf32>
    %253 = vector.broadcast %252 : vector<1x128xf32> to vector<8x128xf32>
    %254 = arith.mulf %249, %253 : vector<8x128xf32>
    %255 = arith.addf %248, %254 : vector<8x128xf32>
    %c3_92 = arith.constant 3 : index
    %c0_93 = arith.constant 0 : index
    %c0_94 = arith.constant 0 : index
    %256 = vector.load %arg16[%c3_92, %c0_93, %c0_94] : memref<10x10x128xf32, #tpu.memory_space<vmem>>, vector<1x10x128xf32>
    %257 = vector.shape_cast %256 : vector<1x10x128xf32> to vector<10x128xf32>
    %258 = vector.extract_strided_slice %257 {offsets = [0, 0], sizes = [8, 128], strides = [1, 1]} : vector<10x128xf32> to vector<8x128xf32>
    %259 = vector.extract_strided_slice %69 {offsets = [3, 0], sizes = [1, 128], strides = [1, 1]} : vector<9x128xf32> to vector<1x128xf32>
    %260 = vector.shape_cast %259 : vector<1x128xf32> to vector<128xf32>
    %261 = vector.shape_cast %260 : vector<128xf32> to vector<1x128xf32>
    %262 = vector.broadcast %261 : vector<1x128xf32> to vector<8x128xf32>
    %263 = arith.mulf %258, %262 : vector<8x128xf32>
    %264 = arith.addf %255, %263 : vector<8x128xf32>
    %265 = vector.extract_strided_slice %257 {offsets = [1, 0], sizes = [8, 128], strides = [1, 1]} : vector<10x128xf32> to vector<8x128xf32>
    %266 = vector.extract_strided_slice %69 {offsets = [4, 0], sizes = [1, 128], strides = [1, 1]} : vector<9x128xf32> to vector<1x128xf32>
    %267 = vector.shape_cast %266 : vector<1x128xf32> to vector<128xf32>
    %268 = vector.shape_cast %267 : vector<128xf32> to vector<1x128xf32>
    %269 = vector.broadcast %268 : vector<1x128xf32> to vector<8x128xf32>
    %270 = arith.mulf %265, %269 : vector<8x128xf32>
    %271 = arith.addf %264, %270 : vector<8x128xf32>
    %272 = vector.extract_strided_slice %257 {offsets = [2, 0], sizes = [8, 128], strides = [1, 1]} : vector<10x128xf32> to vector<8x128xf32>
    %273 = vector.extract_strided_slice %69 {offsets = [5, 0], sizes = [1, 128], strides = [1, 1]} : vector<9x128xf32> to vector<1x128xf32>
    %274 = vector.shape_cast %273 : vector<1x128xf32> to vector<128xf32>
    %275 = vector.shape_cast %274 : vector<128xf32> to vector<1x128xf32>
    %276 = vector.broadcast %275 : vector<1x128xf32> to vector<8x128xf32>
    %277 = arith.mulf %272, %276 : vector<8x128xf32>
    %278 = arith.addf %271, %277 : vector<8x128xf32>
    %c4_95 = arith.constant 4 : index
    %c0_96 = arith.constant 0 : index
    %c0_97 = arith.constant 0 : index
    %279 = vector.load %arg16[%c4_95, %c0_96, %c0_97] : memref<10x10x128xf32, #tpu.memory_space<vmem>>, vector<1x10x128xf32>
    %280 = vector.shape_cast %279 : vector<1x10x128xf32> to vector<10x128xf32>
    %281 = vector.extract_strided_slice %280 {offsets = [0, 0], sizes = [8, 128], strides = [1, 1]} : vector<10x128xf32> to vector<8x128xf32>
    %282 = vector.extract_strided_slice %69 {offsets = [6, 0], sizes = [1, 128], strides = [1, 1]} : vector<9x128xf32> to vector<1x128xf32>
    %283 = vector.shape_cast %282 : vector<1x128xf32> to vector<128xf32>
    %284 = vector.shape_cast %283 : vector<128xf32> to vector<1x128xf32>
    %285 = vector.broadcast %284 : vector<1x128xf32> to vector<8x128xf32>
    %286 = arith.mulf %281, %285 : vector<8x128xf32>
    %287 = arith.addf %278, %286 : vector<8x128xf32>
    %288 = vector.extract_strided_slice %280 {offsets = [1, 0], sizes = [8, 128], strides = [1, 1]} : vector<10x128xf32> to vector<8x128xf32>
    %289 = vector.extract_strided_slice %69 {offsets = [7, 0], sizes = [1, 128], strides = [1, 1]} : vector<9x128xf32> to vector<1x128xf32>
    %290 = vector.shape_cast %289 : vector<1x128xf32> to vector<128xf32>
    %291 = vector.shape_cast %290 : vector<128xf32> to vector<1x128xf32>
    %292 = vector.broadcast %291 : vector<1x128xf32> to vector<8x128xf32>
    %293 = arith.mulf %288, %292 : vector<8x128xf32>
    %294 = arith.addf %287, %293 : vector<8x128xf32>
    %295 = vector.extract_strided_slice %280 {offsets = [2, 0], sizes = [8, 128], strides = [1, 1]} : vector<10x128xf32> to vector<8x128xf32>
    %296 = vector.extract_strided_slice %69 {offsets = [8, 0], sizes = [1, 128], strides = [1, 1]} : vector<9x128xf32> to vector<1x128xf32>
    %297 = vector.shape_cast %296 : vector<1x128xf32> to vector<128xf32>
    %298 = vector.shape_cast %297 : vector<128xf32> to vector<1x128xf32>
    %299 = vector.broadcast %298 : vector<1x128xf32> to vector<8x128xf32>
    %300 = arith.mulf %295, %299 : vector<8x128xf32>
    %301 = arith.addf %294, %300 : vector<8x128xf32>
    %302 = vector.broadcast %70 : vector<1x128xf32> to vector<8x128xf32>
    %303 = arith.mulf %301, %302 : vector<8x128xf32>
    %304 = vector.broadcast %71 : vector<1x128xf32> to vector<8x128xf32>
    %305 = arith.addf %303, %304 : vector<8x128xf32>
    %cst_98 = arith.constant 0.000000e+00 : f32
    %cst_99 = arith.constant 6.000000e+00 : f32
    %306 = vector.broadcast %cst_98 : f32 to vector<8x128xf32>
    %307 = arith.maximumf %306, %305 : vector<8x128xf32>
    %308 = vector.broadcast %cst_99 : f32 to vector<8x128xf32>
    %309 = arith.minimumf %308, %307 : vector<8x128xf32>
    %310 = arith.truncf %309 : vector<8x128xf32> to vector<8x128xbf16>
    %c16 = arith.constant 16 : index
    %c0_100 = arith.constant 0 : index
    %311 = vector.load %arg17[%c16, %c0_100] : memref<64x128xbf16, #tpu.memory_space<vmem>>, vector<8x128xbf16>
    tpu.vector_store %arg17[%c16, %c0_100], %310 {strides = array<i32>} : memref<64x128xbf16, #tpu.memory_space<vmem>>, vector<8x128xbf16>,
    %cst_101 = arith.constant 0.000000e+00 : f32
    %312 = vector.broadcast %cst_101 : f32 to vector<8x128xf32>
    %c3_102 = arith.constant 3 : index
    %c0_103 = arith.constant 0 : index
    %c0_104 = arith.constant 0 : index
    %313 = vector.load %arg16[%c3_102, %c0_103, %c0_104] : memref<10x10x128xf32, #tpu.memory_space<vmem>>, vector<1x10x128xf32>
    %314 = vector.shape_cast %313 : vector<1x10x128xf32> to vector<10x128xf32>
    %315 = vector.extract_strided_slice %314 {offsets = [0, 0], sizes = [8, 128], strides = [1, 1]} : vector<10x128xf32> to vector<8x128xf32>
    %316 = vector.extract_strided_slice %69 {offsets = [0, 0], sizes = [1, 128], strides = [1, 1]} : vector<9x128xf32> to vector<1x128xf32>
    %317 = vector.shape_cast %316 : vector<1x128xf32> to vector<128xf32>
    %318 = vector.shape_cast %317 : vector<128xf32> to vector<1x128xf32>
    %319 = vector.broadcast %318 : vector<1x128xf32> to vector<8x128xf32>
    %320 = arith.mulf %315, %319 : vector<8x128xf32>
    %321 = arith.addf %312, %320 : vector<8x128xf32>
    %322 = vector.extract_strided_slice %314 {offsets = [1, 0], sizes = [8, 128], strides = [1, 1]} : vector<10x128xf32> to vector<8x128xf32>
    %323 = vector.extract_strided_slice %69 {offsets = [1, 0], sizes = [1, 128], strides = [1, 1]} : vector<9x128xf32> to vector<1x128xf32>
    %324 = vector.shape_cast %323 : vector<1x128xf32> to vector<128xf32>
    %325 = vector.shape_cast %324 : vector<128xf32> to vector<1x128xf32>
    %326 = vector.broadcast %325 : vector<1x128xf32> to vector<8x128xf32>
    %327 = arith.mulf %322, %326 : vector<8x128xf32>
    %328 = arith.addf %321, %327 : vector<8x128xf32>
    %329 = vector.extract_strided_slice %314 {offsets = [2, 0], sizes = [8, 128], strides = [1, 1]} : vector<10x128xf32> to vector<8x128xf32>
    %330 = vector.extract_strided_slice %69 {offsets = [2, 0], sizes = [1, 128], strides = [1, 1]} : vector<9x128xf32> to vector<1x128xf32>
    %331 = vector.shape_cast %330 : vector<1x128xf32> to vector<128xf32>
    %332 = vector.shape_cast %331 : vector<128xf32> to vector<1x128xf32>
    %333 = vector.broadcast %332 : vector<1x128xf32> to vector<8x128xf32>
    %334 = arith.mulf %329, %333 : vector<8x128xf32>
    %335 = arith.addf %328, %334 : vector<8x128xf32>
    %c4_105 = arith.constant 4 : index
    %c0_106 = arith.constant 0 : index
    %c0_107 = arith.constant 0 : index
    %336 = vector.load %arg16[%c4_105, %c0_106, %c0_107] : memref<10x10x128xf32, #tpu.memory_space<vmem>>, vector<1x10x128xf32>
    %337 = vector.shape_cast %336 : vector<1x10x128xf32> to vector<10x128xf32>
    %338 = vector.extract_strided_slice %337 {offsets = [0, 0], sizes = [8, 128], strides = [1, 1]} : vector<10x128xf32> to vector<8x128xf32>
    %339 = vector.extract_strided_slice %69 {offsets = [3, 0], sizes = [1, 128], strides = [1, 1]} : vector<9x128xf32> to vector<1x128xf32>
    %340 = vector.shape_cast %339 : vector<1x128xf32> to vector<128xf32>
    %341 = vector.shape_cast %340 : vector<128xf32> to vector<1x128xf32>
    %342 = vector.broadcast %341 : vector<1x128xf32> to vector<8x128xf32>
    %343 = arith.mulf %338, %342 : vector<8x128xf32>
    %344 = arith.addf %335, %343 : vector<8x128xf32>
    %345 = vector.extract_strided_slice %337 {offsets = [1, 0], sizes = [8, 128], strides = [1, 1]} : vector<10x128xf32> to vector<8x128xf32>
    %346 = vector.extract_strided_slice %69 {offsets = [4, 0], sizes = [1, 128], strides = [1, 1]} : vector<9x128xf32> to vector<1x128xf32>
    %347 = vector.shape_cast %346 : vector<1x128xf32> to vector<128xf32>
    %348 = vector.shape_cast %347 : vector<128xf32> to vector<1x128xf32>
    %349 = vector.broadcast %348 : vector<1x128xf32> to vector<8x128xf32>
    %350 = arith.mulf %345, %349 : vector<8x128xf32>
    %351 = arith.addf %344, %350 : vector<8x128xf32>
    %352 = vector.extract_strided_slice %337 {offsets = [2, 0], sizes = [8, 128], strides = [1, 1]} : vector<10x128xf32> to vector<8x128xf32>
    %353 = vector.extract_strided_slice %69 {offsets = [5, 0], sizes = [1, 128], strides = [1, 1]} : vector<9x128xf32> to vector<1x128xf32>
    %354 = vector.shape_cast %353 : vector<1x128xf32> to vector<128xf32>
    %355 = vector.shape_cast %354 : vector<128xf32> to vector<1x128xf32>
    %356 = vector.broadcast %355 : vector<1x128xf32> to vector<8x128xf32>
    %357 = arith.mulf %352, %356 : vector<8x128xf32>
    %358 = arith.addf %351, %357 : vector<8x128xf32>
    %c5_108 = arith.constant 5 : index
    %c0_109 = arith.constant 0 : index
    %c0_110 = arith.constant 0 : index
    %359 = vector.load %arg16[%c5_108, %c0_109, %c0_110] : memref<10x10x128xf32, #tpu.memory_space<vmem>>, vector<1x10x128xf32>
    %360 = vector.shape_cast %359 : vector<1x10x128xf32> to vector<10x128xf32>
    %361 = vector.extract_strided_slice %360 {offsets = [0, 0], sizes = [8, 128], strides = [1, 1]} : vector<10x128xf32> to vector<8x128xf32>
    %362 = vector.extract_strided_slice %69 {offsets = [6, 0], sizes = [1, 128], strides = [1, 1]} : vector<9x128xf32> to vector<1x128xf32>
    %363 = vector.shape_cast %362 : vector<1x128xf32> to vector<128xf32>
    %364 = vector.shape_cast %363 : vector<128xf32> to vector<1x128xf32>
    %365 = vector.broadcast %364 : vector<1x128xf32> to vector<8x128xf32>
    %366 = arith.mulf %361, %365 : vector<8x128xf32>
    %367 = arith.addf %358, %366 : vector<8x128xf32>
    %368 = vector.extract_strided_slice %360 {offsets = [1, 0], sizes = [8, 128], strides = [1, 1]} : vector<10x128xf32> to vector<8x128xf32>
    %369 = vector.extract_strided_slice %69 {offsets = [7, 0], sizes = [1, 128], strides = [1, 1]} : vector<9x128xf32> to vector<1x128xf32>
    %370 = vector.shape_cast %369 : vector<1x128xf32> to vector<128xf32>
    %371 = vector.shape_cast %370 : vector<128xf32> to vector<1x128xf32>
    %372 = vector.broadcast %371 : vector<1x128xf32> to vector<8x128xf32>
    %373 = arith.mulf %368, %372 : vector<8x128xf32>
    %374 = arith.addf %367, %373 : vector<8x128xf32>
    %375 = vector.extract_strided_slice %360 {offsets = [2, 0], sizes = [8, 128], strides = [1, 1]} : vector<10x128xf32> to vector<8x128xf32>
    %376 = vector.extract_strided_slice %69 {offsets = [8, 0], sizes = [1, 128], strides = [1, 1]} : vector<9x128xf32> to vector<1x128xf32>
    %377 = vector.shape_cast %376 : vector<1x128xf32> to vector<128xf32>
    %378 = vector.shape_cast %377 : vector<128xf32> to vector<1x128xf32>
    %379 = vector.broadcast %378 : vector<1x128xf32> to vector<8x128xf32>
    %380 = arith.mulf %375, %379 : vector<8x128xf32>
    %381 = arith.addf %374, %380 : vector<8x128xf32>
    %382 = vector.broadcast %70 : vector<1x128xf32> to vector<8x128xf32>
    %383 = arith.mulf %381, %382 : vector<8x128xf32>
    %384 = vector.broadcast %71 : vector<1x128xf32> to vector<8x128xf32>
    %385 = arith.addf %383, %384 : vector<8x128xf32>
    %cst_111 = arith.constant 0.000000e+00 : f32
    %cst_112 = arith.constant 6.000000e+00 : f32
    %386 = vector.broadcast %cst_111 : f32 to vector<8x128xf32>
    %387 = arith.maximumf %386, %385 : vector<8x128xf32>
    %388 = vector.broadcast %cst_112 : f32 to vector<8x128xf32>
    %389 = arith.minimumf %388, %387 : vector<8x128xf32>
    %390 = arith.truncf %389 : vector<8x128xf32> to vector<8x128xbf16>
    %c24 = arith.constant 24 : index
    %c0_113 = arith.constant 0 : index
    %391 = vector.load %arg17[%c24, %c0_113] : memref<64x128xbf16, #tpu.memory_space<vmem>>, vector<8x128xbf16>
    tpu.vector_store %arg17[%c24, %c0_113], %390 {strides = array<i32>} : memref<64x128xbf16, #tpu.memory_space<vmem>>, vector<8x128xbf16>,
    %cst_114 = arith.constant 0.000000e+00 : f32
    %392 = vector.broadcast %cst_114 : f32 to vector<8x128xf32>
    %c4_115 = arith.constant 4 : index
    %c0_116 = arith.constant 0 : index
    %c0_117 = arith.constant 0 : index
    %393 = vector.load %arg16[%c4_115, %c0_116, %c0_117] : memref<10x10x128xf32, #tpu.memory_space<vmem>>, vector<1x10x128xf32>
    %394 = vector.shape_cast %393 : vector<1x10x128xf32> to vector<10x128xf32>
    %395 = vector.extract_strided_slice %394 {offsets = [0, 0], sizes = [8, 128], strides = [1, 1]} : vector<10x128xf32> to vector<8x128xf32>
    %396 = vector.extract_strided_slice %69 {offsets = [0, 0], sizes = [1, 128], strides = [1, 1]} : vector<9x128xf32> to vector<1x128xf32>
    %397 = vector.shape_cast %396 : vector<1x128xf32> to vector<128xf32>
    %398 = vector.shape_cast %397 : vector<128xf32> to vector<1x128xf32>
    %399 = vector.broadcast %398 : vector<1x128xf32> to vector<8x128xf32>
    %400 = arith.mulf %395, %399 : vector<8x128xf32>
    %401 = arith.addf %392, %400 : vector<8x128xf32>
    %402 = vector.extract_strided_slice %394 {offsets = [1, 0], sizes = [8, 128], strides = [1, 1]} : vector<10x128xf32> to vector<8x128xf32>
    %403 = vector.extract_strided_slice %69 {offsets = [1, 0], sizes = [1, 128], strides = [1, 1]} : vector<9x128xf32> to vector<1x128xf32>
    %404 = vector.shape_cast %403 : vector<1x128xf32> to vector<128xf32>
    %405 = vector.shape_cast %404 : vector<128xf32> to vector<1x128xf32>
    %406 = vector.broadcast %405 : vector<1x128xf32> to vector<8x128xf32>
    %407 = arith.mulf %402, %406 : vector<8x128xf32>
    %408 = arith.addf %401, %407 : vector<8x128xf32>
    %409 = vector.extract_strided_slice %394 {offsets = [2, 0], sizes = [8, 128], strides = [1, 1]} : vector<10x128xf32> to vector<8x128xf32>
    %410 = vector.extract_strided_slice %69 {offsets = [2, 0], sizes = [1, 128], strides = [1, 1]} : vector<9x128xf32> to vector<1x128xf32>
    %411 = vector.shape_cast %410 : vector<1x128xf32> to vector<128xf32>
    %412 = vector.shape_cast %411 : vector<128xf32> to vector<1x128xf32>
    %413 = vector.broadcast %412 : vector<1x128xf32> to vector<8x128xf32>
    %414 = arith.mulf %409, %413 : vector<8x128xf32>
    %415 = arith.addf %408, %414 : vector<8x128xf32>
    %c5_118 = arith.constant 5 : index
    %c0_119 = arith.constant 0 : index
    %c0_120 = arith.constant 0 : index
    %416 = vector.load %arg16[%c5_118, %c0_119, %c0_120] : memref<10x10x128xf32, #tpu.memory_space<vmem>>, vector<1x10x128xf32>
    %417 = vector.shape_cast %416 : vector<1x10x128xf32> to vector<10x128xf32>
    %418 = vector.extract_strided_slice %417 {offsets = [0, 0], sizes = [8, 128], strides = [1, 1]} : vector<10x128xf32> to vector<8x128xf32>
    %419 = vector.extract_strided_slice %69 {offsets = [3, 0], sizes = [1, 128], strides = [1, 1]} : vector<9x128xf32> to vector<1x128xf32>
    %420 = vector.shape_cast %419 : vector<1x128xf32> to vector<128xf32>
    %421 = vector.shape_cast %420 : vector<128xf32> to vector<1x128xf32>
    %422 = vector.broadcast %421 : vector<1x128xf32> to vector<8x128xf32>
    %423 = arith.mulf %418, %422 : vector<8x128xf32>
    %424 = arith.addf %415, %423 : vector<8x128xf32>
    %425 = vector.extract_strided_slice %417 {offsets = [1, 0], sizes = [8, 128], strides = [1, 1]} : vector<10x128xf32> to vector<8x128xf32>
    %426 = vector.extract_strided_slice %69 {offsets = [4, 0], sizes = [1, 128], strides = [1, 1]} : vector<9x128xf32> to vector<1x128xf32>
    %427 = vector.shape_cast %426 : vector<1x128xf32> to vector<128xf32>
    %428 = vector.shape_cast %427 : vector<128xf32> to vector<1x128xf32>
    %429 = vector.broadcast %428 : vector<1x128xf32> to vector<8x128xf32>
    %430 = arith.mulf %425, %429 : vector<8x128xf32>
    %431 = arith.addf %424, %430 : vector<8x128xf32>
    %432 = vector.extract_strided_slice %417 {offsets = [2, 0], sizes = [8, 128], strides = [1, 1]} : vector<10x128xf32> to vector<8x128xf32>
    %433 = vector.extract_strided_slice %69 {offsets = [5, 0], sizes = [1, 128], strides = [1, 1]} : vector<9x128xf32> to vector<1x128xf32>
    %434 = vector.shape_cast %433 : vector<1x128xf32> to vector<128xf32>
    %435 = vector.shape_cast %434 : vector<128xf32> to vector<1x128xf32>
    %436 = vector.broadcast %435 : vector<1x128xf32> to vector<8x128xf32>
    %437 = arith.mulf %432, %436 : vector<8x128xf32>
    %438 = arith.addf %431, %437 : vector<8x128xf32>
    %c6_121 = arith.constant 6 : index
    %c0_122 = arith.constant 0 : index
    %c0_123 = arith.constant 0 : index
    %439 = vector.load %arg16[%c6_121, %c0_122, %c0_123] : memref<10x10x128xf32, #tpu.memory_space<vmem>>, vector<1x10x128xf32>
    %440 = vector.shape_cast %439 : vector<1x10x128xf32> to vector<10x128xf32>
    %441 = vector.extract_strided_slice %440 {offsets = [0, 0], sizes = [8, 128], strides = [1, 1]} : vector<10x128xf32> to vector<8x128xf32>
    %442 = vector.extract_strided_slice %69 {offsets = [6, 0], sizes = [1, 128], strides = [1, 1]} : vector<9x128xf32> to vector<1x128xf32>
    %443 = vector.shape_cast %442 : vector<1x128xf32> to vector<128xf32>
    %444 = vector.shape_cast %443 : vector<128xf32> to vector<1x128xf32>
    %445 = vector.broadcast %444 : vector<1x128xf32> to vector<8x128xf32>
    %446 = arith.mulf %441, %445 : vector<8x128xf32>
    %447 = arith.addf %438, %446 : vector<8x128xf32>
    %448 = vector.extract_strided_slice %440 {offsets = [1, 0], sizes = [8, 128], strides = [1, 1]} : vector<10x128xf32> to vector<8x128xf32>
    %449 = vector.extract_strided_slice %69 {offsets = [7, 0], sizes = [1, 128], strides = [1, 1]} : vector<9x128xf32> to vector<1x128xf32>
    %450 = vector.shape_cast %449 : vector<1x128xf32> to vector<128xf32>
    %451 = vector.shape_cast %450 : vector<128xf32> to vector<1x128xf32>
    %452 = vector.broadcast %451 : vector<1x128xf32> to vector<8x128xf32>
    %453 = arith.mulf %448, %452 : vector<8x128xf32>
    %454 = arith.addf %447, %453 : vector<8x128xf32>
    %455 = vector.extract_strided_slice %440 {offsets = [2, 0], sizes = [8, 128], strides = [1, 1]} : vector<10x128xf32> to vector<8x128xf32>
    %456 = vector.extract_strided_slice %69 {offsets = [8, 0], sizes = [1, 128], strides = [1, 1]} : vector<9x128xf32> to vector<1x128xf32>
    %457 = vector.shape_cast %456 : vector<1x128xf32> to vector<128xf32>
    %458 = vector.shape_cast %457 : vector<128xf32> to vector<1x128xf32>
    %459 = vector.broadcast %458 : vector<1x128xf32> to vector<8x128xf32>
    %460 = arith.mulf %455, %459 : vector<8x128xf32>
    %461 = arith.addf %454, %460 : vector<8x128xf32>
    %462 = vector.broadcast %70 : vector<1x128xf32> to vector<8x128xf32>
    %463 = arith.mulf %461, %462 : vector<8x128xf32>
    %464 = vector.broadcast %71 : vector<1x128xf32> to vector<8x128xf32>
    %465 = arith.addf %463, %464 : vector<8x128xf32>
    %cst_124 = arith.constant 0.000000e+00 : f32
    %cst_125 = arith.constant 6.000000e+00 : f32
    %466 = vector.broadcast %cst_124 : f32 to vector<8x128xf32>
    %467 = arith.maximumf %466, %465 : vector<8x128xf32>
    %468 = vector.broadcast %cst_125 : f32 to vector<8x128xf32>
    %469 = arith.minimumf %468, %467 : vector<8x128xf32>
    %470 = arith.truncf %469 : vector<8x128xf32> to vector<8x128xbf16>
    %c32 = arith.constant 32 : index
    %c0_126 = arith.constant 0 : index
    %471 = vector.load %arg17[%c32, %c0_126] : memref<64x128xbf16, #tpu.memory_space<vmem>>, vector<8x128xbf16>
    tpu.vector_store %arg17[%c32, %c0_126], %470 {strides = array<i32>} : memref<64x128xbf16, #tpu.memory_space<vmem>>, vector<8x128xbf16>,
    %cst_127 = arith.constant 0.000000e+00 : f32
    %472 = vector.broadcast %cst_127 : f32 to vector<8x128xf32>
    %c5_128 = arith.constant 5 : index
    %c0_129 = arith.constant 0 : index
    %c0_130 = arith.constant 0 : index
    %473 = vector.load %arg16[%c5_128, %c0_129, %c0_130] : memref<10x10x128xf32, #tpu.memory_space<vmem>>, vector<1x10x128xf32>
    %474 = vector.shape_cast %473 : vector<1x10x128xf32> to vector<10x128xf32>
    %475 = vector.extract_strided_slice %474 {offsets = [0, 0], sizes = [8, 128], strides = [1, 1]} : vector<10x128xf32> to vector<8x128xf32>
    %476 = vector.extract_strided_slice %69 {offsets = [0, 0], sizes = [1, 128], strides = [1, 1]} : vector<9x128xf32> to vector<1x128xf32>
    %477 = vector.shape_cast %476 : vector<1x128xf32> to vector<128xf32>
    %478 = vector.shape_cast %477 : vector<128xf32> to vector<1x128xf32>
    %479 = vector.broadcast %478 : vector<1x128xf32> to vector<8x128xf32>
    %480 = arith.mulf %475, %479 : vector<8x128xf32>
    %481 = arith.addf %472, %480 : vector<8x128xf32>
    %482 = vector.extract_strided_slice %474 {offsets = [1, 0], sizes = [8, 128], strides = [1, 1]} : vector<10x128xf32> to vector<8x128xf32>
    %483 = vector.extract_strided_slice %69 {offsets = [1, 0], sizes = [1, 128], strides = [1, 1]} : vector<9x128xf32> to vector<1x128xf32>
    %484 = vector.shape_cast %483 : vector<1x128xf32> to vector<128xf32>
    %485 = vector.shape_cast %484 : vector<128xf32> to vector<1x128xf32>
    %486 = vector.broadcast %485 : vector<1x128xf32> to vector<8x128xf32>
    %487 = arith.mulf %482, %486 : vector<8x128xf32>
    %488 = arith.addf %481, %487 : vector<8x128xf32>
    %489 = vector.extract_strided_slice %474 {offsets = [2, 0], sizes = [8, 128], strides = [1, 1]} : vector<10x128xf32> to vector<8x128xf32>
    %490 = vector.extract_strided_slice %69 {offsets = [2, 0], sizes = [1, 128], strides = [1, 1]} : vector<9x128xf32> to vector<1x128xf32>
    %491 = vector.shape_cast %490 : vector<1x128xf32> to vector<128xf32>
    %492 = vector.shape_cast %491 : vector<128xf32> to vector<1x128xf32>
    %493 = vector.broadcast %492 : vector<1x128xf32> to vector<8x128xf32>
    %494 = arith.mulf %489, %493 : vector<8x128xf32>
    %495 = arith.addf %488, %494 : vector<8x128xf32>
    %c6_131 = arith.constant 6 : index
    %c0_132 = arith.constant 0 : index
    %c0_133 = arith.constant 0 : index
    %496 = vector.load %arg16[%c6_131, %c0_132, %c0_133] : memref<10x10x128xf32, #tpu.memory_space<vmem>>, vector<1x10x128xf32>
    %497 = vector.shape_cast %496 : vector<1x10x128xf32> to vector<10x128xf32>
    %498 = vector.extract_strided_slice %497 {offsets = [0, 0], sizes = [8, 128], strides = [1, 1]} : vector<10x128xf32> to vector<8x128xf32>
    %499 = vector.extract_strided_slice %69 {offsets = [3, 0], sizes = [1, 128], strides = [1, 1]} : vector<9x128xf32> to vector<1x128xf32>
    %500 = vector.shape_cast %499 : vector<1x128xf32> to vector<128xf32>
    %501 = vector.shape_cast %500 : vector<128xf32> to vector<1x128xf32>
    %502 = vector.broadcast %501 : vector<1x128xf32> to vector<8x128xf32>
    %503 = arith.mulf %498, %502 : vector<8x128xf32>
    %504 = arith.addf %495, %503 : vector<8x128xf32>
    %505 = vector.extract_strided_slice %497 {offsets = [1, 0], sizes = [8, 128], strides = [1, 1]} : vector<10x128xf32> to vector<8x128xf32>
    %506 = vector.extract_strided_slice %69 {offsets = [4, 0], sizes = [1, 128], strides = [1, 1]} : vector<9x128xf32> to vector<1x128xf32>
    %507 = vector.shape_cast %506 : vector<1x128xf32> to vector<128xf32>
    %508 = vector.shape_cast %507 : vector<128xf32> to vector<1x128xf32>
    %509 = vector.broadcast %508 : vector<1x128xf32> to vector<8x128xf32>
    %510 = arith.mulf %505, %509 : vector<8x128xf32>
    %511 = arith.addf %504, %510 : vector<8x128xf32>
    %512 = vector.extract_strided_slice %497 {offsets = [2, 0], sizes = [8, 128], strides = [1, 1]} : vector<10x128xf32> to vector<8x128xf32>
    %513 = vector.extract_strided_slice %69 {offsets = [5, 0], sizes = [1, 128], strides = [1, 1]} : vector<9x128xf32> to vector<1x128xf32>
    %514 = vector.shape_cast %513 : vector<1x128xf32> to vector<128xf32>
    %515 = vector.shape_cast %514 : vector<128xf32> to vector<1x128xf32>
    %516 = vector.broadcast %515 : vector<1x128xf32> to vector<8x128xf32>
    %517 = arith.mulf %512, %516 : vector<8x128xf32>
    %518 = arith.addf %511, %517 : vector<8x128xf32>
    %c7_134 = arith.constant 7 : index
    %c0_135 = arith.constant 0 : index
    %c0_136 = arith.constant 0 : index
    %519 = vector.load %arg16[%c7_134, %c0_135, %c0_136] : memref<10x10x128xf32, #tpu.memory_space<vmem>>, vector<1x10x128xf32>
    %520 = vector.shape_cast %519 : vector<1x10x128xf32> to vector<10x128xf32>
    %521 = vector.extract_strided_slice %520 {offsets = [0, 0], sizes = [8, 128], strides = [1, 1]} : vector<10x128xf32> to vector<8x128xf32>
    %522 = vector.extract_strided_slice %69 {offsets = [6, 0], sizes = [1, 128], strides = [1, 1]} : vector<9x128xf32> to vector<1x128xf32>
    %523 = vector.shape_cast %522 : vector<1x128xf32> to vector<128xf32>
    %524 = vector.shape_cast %523 : vector<128xf32> to vector<1x128xf32>
    %525 = vector.broadcast %524 : vector<1x128xf32> to vector<8x128xf32>
    %526 = arith.mulf %521, %525 : vector<8x128xf32>
    %527 = arith.addf %518, %526 : vector<8x128xf32>
    %528 = vector.extract_strided_slice %520 {offsets = [1, 0], sizes = [8, 128], strides = [1, 1]} : vector<10x128xf32> to vector<8x128xf32>
    %529 = vector.extract_strided_slice %69 {offsets = [7, 0], sizes = [1, 128], strides = [1, 1]} : vector<9x128xf32> to vector<1x128xf32>
    %530 = vector.shape_cast %529 : vector<1x128xf32> to vector<128xf32>
    %531 = vector.shape_cast %530 : vector<128xf32> to vector<1x128xf32>
    %532 = vector.broadcast %531 : vector<1x128xf32> to vector<8x128xf32>
    %533 = arith.mulf %528, %532 : vector<8x128xf32>
    %534 = arith.addf %527, %533 : vector<8x128xf32>
    %535 = vector.extract_strided_slice %520 {offsets = [2, 0], sizes = [8, 128], strides = [1, 1]} : vector<10x128xf32> to vector<8x128xf32>
    %536 = vector.extract_strided_slice %69 {offsets = [8, 0], sizes = [1, 128], strides = [1, 1]} : vector<9x128xf32> to vector<1x128xf32>
    %537 = vector.shape_cast %536 : vector<1x128xf32> to vector<128xf32>
    %538 = vector.shape_cast %537 : vector<128xf32> to vector<1x128xf32>
    %539 = vector.broadcast %538 : vector<1x128xf32> to vector<8x128xf32>
    %540 = arith.mulf %535, %539 : vector<8x128xf32>
    %541 = arith.addf %534, %540 : vector<8x128xf32>
    %542 = vector.broadcast %70 : vector<1x128xf32> to vector<8x128xf32>
    %543 = arith.mulf %541, %542 : vector<8x128xf32>
    %544 = vector.broadcast %71 : vector<1x128xf32> to vector<8x128xf32>
    %545 = arith.addf %543, %544 : vector<8x128xf32>
    %cst_137 = arith.constant 0.000000e+00 : f32
    %cst_138 = arith.constant 6.000000e+00 : f32
    %546 = vector.broadcast %cst_137 : f32 to vector<8x128xf32>
    %547 = arith.maximumf %546, %545 : vector<8x128xf32>
    %548 = vector.broadcast %cst_138 : f32 to vector<8x128xf32>
    %549 = arith.minimumf %548, %547 : vector<8x128xf32>
    %550 = arith.truncf %549 : vector<8x128xf32> to vector<8x128xbf16>
    %c40 = arith.constant 40 : index
    %c0_139 = arith.constant 0 : index
    %551 = vector.load %arg17[%c40, %c0_139] : memref<64x128xbf16, #tpu.memory_space<vmem>>, vector<8x128xbf16>
    tpu.vector_store %arg17[%c40, %c0_139], %550 {strides = array<i32>} : memref<64x128xbf16, #tpu.memory_space<vmem>>, vector<8x128xbf16>,
    %cst_140 = arith.constant 0.000000e+00 : f32
    %552 = vector.broadcast %cst_140 : f32 to vector<8x128xf32>
    %c6_141 = arith.constant 6 : index
    %c0_142 = arith.constant 0 : index
    %c0_143 = arith.constant 0 : index
    %553 = vector.load %arg16[%c6_141, %c0_142, %c0_143] : memref<10x10x128xf32, #tpu.memory_space<vmem>>, vector<1x10x128xf32>
    %554 = vector.shape_cast %553 : vector<1x10x128xf32> to vector<10x128xf32>
    %555 = vector.extract_strided_slice %554 {offsets = [0, 0], sizes = [8, 128], strides = [1, 1]} : vector<10x128xf32> to vector<8x128xf32>
    %556 = vector.extract_strided_slice %69 {offsets = [0, 0], sizes = [1, 128], strides = [1, 1]} : vector<9x128xf32> to vector<1x128xf32>
    %557 = vector.shape_cast %556 : vector<1x128xf32> to vector<128xf32>
    %558 = vector.shape_cast %557 : vector<128xf32> to vector<1x128xf32>
    %559 = vector.broadcast %558 : vector<1x128xf32> to vector<8x128xf32>
    %560 = arith.mulf %555, %559 : vector<8x128xf32>
    %561 = arith.addf %552, %560 : vector<8x128xf32>
    %562 = vector.extract_strided_slice %554 {offsets = [1, 0], sizes = [8, 128], strides = [1, 1]} : vector<10x128xf32> to vector<8x128xf32>
    %563 = vector.extract_strided_slice %69 {offsets = [1, 0], sizes = [1, 128], strides = [1, 1]} : vector<9x128xf32> to vector<1x128xf32>
    %564 = vector.shape_cast %563 : vector<1x128xf32> to vector<128xf32>
    %565 = vector.shape_cast %564 : vector<128xf32> to vector<1x128xf32>
    %566 = vector.broadcast %565 : vector<1x128xf32> to vector<8x128xf32>
    %567 = arith.mulf %562, %566 : vector<8x128xf32>
    %568 = arith.addf %561, %567 : vector<8x128xf32>
    %569 = vector.extract_strided_slice %554 {offsets = [2, 0], sizes = [8, 128], strides = [1, 1]} : vector<10x128xf32> to vector<8x128xf32>
    %570 = vector.extract_strided_slice %69 {offsets = [2, 0], sizes = [1, 128], strides = [1, 1]} : vector<9x128xf32> to vector<1x128xf32>
    %571 = vector.shape_cast %570 : vector<1x128xf32> to vector<128xf32>
    %572 = vector.shape_cast %571 : vector<128xf32> to vector<1x128xf32>
    %573 = vector.broadcast %572 : vector<1x128xf32> to vector<8x128xf32>
    %574 = arith.mulf %569, %573 : vector<8x128xf32>
    %575 = arith.addf %568, %574 : vector<8x128xf32>
    %c7_144 = arith.constant 7 : index
    %c0_145 = arith.constant 0 : index
    %c0_146 = arith.constant 0 : index
    %576 = vector.load %arg16[%c7_144, %c0_145, %c0_146] : memref<10x10x128xf32, #tpu.memory_space<vmem>>, vector<1x10x128xf32>
    %577 = vector.shape_cast %576 : vector<1x10x128xf32> to vector<10x128xf32>
    %578 = vector.extract_strided_slice %577 {offsets = [0, 0], sizes = [8, 128], strides = [1, 1]} : vector<10x128xf32> to vector<8x128xf32>
    %579 = vector.extract_strided_slice %69 {offsets = [3, 0], sizes = [1, 128], strides = [1, 1]} : vector<9x128xf32> to vector<1x128xf32>
    %580 = vector.shape_cast %579 : vector<1x128xf32> to vector<128xf32>
    %581 = vector.shape_cast %580 : vector<128xf32> to vector<1x128xf32>
    %582 = vector.broadcast %581 : vector<1x128xf32> to vector<8x128xf32>
    %583 = arith.mulf %578, %582 : vector<8x128xf32>
    %584 = arith.addf %575, %583 : vector<8x128xf32>
    %585 = vector.extract_strided_slice %577 {offsets = [1, 0], sizes = [8, 128], strides = [1, 1]} : vector<10x128xf32> to vector<8x128xf32>
    %586 = vector.extract_strided_slice %69 {offsets = [4, 0], sizes = [1, 128], strides = [1, 1]} : vector<9x128xf32> to vector<1x128xf32>
    %587 = vector.shape_cast %586 : vector<1x128xf32> to vector<128xf32>
    %588 = vector.shape_cast %587 : vector<128xf32> to vector<1x128xf32>
    %589 = vector.broadcast %588 : vector<1x128xf32> to vector<8x128xf32>
    %590 = arith.mulf %585, %589 : vector<8x128xf32>
    %591 = arith.addf %584, %590 : vector<8x128xf32>
    %592 = vector.extract_strided_slice %577 {offsets = [2, 0], sizes = [8, 128], strides = [1, 1]} : vector<10x128xf32> to vector<8x128xf32>
    %593 = vector.extract_strided_slice %69 {offsets = [5, 0], sizes = [1, 128], strides = [1, 1]} : vector<9x128xf32> to vector<1x128xf32>
    %594 = vector.shape_cast %593 : vector<1x128xf32> to vector<128xf32>
    %595 = vector.shape_cast %594 : vector<128xf32> to vector<1x128xf32>
    %596 = vector.broadcast %595 : vector<1x128xf32> to vector<8x128xf32>
    %597 = arith.mulf %592, %596 : vector<8x128xf32>
    %598 = arith.addf %591, %597 : vector<8x128xf32>
    %c8_147 = arith.constant 8 : index
    %c0_148 = arith.constant 0 : index
    %c0_149 = arith.constant 0 : index
    %599 = vector.load %arg16[%c8_147, %c0_148, %c0_149] : memref<10x10x128xf32, #tpu.memory_space<vmem>>, vector<1x10x128xf32>
    %600 = vector.shape_cast %599 : vector<1x10x128xf32> to vector<10x128xf32>
    %601 = vector.extract_strided_slice %600 {offsets = [0, 0], sizes = [8, 128], strides = [1, 1]} : vector<10x128xf32> to vector<8x128xf32>
    %602 = vector.extract_strided_slice %69 {offsets = [6, 0], sizes = [1, 128], strides = [1, 1]} : vector<9x128xf32> to vector<1x128xf32>
    %603 = vector.shape_cast %602 : vector<1x128xf32> to vector<128xf32>
    %604 = vector.shape_cast %603 : vector<128xf32> to vector<1x128xf32>
    %605 = vector.broadcast %604 : vector<1x128xf32> to vector<8x128xf32>
    %606 = arith.mulf %601, %605 : vector<8x128xf32>
    %607 = arith.addf %598, %606 : vector<8x128xf32>
    %608 = vector.extract_strided_slice %600 {offsets = [1, 0], sizes = [8, 128], strides = [1, 1]} : vector<10x128xf32> to vector<8x128xf32>
    %609 = vector.extract_strided_slice %69 {offsets = [7, 0], sizes = [1, 128], strides = [1, 1]} : vector<9x128xf32> to vector<1x128xf32>
    %610 = vector.shape_cast %609 : vector<1x128xf32> to vector<128xf32>
    %611 = vector.shape_cast %610 : vector<128xf32> to vector<1x128xf32>
    %612 = vector.broadcast %611 : vector<1x128xf32> to vector<8x128xf32>
    %613 = arith.mulf %608, %612 : vector<8x128xf32>
    %614 = arith.addf %607, %613 : vector<8x128xf32>
    %615 = vector.extract_strided_slice %600 {offsets = [2, 0], sizes = [8, 128], strides = [1, 1]} : vector<10x128xf32> to vector<8x128xf32>
    %616 = vector.extract_strided_slice %69 {offsets = [8, 0], sizes = [1, 128], strides = [1, 1]} : vector<9x128xf32> to vector<1x128xf32>
    %617 = vector.shape_cast %616 : vector<1x128xf32> to vector<128xf32>
    %618 = vector.shape_cast %617 : vector<128xf32> to vector<1x128xf32>
    %619 = vector.broadcast %618 : vector<1x128xf32> to vector<8x128xf32>
    %620 = arith.mulf %615, %619 : vector<8x128xf32>
    %621 = arith.addf %614, %620 : vector<8x128xf32>
    %622 = vector.broadcast %70 : vector<1x128xf32> to vector<8x128xf32>
    %623 = arith.mulf %621, %622 : vector<8x128xf32>
    %624 = vector.broadcast %71 : vector<1x128xf32> to vector<8x128xf32>
    %625 = arith.addf %623, %624 : vector<8x128xf32>
    %cst_150 = arith.constant 0.000000e+00 : f32
    %cst_151 = arith.constant 6.000000e+00 : f32
    %626 = vector.broadcast %cst_150 : f32 to vector<8x128xf32>
    %627 = arith.maximumf %626, %625 : vector<8x128xf32>
    %628 = vector.broadcast %cst_151 : f32 to vector<8x128xf32>
    %629 = arith.minimumf %628, %627 : vector<8x128xf32>
    %630 = arith.truncf %629 : vector<8x128xf32> to vector<8x128xbf16>
    %c48 = arith.constant 48 : index
    %c0_152 = arith.constant 0 : index
    %631 = vector.load %arg17[%c48, %c0_152] : memref<64x128xbf16, #tpu.memory_space<vmem>>, vector<8x128xbf16>
    tpu.vector_store %arg17[%c48, %c0_152], %630 {strides = array<i32>} : memref<64x128xbf16, #tpu.memory_space<vmem>>, vector<8x128xbf16>,
    %cst_153 = arith.constant 0.000000e+00 : f32
    %632 = vector.broadcast %cst_153 : f32 to vector<8x128xf32>
    %c7_154 = arith.constant 7 : index
    %c0_155 = arith.constant 0 : index
    %c0_156 = arith.constant 0 : index
    %633 = vector.load %arg16[%c7_154, %c0_155, %c0_156] : memref<10x10x128xf32, #tpu.memory_space<vmem>>, vector<1x10x128xf32>
    %634 = vector.shape_cast %633 : vector<1x10x128xf32> to vector<10x128xf32>
    %635 = vector.extract_strided_slice %634 {offsets = [0, 0], sizes = [8, 128], strides = [1, 1]} : vector<10x128xf32> to vector<8x128xf32>
    %636 = vector.extract_strided_slice %69 {offsets = [0, 0], sizes = [1, 128], strides = [1, 1]} : vector<9x128xf32> to vector<1x128xf32>
    %637 = vector.shape_cast %636 : vector<1x128xf32> to vector<128xf32>
    %638 = vector.shape_cast %637 : vector<128xf32> to vector<1x128xf32>
    %639 = vector.broadcast %638 : vector<1x128xf32> to vector<8x128xf32>
    %640 = arith.mulf %635, %639 : vector<8x128xf32>
    %641 = arith.addf %632, %640 : vector<8x128xf32>
    %642 = vector.extract_strided_slice %634 {offsets = [1, 0], sizes = [8, 128], strides = [1, 1]} : vector<10x128xf32> to vector<8x128xf32>
    %643 = vector.extract_strided_slice %69 {offsets = [1, 0], sizes = [1, 128], strides = [1, 1]} : vector<9x128xf32> to vector<1x128xf32>
    %644 = vector.shape_cast %643 : vector<1x128xf32> to vector<128xf32>
    %645 = vector.shape_cast %644 : vector<128xf32> to vector<1x128xf32>
    %646 = vector.broadcast %645 : vector<1x128xf32> to vector<8x128xf32>
    %647 = arith.mulf %642, %646 : vector<8x128xf32>
    %648 = arith.addf %641, %647 : vector<8x128xf32>
    %649 = vector.extract_strided_slice %634 {offsets = [2, 0], sizes = [8, 128], strides = [1, 1]} : vector<10x128xf32> to vector<8x128xf32>
    %650 = vector.extract_strided_slice %69 {offsets = [2, 0], sizes = [1, 128], strides = [1, 1]} : vector<9x128xf32> to vector<1x128xf32>
    %651 = vector.shape_cast %650 : vector<1x128xf32> to vector<128xf32>
    %652 = vector.shape_cast %651 : vector<128xf32> to vector<1x128xf32>
    %653 = vector.broadcast %652 : vector<1x128xf32> to vector<8x128xf32>
    %654 = arith.mulf %649, %653 : vector<8x128xf32>
    %655 = arith.addf %648, %654 : vector<8x128xf32>
    %c8_157 = arith.constant 8 : index
    %c0_158 = arith.constant 0 : index
    %c0_159 = arith.constant 0 : index
    %656 = vector.load %arg16[%c8_157, %c0_158, %c0_159] : memref<10x10x128xf32, #tpu.memory_space<vmem>>, vector<1x10x128xf32>
    %657 = vector.shape_cast %656 : vector<1x10x128xf32> to vector<10x128xf32>
    %658 = vector.extract_strided_slice %657 {offsets = [0, 0], sizes = [8, 128], strides = [1, 1]} : vector<10x128xf32> to vector<8x128xf32>
    %659 = vector.extract_strided_slice %69 {offsets = [3, 0], sizes = [1, 128], strides = [1, 1]} : vector<9x128xf32> to vector<1x128xf32>
    %660 = vector.shape_cast %659 : vector<1x128xf32> to vector<128xf32>
    %661 = vector.shape_cast %660 : vector<128xf32> to vector<1x128xf32>
    %662 = vector.broadcast %661 : vector<1x128xf32> to vector<8x128xf32>
    %663 = arith.mulf %658, %662 : vector<8x128xf32>
    %664 = arith.addf %655, %663 : vector<8x128xf32>
    %665 = vector.extract_strided_slice %657 {offsets = [1, 0], sizes = [8, 128], strides = [1, 1]} : vector<10x128xf32> to vector<8x128xf32>
    %666 = vector.extract_strided_slice %69 {offsets = [4, 0], sizes = [1, 128], strides = [1, 1]} : vector<9x128xf32> to vector<1x128xf32>
    %667 = vector.shape_cast %666 : vector<1x128xf32> to vector<128xf32>
    %668 = vector.shape_cast %667 : vector<128xf32> to vector<1x128xf32>
    %669 = vector.broadcast %668 : vector<1x128xf32> to vector<8x128xf32>
    %670 = arith.mulf %665, %669 : vector<8x128xf32>
    %671 = arith.addf %664, %670 : vector<8x128xf32>
    %672 = vector.extract_strided_slice %657 {offsets = [2, 0], sizes = [8, 128], strides = [1, 1]} : vector<10x128xf32> to vector<8x128xf32>
    %673 = vector.extract_strided_slice %69 {offsets = [5, 0], sizes = [1, 128], strides = [1, 1]} : vector<9x128xf32> to vector<1x128xf32>
    %674 = vector.shape_cast %673 : vector<1x128xf32> to vector<128xf32>
    %675 = vector.shape_cast %674 : vector<128xf32> to vector<1x128xf32>
    %676 = vector.broadcast %675 : vector<1x128xf32> to vector<8x128xf32>
    %677 = arith.mulf %672, %676 : vector<8x128xf32>
    %678 = arith.addf %671, %677 : vector<8x128xf32>
    %c9_160 = arith.constant 9 : index
    %c0_161 = arith.constant 0 : index
    %c0_162 = arith.constant 0 : index
    %679 = vector.load %arg16[%c9_160, %c0_161, %c0_162] : memref<10x10x128xf32, #tpu.memory_space<vmem>>, vector<1x10x128xf32>
    %680 = vector.shape_cast %679 : vector<1x10x128xf32> to vector<10x128xf32>
    %681 = vector.extract_strided_slice %680 {offsets = [0, 0], sizes = [8, 128], strides = [1, 1]} : vector<10x128xf32> to vector<8x128xf32>
    %682 = vector.extract_strided_slice %69 {offsets = [6, 0], sizes = [1, 128], strides = [1, 1]} : vector<9x128xf32> to vector<1x128xf32>
    %683 = vector.shape_cast %682 : vector<1x128xf32> to vector<128xf32>
    %684 = vector.shape_cast %683 : vector<128xf32> to vector<1x128xf32>
    %685 = vector.broadcast %684 : vector<1x128xf32> to vector<8x128xf32>
    %686 = arith.mulf %681, %685 : vector<8x128xf32>
    %687 = arith.addf %678, %686 : vector<8x128xf32>
    %688 = vector.extract_strided_slice %680 {offsets = [1, 0], sizes = [8, 128], strides = [1, 1]} : vector<10x128xf32> to vector<8x128xf32>
    %689 = vector.extract_strided_slice %69 {offsets = [7, 0], sizes = [1, 128], strides = [1, 1]} : vector<9x128xf32> to vector<1x128xf32>
    %690 = vector.shape_cast %689 : vector<1x128xf32> to vector<128xf32>
    %691 = vector.shape_cast %690 : vector<128xf32> to vector<1x128xf32>
    %692 = vector.broadcast %691 : vector<1x128xf32> to vector<8x128xf32>
    %693 = arith.mulf %688, %692 : vector<8x128xf32>
    %694 = arith.addf %687, %693 : vector<8x128xf32>
    %695 = vector.extract_strided_slice %680 {offsets = [2, 0], sizes = [8, 128], strides = [1, 1]} : vector<10x128xf32> to vector<8x128xf32>
    %696 = vector.extract_strided_slice %69 {offsets = [8, 0], sizes = [1, 128], strides = [1, 1]} : vector<9x128xf32> to vector<1x128xf32>
    %697 = vector.shape_cast %696 : vector<1x128xf32> to vector<128xf32>
    %698 = vector.shape_cast %697 : vector<128xf32> to vector<1x128xf32>
    %699 = vector.broadcast %698 : vector<1x128xf32> to vector<8x128xf32>
    %700 = arith.mulf %695, %699 : vector<8x128xf32>
    %701 = arith.addf %694, %700 : vector<8x128xf32>
    %702 = vector.broadcast %70 : vector<1x128xf32> to vector<8x128xf32>
    %703 = arith.mulf %701, %702 : vector<8x128xf32>
    %704 = vector.broadcast %71 : vector<1x128xf32> to vector<8x128xf32>
    %705 = arith.addf %703, %704 : vector<8x128xf32>
    %cst_163 = arith.constant 0.000000e+00 : f32
    %cst_164 = arith.constant 6.000000e+00 : f32
    %706 = vector.broadcast %cst_163 : f32 to vector<8x128xf32>
    %707 = arith.maximumf %706, %705 : vector<8x128xf32>
    %708 = vector.broadcast %cst_164 : f32 to vector<8x128xf32>
    %709 = arith.minimumf %708, %707 : vector<8x128xf32>
    %710 = arith.truncf %709 : vector<8x128xf32> to vector<8x128xbf16>
    %c56 = arith.constant 56 : index
    %c0_165 = arith.constant 0 : index
    %711 = vector.load %arg17[%c56, %c0_165] : memref<64x128xbf16, #tpu.memory_space<vmem>>, vector<8x128xbf16>
    tpu.vector_store %arg17[%c56, %c0_165], %710 {strides = array<i32>} : memref<64x128xbf16, #tpu.memory_space<vmem>>, vector<8x128xbf16>,
    %c0_166 = arith.constant 0 : index
    %c0_167 = arith.constant 0 : index
    %712 = vector.load %arg17[%c0_166, %c0_167] : memref<64x128xbf16, #tpu.memory_space<vmem>>, vector<64x128xbf16>
    %c0_168 = arith.constant 0 : index
    %c0_169 = arith.constant 0 : index
    %713 = vector.load %arg11[%c0_168, %c0_169] : memref<128x128xbf16, #tpu.memory_space<vmem>>, vector<128x128xbf16>
    %cst_170 = arith.constant dense<0.000000e+00> : vector<64x128xf32>
    %714 = tpu.matmul %712, %713, %cst_170 {dimension_numbers = #tpu.dot_dimension_numbers<[1], [0], [0], [1], [0, 0, 1, 1], [], []>} : vector<64x128xbf16>, vector<128x128xbf16>, vector<64x128xf32> -> vector<64x128xf32>
    %c0_171 = arith.constant 0 : index
    %c0_172 = arith.constant 0 : index
    %715 = vector.load %arg12[%c0_171, %c0_172] : memref<1x128xf32, #tpu.memory_space<vmem>>, vector<1x128xf32>
    %716 = vector.broadcast %715 : vector<1x128xf32> to vector<64x128xf32>
    %717 = arith.mulf %714, %716 : vector<64x128xf32>
    %c0_173 = arith.constant 0 : index
    %c0_174 = arith.constant 0 : index
    %718 = vector.load %arg13[%c0_173, %c0_174] : memref<1x128xf32, #tpu.memory_space<vmem>>, vector<1x128xf32>
    %719 = vector.broadcast %718 : vector<1x128xf32> to vector<64x128xf32>
    %720 = arith.addf %717, %719 : vector<64x128xf32>
    %c0_175 = arith.constant 0 : index
    %c0_176 = arith.constant 0 : index
    %721 = vector.load %arg15[%c0_175, %c0_176] : memref<64x128xbf16, #tpu.memory_space<vmem>>, vector<64x128xbf16>
    %722 = arith.extf %721 : vector<64x128xbf16> to vector<64x128xf32>
    %723 = arith.addf %720, %722 : vector<64x128xf32>
    %724 = arith.truncf %723 : vector<64x128xf32> to vector<64x128xbf16>
    %c0_177 = arith.constant 0 : index
    %c0_178 = arith.constant 0 : index
    %c0_179 = arith.constant 0 : index
    %725 = vector.load %arg14[%c0_177, %c0_178, %c0_179] : memref<1x64x128xbf16, #tpu.memory_space<vmem>>, vector<1x64x128xbf16>
    %726 = vector.shape_cast %725 : vector<1x64x128xbf16> to vector<64x128xbf16>
    %727 = vector.shape_cast %724 : vector<64x128xbf16> to vector<1x64x128xbf16>
    tpu.vector_store %arg14[%c0_177, %c0_178, %c0_179], %727 {strides = array<i32>} : memref<1x64x128xbf16, #tpu.memory_space<vmem>>, vector<1x64x128xbf16>,
    return
  }
  func.func @transform_0(%arg0: i32) -> (i32, i32, i32) {
    %c0_i32 = arith.constant 0 : i32
    %c0_i32_0 = arith.constant 0 : i32
    %c0_i32_1 = arith.constant 0 : i32
    return %arg0, %c0_i32, %c0_i32_0 : i32, i32, i32
  }
  func.func @transform_1(%arg0: i32) -> (i32, i32) {
    %c0_i32 = arith.constant 0 : i32
    %c0_i32_0 = arith.constant 0 : i32
    %c0_i32_1 = arith.constant 0 : i32
    return %c0_i32, %c0_i32_0 : i32, i32
  }
  func.func @transform_2(%arg0: i32) -> (i32, i32) {
    %c0_i32 = arith.constant 0 : i32
    %c0_i32_0 = arith.constant 0 : i32
    %c0_i32_1 = arith.constant 0 : i32
    return %c0_i32, %c0_i32_0 : i32, i32
  }
  func.func @transform_3(%arg0: i32) -> (i32, i32) {
    %c0_i32 = arith.constant 0 : i32
    %c0_i32_0 = arith.constant 0 : i32
    %c0_i32_1 = arith.constant 0 : i32
    return %c0_i32, %c0_i32_0 : i32, i32
  }
  func.func @transform_4(%arg0: i32) -> (i32, i32) {
    %c0_i32 = arith.constant 0 : i32
    %c0_i32_0 = arith.constant 0 : i32
    %c0_i32_1 = arith.constant 0 : i32
    return %c0_i32, %c0_i32_0 : i32, i32
  }
  func.func @transform_5(%arg0: i32) -> (i32, i32) {
    %c0_i32 = arith.constant 0 : i32
    %c0_i32_0 = arith.constant 0 : i32
    %c0_i32_1 = arith.constant 0 : i32
    return %c0_i32, %c0_i32_0 : i32, i32
  }
  func.func @transform_6(%arg0: i32) -> (i32, i32) {
    %c0_i32 = arith.constant 0 : i32
    %c0_i32_0 = arith.constant 0 : i32
    %c0_i32_1 = arith.constant 0 : i32
    return %c0_i32, %c0_i32_0 : i32, i32
  }
  func.func @transform_7(%arg0: i32) -> (i32, i32) {
    %c0_i32 = arith.constant 0 : i32
    %c0_i32_0 = arith.constant 0 : i32
    %c0_i32_1 = arith.constant 0 : i32
    return %c0_i32, %c0_i32_0 : i32, i32
  }
  func.func @transform_8(%arg0: i32) -> (i32, i32) {
    %c0_i32 = arith.constant 0 : i32
    %c0_i32_0 = arith.constant 0 : i32
    %c0_i32_1 = arith.constant 0 : i32
    return %c0_i32, %c0_i32_0 : i32, i32
  }
  func.func @transform_9(%arg0: i32) -> (i32, i32) {
    %c0_i32 = arith.constant 0 : i32
    %c0_i32_0 = arith.constant 0 : i32
    %c0_i32_1 = arith.constant 0 : i32
    return %c0_i32, %c0_i32_0 : i32, i32
  }
  func.func @transform_10(%arg0: i32) -> (i32, i32) {
    %c0_i32 = arith.constant 0 : i32
    %c0_i32_0 = arith.constant 0 : i32
    %c0_i32_1 = arith.constant 0 : i32
    return %c0_i32, %c0_i32_0 : i32, i32
  }
  func.func @transform_11(%arg0: i32) -> (i32, i32) {
    %c0_i32 = arith.constant 0 : i32
    %c0_i32_0 = arith.constant 0 : i32
    %c0_i32_1 = arith.constant 0 : i32
    return %c0_i32, %c0_i32_0 : i32, i32
  }
  func.func @transform_12(%arg0: i32) -> (i32, i32) {
    %c0_i32 = arith.constant 0 : i32
    %c0_i32_0 = arith.constant 0 : i32
    %c0_i32_1 = arith.constant 0 : i32
    return %c0_i32, %c0_i32_0 : i32, i32
  }
  func.func @transform_13(%arg0: i32) -> (i32, i32, i32) {
    %c0_i32 = arith.constant 0 : i32
    %c0_i32_0 = arith.constant 0 : i32
    %c0_i32_1 = arith.constant 0 : i32
    return %arg0, %c0_i32, %c0_i32_0 : i32, i32, i32
  }
}

module attributes {stable_mosaic.version = 11 : i64} {
  func.func @_stage2_kernel(%arg0: i32, %arg1: memref<1x32x128xbf16, #tpu.memory_space<vmem>>, %arg2: memref<1x32x128xbf16, #tpu.memory_space<vmem>>, %arg3: memref<128x128xbf16, #tpu.memory_space<vmem>>, %arg4: memref<1x128xf32, #tpu.memory_space<vmem>>, %arg5: memref<1x128xf32, #tpu.memory_space<vmem>>, %arg6: memref<9x128xf32, #tpu.memory_space<vmem>>, %arg7: memref<1x128xf32, #tpu.memory_space<vmem>>, %arg8: memref<1x128xf32, #tpu.memory_space<vmem>>, %arg9: memref<128x128xbf16, #tpu.memory_space<vmem>>, %arg10: memref<1x128xf32, #tpu.memory_space<vmem>>, %arg11: memref<1x128xf32, #tpu.memory_space<vmem>>, %arg12: memref<128x128xbf16, #tpu.memory_space<vmem>>, %arg13: memref<1x128xf32, #tpu.memory_space<vmem>>, %arg14: memref<1x128xf32, #tpu.memory_space<vmem>>, %arg15: memref<9x128xf32, #tpu.memory_space<vmem>>, %arg16: memref<1x128xf32, #tpu.memory_space<vmem>>, %arg17: memref<1x128xf32, #tpu.memory_space<vmem>>, %arg18: memref<128x128xbf16, #tpu.memory_space<vmem>>, %arg19: memref<1x128xf32, #tpu.memory_space<vmem>>, %arg20: memref<1x128xf32, #tpu.memory_space<vmem>>, %arg21: memref<128x128xbf16, #tpu.memory_space<vmem>>, %arg22: memref<1x128xf32, #tpu.memory_space<vmem>>, %arg23: memref<1x128xf32, #tpu.memory_space<vmem>>, %arg24: memref<1x1x128xbf16, #tpu.memory_space<vmem>>, %arg25: memref<10x5x128xf32, #tpu.memory_space<vmem>>, %arg26: memref<10x4x128xf32, #tpu.memory_space<vmem>>, %arg27: memref<16x128xbf16, #tpu.memory_space<vmem>>, %arg28: memref<16x128xbf16, #tpu.memory_space<vmem>>, %arg29: memref<6x6x128xf32, #tpu.memory_space<vmem>>, %arg30: memref<16x128xbf16, #tpu.memory_space<vmem>>) attributes {dimension_semantics = [#tpu.dimension_semantics<parallel>], iteration_bounds = array<i64: 2>, scalar_prefetch = 0 : i64, scratch_operands = 6 : i64, tpu.core_type = #tpu.core_type<tc>, window_params = [{transform_indices = @transform_0, window_bounds = array<i64: 1, 32, 128>}, {transform_indices = @transform_1, window_bounds = array<i64: 1, 32, 128>}, {pipeline_mode = #tpu.pipeline_mode<synchronous>, transform_indices = @transform_2, window_bounds = array<i64: 128, 128>}, {pipeline_mode = #tpu.pipeline_mode<synchronous>, transform_indices = @transform_3, window_bounds = array<i64: 1, 128>}, {pipeline_mode = #tpu.pipeline_mode<synchronous>, transform_indices = @transform_4, window_bounds = array<i64: 1, 128>}, {pipeline_mode = #tpu.pipeline_mode<synchronous>, transform_indices = @transform_5, window_bounds = array<i64: 9, 128>}, {pipeline_mode = #tpu.pipeline_mode<synchronous>, transform_indices = @transform_6, window_bounds = array<i64: 1, 128>}, {pipeline_mode = #tpu.pipeline_mode<synchronous>, transform_indices = @transform_7, window_bounds = array<i64: 1, 128>}, {pipeline_mode = #tpu.pipeline_mode<synchronous>, transform_indices = @transform_8, window_bounds = array<i64: 128, 128>}, {pipeline_mode = #tpu.pipeline_mode<synchronous>, transform_indices = @transform_9, window_bounds = array<i64: 1, 128>}, {pipeline_mode = #tpu.pipeline_mode<synchronous>, transform_indices = @transform_10, window_bounds = array<i64: 1, 128>}, {pipeline_mode = #tpu.pipeline_mode<synchronous>, transform_indices = @transform_11, window_bounds = array<i64: 128, 128>}, {pipeline_mode = #tpu.pipeline_mode<synchronous>, transform_indices = @transform_12, window_bounds = array<i64: 1, 128>}, {pipeline_mode = #tpu.pipeline_mode<synchronous>, transform_indices = @transform_13, window_bounds = array<i64: 1, 128>}, {pipeline_mode = #tpu.pipeline_mode<synchronous>, transform_indices = @transform_14, window_bounds = array<i64: 9, 128>}, {pipeline_mode = #tpu.pipeline_mode<synchronous>, transform_indices = @transform_15, window_bounds = array<i64: 1, 128>}, {pipeline_mode = #tpu.pipeline_mode<synchronous>, transform_indices = @transform_16, window_bounds = array<i64: 1, 128>}, {pipeline_mode = #tpu.pipeline_mode<synchronous>, transform_indices = @transform_17, window_bounds = array<i64: 128, 128>}, {pipeline_mode = #tpu.pipeline_mode<synchronous>, transform_indices = @transform_18, window_bounds = array<i64: 1, 128>}, {pipeline_mode = #tpu.pipeline_mode<synchronous>, transform_indices = @transform_19, window_bounds = array<i64: 1, 128>}, {pipeline_mode = #tpu.pipeline_mode<synchronous>, transform_indices = @transform_20, window_bounds = array<i64: 128, 128>}, {pipeline_mode = #tpu.pipeline_mode<synchronous>, transform_indices = @transform_21, window_bounds = array<i64: 1, 128>}, {pipeline_mode = #tpu.pipeline_mode<synchronous>, transform_indices = @transform_22, window_bounds = array<i64: 1, 128>}, {transform_indices = @transform_23, window_bounds = array<i64: 1, 1, 128>}]} {
    %cst = arith.constant 0.000000e+00 : f32
    %0 = vector.broadcast %cst : f32 to vector<1x5x128xf32>
    %c0 = arith.constant 0 : index
    %c0_0 = arith.constant 0 : index
    %c0_1 = arith.constant 0 : index
    %1 = vector.load %arg25[%c0, %c0_0, %c0_1] : memref<10x5x128xf32, #tpu.memory_space<vmem>>, vector<1x5x128xf32>
    tpu.vector_store %arg25[%c0, %c0_0, %c0_1], %0 {strides = array<i32>} : memref<10x5x128xf32, #tpu.memory_space<vmem>>, vector<1x5x128xf32>,
    %cst_2 = arith.constant 0.000000e+00 : f32
    %2 = vector.broadcast %cst_2 : f32 to vector<1x5x128xf32>
    %c9 = arith.constant 9 : index
    %c0_3 = arith.constant 0 : index
    %c0_4 = arith.constant 0 : index
    %3 = vector.load %arg25[%c9, %c0_3, %c0_4] : memref<10x5x128xf32, #tpu.memory_space<vmem>>, vector<1x5x128xf32>
    tpu.vector_store %arg25[%c9, %c0_3, %c0_4], %2 {strides = array<i32>} : memref<10x5x128xf32, #tpu.memory_space<vmem>>, vector<1x5x128xf32>,
    %cst_5 = arith.constant 0.000000e+00 : f32
    %4 = vector.broadcast %cst_5 : f32 to vector<10x1x128xf32>
    %c0_6 = arith.constant 0 : index
    %c0_7 = arith.constant 0 : index
    %c0_8 = arith.constant 0 : index
    %5 = vector.load %arg25[%c0_6, %c0_7, %c0_8] : memref<10x5x128xf32, #tpu.memory_space<vmem>>, vector<10x1x128xf32>
    tpu.vector_store %arg25[%c0_6, %c0_7, %c0_8], %4 {strides = array<i32>} : memref<10x5x128xf32, #tpu.memory_space<vmem>>, vector<10x1x128xf32>,
    %cst_9 = arith.constant 0.000000e+00 : f32
    %6 = vector.broadcast %cst_9 : f32 to vector<1x4x128xf32>
    %c0_10 = arith.constant 0 : index
    %c0_11 = arith.constant 0 : index
    %c0_12 = arith.constant 0 : index
    %7 = vector.load %arg26[%c0_10, %c0_11, %c0_12] : memref<10x4x128xf32, #tpu.memory_space<vmem>>, vector<1x4x128xf32>
    tpu.vector_store %arg26[%c0_10, %c0_11, %c0_12], %6 {strides = array<i32>} : memref<10x4x128xf32, #tpu.memory_space<vmem>>, vector<1x4x128xf32>,
    %cst_13 = arith.constant 0.000000e+00 : f32
    %8 = vector.broadcast %cst_13 : f32 to vector<1x4x128xf32>
    %c9_14 = arith.constant 9 : index
    %c0_15 = arith.constant 0 : index
    %c0_16 = arith.constant 0 : index
    %9 = vector.load %arg26[%c9_14, %c0_15, %c0_16] : memref<10x4x128xf32, #tpu.memory_space<vmem>>, vector<1x4x128xf32>
    tpu.vector_store %arg26[%c9_14, %c0_15, %c0_16], %8 {strides = array<i32>} : memref<10x4x128xf32, #tpu.memory_space<vmem>>, vector<1x4x128xf32>,
    %c0_17 = arith.constant 0 : index
    %c0_18 = arith.constant 0 : index
    %10 = vector.load %arg3[%c0_17, %c0_18] : memref<128x128xbf16, #tpu.memory_space<vmem>>, vector<128x128xbf16>
    %c0_19 = arith.constant 0 : index
    %c0_20 = arith.constant 0 : index
    %11 = vector.load %arg4[%c0_19, %c0_20] : memref<1x128xf32, #tpu.memory_space<vmem>>, vector<1x128xf32>
    %c0_21 = arith.constant 0 : index
    %c0_22 = arith.constant 0 : index
    %12 = vector.load %arg5[%c0_21, %c0_22] : memref<1x128xf32, #tpu.memory_space<vmem>>, vector<1x128xf32>
    %c0_23 = arith.constant 0 : index
    %c0_24 = arith.constant 0 : index
    %c0_25 = arith.constant 0 : index
    %13 = vector.load %arg1[%c0_23, %c0_24, %c0_25] : memref<1x32x128xbf16, #tpu.memory_space<vmem>>, vector<1x32x128xbf16>
    %14 = vector.shape_cast %13 : vector<1x32x128xbf16> to vector<32x128xbf16>
    %cst_26 = arith.constant dense<0.000000e+00> : vector<32x128xf32>
    %15 = tpu.matmul %14, %10, %cst_26 {dimension_numbers = #tpu.dot_dimension_numbers<[1], [0], [0], [1], [0, 0, 1, 1], [], []>} : vector<32x128xbf16>, vector<128x128xbf16>, vector<32x128xf32> -> vector<32x128xf32>
    %16 = vector.broadcast %11 : vector<1x128xf32> to vector<32x128xf32>
    %17 = arith.mulf %15, %16 : vector<32x128xf32>
    %18 = vector.broadcast %12 : vector<1x128xf32> to vector<32x128xf32>
    %19 = arith.addf %17, %18 : vector<32x128xf32>
    %cst_27 = arith.constant 0.000000e+00 : f32
    %cst_28 = arith.constant 6.000000e+00 : f32
    %20 = vector.broadcast %cst_27 : f32 to vector<32x128xf32>
    %21 = arith.maximumf %20, %19 : vector<32x128xf32>
    %22 = vector.broadcast %cst_28 : f32 to vector<32x128xf32>
    %23 = arith.minimumf %22, %21 : vector<32x128xf32>
    %c0_29 = arith.constant 0 : index
    %c0_30 = arith.constant 0 : index
    %c0_31 = arith.constant 0 : index
    %24 = vector.load %arg2[%c0_29, %c0_30, %c0_31] : memref<1x32x128xbf16, #tpu.memory_space<vmem>>, vector<1x32x128xbf16>
    %25 = vector.shape_cast %24 : vector<1x32x128xbf16> to vector<32x128xbf16>
    %cst_32 = arith.constant dense<0.000000e+00> : vector<32x128xf32>
    %26 = tpu.matmul %25, %10, %cst_32 {dimension_numbers = #tpu.dot_dimension_numbers<[1], [0], [0], [1], [0, 0, 1, 1], [], []>} : vector<32x128xbf16>, vector<128x128xbf16>, vector<32x128xf32> -> vector<32x128xf32>
    %27 = vector.broadcast %11 : vector<1x128xf32> to vector<32x128xf32>
    %28 = arith.mulf %26, %27 : vector<32x128xf32>
    %29 = vector.broadcast %12 : vector<1x128xf32> to vector<32x128xf32>
    %30 = arith.addf %28, %29 : vector<32x128xf32>
    %cst_33 = arith.constant 0.000000e+00 : f32
    %cst_34 = arith.constant 6.000000e+00 : f32
    %31 = vector.broadcast %cst_33 : f32 to vector<32x128xf32>
    %32 = arith.maximumf %31, %30 : vector<32x128xf32>
    %33 = vector.broadcast %cst_34 : f32 to vector<32x128xf32>
    %34 = arith.minimumf %33, %32 : vector<32x128xf32>
    %35 = vector.extract_strided_slice %23 {offsets = [0, 0], sizes = [4, 128], strides = [1, 1]} : vector<32x128xf32> to vector<4x128xf32>
    %c1 = arith.constant 1 : index
    %c0_35 = arith.constant 0 : index
    %c0_36 = arith.constant 0 : index
    %36 = vector.load %arg26[%c1, %c0_35, %c0_36] : memref<10x4x128xf32, #tpu.memory_space<vmem>>, vector<1x4x128xf32>
    %37 = vector.shape_cast %36 : vector<1x4x128xf32> to vector<4x128xf32>
    %38 = vector.shape_cast %35 : vector<4x128xf32> to vector<1x4x128xf32>
    tpu.vector_store %arg26[%c1, %c0_35, %c0_36], %38 {strides = array<i32>} : memref<10x4x128xf32, #tpu.memory_space<vmem>>, vector<1x4x128xf32>,
    %39 = vector.extract_strided_slice %34 {offsets = [0, 0], sizes = [4, 128], strides = [1, 1]} : vector<32x128xf32> to vector<4x128xf32>
    %c1_37 = arith.constant 1 : index
    %c1_38 = arith.constant 1 : index
    %c0_39 = arith.constant 0 : index
    %40 = vector.load %arg25[%c1_37, %c1_38, %c0_39] : memref<10x5x128xf32, #tpu.memory_space<vmem>>, vector<1x4x128xf32>
    %41 = vector.shape_cast %40 : vector<1x4x128xf32> to vector<4x128xf32>
    %42 = vector.shape_cast %39 : vector<4x128xf32> to vector<1x4x128xf32>
    tpu.vector_store %arg25[%c1_37, %c1_38, %c0_39], %42 {strides = array<i32>} : memref<10x5x128xf32, #tpu.memory_space<vmem>>, vector<1x4x128xf32>,
    %43 = vector.extract_strided_slice %23 {offsets = [4, 0], sizes = [4, 128], strides = [1, 1]} : vector<32x128xf32> to vector<4x128xf32>
    %c2 = arith.constant 2 : index
    %c0_40 = arith.constant 0 : index
    %c0_41 = arith.constant 0 : index
    %44 = vector.load %arg26[%c2, %c0_40, %c0_41] : memref<10x4x128xf32, #tpu.memory_space<vmem>>, vector<1x4x128xf32>
    %45 = vector.shape_cast %44 : vector<1x4x128xf32> to vector<4x128xf32>
    %46 = vector.shape_cast %43 : vector<4x128xf32> to vector<1x4x128xf32>
    tpu.vector_store %arg26[%c2, %c0_40, %c0_41], %46 {strides = array<i32>} : memref<10x4x128xf32, #tpu.memory_space<vmem>>, vector<1x4x128xf32>,
    %47 = vector.extract_strided_slice %34 {offsets = [4, 0], sizes = [4, 128], strides = [1, 1]} : vector<32x128xf32> to vector<4x128xf32>
    %c2_42 = arith.constant 2 : index
    %c1_43 = arith.constant 1 : index
    %c0_44 = arith.constant 0 : index
    %48 = vector.load %arg25[%c2_42, %c1_43, %c0_44] : memref<10x5x128xf32, #tpu.memory_space<vmem>>, vector<1x4x128xf32>
    %49 = vector.shape_cast %48 : vector<1x4x128xf32> to vector<4x128xf32>
    %50 = vector.shape_cast %47 : vector<4x128xf32> to vector<1x4x128xf32>
    tpu.vector_store %arg25[%c2_42, %c1_43, %c0_44], %50 {strides = array<i32>} : memref<10x5x128xf32, #tpu.memory_space<vmem>>, vector<1x4x128xf32>,
    %51 = vector.extract_strided_slice %23 {offsets = [8, 0], sizes = [4, 128], strides = [1, 1]} : vector<32x128xf32> to vector<4x128xf32>
    %c3 = arith.constant 3 : index
    %c0_45 = arith.constant 0 : index
    %c0_46 = arith.constant 0 : index
    %52 = vector.load %arg26[%c3, %c0_45, %c0_46] : memref<10x4x128xf32, #tpu.memory_space<vmem>>, vector<1x4x128xf32>
    %53 = vector.shape_cast %52 : vector<1x4x128xf32> to vector<4x128xf32>
    %54 = vector.shape_cast %51 : vector<4x128xf32> to vector<1x4x128xf32>
    tpu.vector_store %arg26[%c3, %c0_45, %c0_46], %54 {strides = array<i32>} : memref<10x4x128xf32, #tpu.memory_space<vmem>>, vector<1x4x128xf32>,
    %55 = vector.extract_strided_slice %34 {offsets = [8, 0], sizes = [4, 128], strides = [1, 1]} : vector<32x128xf32> to vector<4x128xf32>
    %c3_47 = arith.constant 3 : index
    %c1_48 = arith.constant 1 : index
    %c0_49 = arith.constant 0 : index
    %56 = vector.load %arg25[%c3_47, %c1_48, %c0_49] : memref<10x5x128xf32, #tpu.memory_space<vmem>>, vector<1x4x128xf32>
    %57 = vector.shape_cast %56 : vector<1x4x128xf32> to vector<4x128xf32>
    %58 = vector.shape_cast %55 : vector<4x128xf32> to vector<1x4x128xf32>
    tpu.vector_store %arg25[%c3_47, %c1_48, %c0_49], %58 {strides = array<i32>} : memref<10x5x128xf32, #tpu.memory_space<vmem>>, vector<1x4x128xf32>,
    %59 = vector.extract_strided_slice %23 {offsets = [12, 0], sizes = [4, 128], strides = [1, 1]} : vector<32x128xf32> to vector<4x128xf32>
    %c4 = arith.constant 4 : index
    %c0_50 = arith.constant 0 : index
    %c0_51 = arith.constant 0 : index
    %60 = vector.load %arg26[%c4, %c0_50, %c0_51] : memref<10x4x128xf32, #tpu.memory_space<vmem>>, vector<1x4x128xf32>
    %61 = vector.shape_cast %60 : vector<1x4x128xf32> to vector<4x128xf32>
    %62 = vector.shape_cast %59 : vector<4x128xf32> to vector<1x4x128xf32>
    tpu.vector_store %arg26[%c4, %c0_50, %c0_51], %62 {strides = array<i32>} : memref<10x4x128xf32, #tpu.memory_space<vmem>>, vector<1x4x128xf32>,
    %63 = vector.extract_strided_slice %34 {offsets = [12, 0], sizes = [4, 128], strides = [1, 1]} : vector<32x128xf32> to vector<4x128xf32>
    %c4_52 = arith.constant 4 : index
    %c1_53 = arith.constant 1 : index
    %c0_54 = arith.constant 0 : index
    %64 = vector.load %arg25[%c4_52, %c1_53, %c0_54] : memref<10x5x128xf32, #tpu.memory_space<vmem>>, vector<1x4x128xf32>
    %65 = vector.shape_cast %64 : vector<1x4x128xf32> to vector<4x128xf32>
    %66 = vector.shape_cast %63 : vector<4x128xf32> to vector<1x4x128xf32>
    tpu.vector_store %arg25[%c4_52, %c1_53, %c0_54], %66 {strides = array<i32>} : memref<10x5x128xf32, #tpu.memory_space<vmem>>, vector<1x4x128xf32>,
    %67 = vector.extract_strided_slice %23 {offsets = [16, 0], sizes = [4, 128], strides = [1, 1]} : vector<32x128xf32> to vector<4x128xf32>
    %c5 = arith.constant 5 : index
    %c0_55 = arith.constant 0 : index
    %c0_56 = arith.constant 0 : index
    %68 = vector.load %arg26[%c5, %c0_55, %c0_56] : memref<10x4x128xf32, #tpu.memory_space<vmem>>, vector<1x4x128xf32>
    %69 = vector.shape_cast %68 : vector<1x4x128xf32> to vector<4x128xf32>
    %70 = vector.shape_cast %67 : vector<4x128xf32> to vector<1x4x128xf32>
    tpu.vector_store %arg26[%c5, %c0_55, %c0_56], %70 {strides = array<i32>} : memref<10x4x128xf32, #tpu.memory_space<vmem>>, vector<1x4x128xf32>,
    %71 = vector.extract_strided_slice %34 {offsets = [16, 0], sizes = [4, 128], strides = [1, 1]} : vector<32x128xf32> to vector<4x128xf32>
    %c5_57 = arith.constant 5 : index
    %c1_58 = arith.constant 1 : index
    %c0_59 = arith.constant 0 : index
    %72 = vector.load %arg25[%c5_57, %c1_58, %c0_59] : memref<10x5x128xf32, #tpu.memory_space<vmem>>, vector<1x4x128xf32>
    %73 = vector.shape_cast %72 : vector<1x4x128xf32> to vector<4x128xf32>
    %74 = vector.shape_cast %71 : vector<4x128xf32> to vector<1x4x128xf32>
    tpu.vector_store %arg25[%c5_57, %c1_58, %c0_59], %74 {strides = array<i32>} : memref<10x5x128xf32, #tpu.memory_space<vmem>>, vector<1x4x128xf32>,
    %75 = vector.extract_strided_slice %23 {offsets = [20, 0], sizes = [4, 128], strides = [1, 1]} : vector<32x128xf32> to vector<4x128xf32>
    %c6 = arith.constant 6 : index
    %c0_60 = arith.constant 0 : index
    %c0_61 = arith.constant 0 : index
    %76 = vector.load %arg26[%c6, %c0_60, %c0_61] : memref<10x4x128xf32, #tpu.memory_space<vmem>>, vector<1x4x128xf32>
    %77 = vector.shape_cast %76 : vector<1x4x128xf32> to vector<4x128xf32>
    %78 = vector.shape_cast %75 : vector<4x128xf32> to vector<1x4x128xf32>
    tpu.vector_store %arg26[%c6, %c0_60, %c0_61], %78 {strides = array<i32>} : memref<10x4x128xf32, #tpu.memory_space<vmem>>, vector<1x4x128xf32>,
    %79 = vector.extract_strided_slice %34 {offsets = [20, 0], sizes = [4, 128], strides = [1, 1]} : vector<32x128xf32> to vector<4x128xf32>
    %c6_62 = arith.constant 6 : index
    %c1_63 = arith.constant 1 : index
    %c0_64 = arith.constant 0 : index
    %80 = vector.load %arg25[%c6_62, %c1_63, %c0_64] : memref<10x5x128xf32, #tpu.memory_space<vmem>>, vector<1x4x128xf32>
    %81 = vector.shape_cast %80 : vector<1x4x128xf32> to vector<4x128xf32>
    %82 = vector.shape_cast %79 : vector<4x128xf32> to vector<1x4x128xf32>
    tpu.vector_store %arg25[%c6_62, %c1_63, %c0_64], %82 {strides = array<i32>} : memref<10x5x128xf32, #tpu.memory_space<vmem>>, vector<1x4x128xf32>,
    %83 = vector.extract_strided_slice %23 {offsets = [24, 0], sizes = [4, 128], strides = [1, 1]} : vector<32x128xf32> to vector<4x128xf32>
    %c7 = arith.constant 7 : index
    %c0_65 = arith.constant 0 : index
    %c0_66 = arith.constant 0 : index
    %84 = vector.load %arg26[%c7, %c0_65, %c0_66] : memref<10x4x128xf32, #tpu.memory_space<vmem>>, vector<1x4x128xf32>
    %85 = vector.shape_cast %84 : vector<1x4x128xf32> to vector<4x128xf32>
    %86 = vector.shape_cast %83 : vector<4x128xf32> to vector<1x4x128xf32>
    tpu.vector_store %arg26[%c7, %c0_65, %c0_66], %86 {strides = array<i32>} : memref<10x4x128xf32, #tpu.memory_space<vmem>>, vector<1x4x128xf32>,
    %87 = vector.extract_strided_slice %34 {offsets = [24, 0], sizes = [4, 128], strides = [1, 1]} : vector<32x128xf32> to vector<4x128xf32>
    %c7_67 = arith.constant 7 : index
    %c1_68 = arith.constant 1 : index
    %c0_69 = arith.constant 0 : index
    %88 = vector.load %arg25[%c7_67, %c1_68, %c0_69] : memref<10x5x128xf32, #tpu.memory_space<vmem>>, vector<1x4x128xf32>
    %89 = vector.shape_cast %88 : vector<1x4x128xf32> to vector<4x128xf32>
    %90 = vector.shape_cast %87 : vector<4x128xf32> to vector<1x4x128xf32>
    tpu.vector_store %arg25[%c7_67, %c1_68, %c0_69], %90 {strides = array<i32>} : memref<10x5x128xf32, #tpu.memory_space<vmem>>, vector<1x4x128xf32>,
    %91 = vector.extract_strided_slice %23 {offsets = [28, 0], sizes = [4, 128], strides = [1, 1]} : vector<32x128xf32> to vector<4x128xf32>
    %c8 = arith.constant 8 : index
    %c0_70 = arith.constant 0 : index
    %c0_71 = arith.constant 0 : index
    %92 = vector.load %arg26[%c8, %c0_70, %c0_71] : memref<10x4x128xf32, #tpu.memory_space<vmem>>, vector<1x4x128xf32>
    %93 = vector.shape_cast %92 : vector<1x4x128xf32> to vector<4x128xf32>
    %94 = vector.shape_cast %91 : vector<4x128xf32> to vector<1x4x128xf32>
    tpu.vector_store %arg26[%c8, %c0_70, %c0_71], %94 {strides = array<i32>} : memref<10x4x128xf32, #tpu.memory_space<vmem>>, vector<1x4x128xf32>,
    %95 = vector.extract_strided_slice %34 {offsets = [28, 0], sizes = [4, 128], strides = [1, 1]} : vector<32x128xf32> to vector<4x128xf32>
    %c8_72 = arith.constant 8 : index
    %c1_73 = arith.constant 1 : index
    %c0_74 = arith.constant 0 : index
    %96 = vector.load %arg25[%c8_72, %c1_73, %c0_74] : memref<10x5x128xf32, #tpu.memory_space<vmem>>, vector<1x4x128xf32>
    %97 = vector.shape_cast %96 : vector<1x4x128xf32> to vector<4x128xf32>
    %98 = vector.shape_cast %95 : vector<4x128xf32> to vector<1x4x128xf32>
    tpu.vector_store %arg25[%c8_72, %c1_73, %c0_74], %98 {strides = array<i32>} : memref<10x5x128xf32, #tpu.memory_space<vmem>>, vector<1x4x128xf32>,
    %c0_75 = arith.constant 0 : index
    %c0_76 = arith.constant 0 : index
    %99 = vector.load %arg6[%c0_75, %c0_76] : memref<9x128xf32, #tpu.memory_space<vmem>>, vector<9x128xf32>
    %c0_77 = arith.constant 0 : index
    %c0_78 = arith.constant 0 : index
    %100 = vector.load %arg7[%c0_77, %c0_78] : memref<1x128xf32, #tpu.memory_space<vmem>>, vector<1x128xf32>
    %c0_79 = arith.constant 0 : index
    %c0_80 = arith.constant 0 : index
    %101 = vector.load %arg8[%c0_79, %c0_80] : memref<1x128xf32, #tpu.memory_space<vmem>>, vector<1x128xf32>
    %cst_81 = arith.constant 0.000000e+00 : f32
    %102 = vector.broadcast %cst_81 : f32 to vector<4x128xf32>
    %c0_82 = arith.constant 0 : index
    %c0_83 = arith.constant 0 : index
    %c0_84 = arith.constant 0 : index
    %103 = vector.load %arg25[%c0_82, %c0_83, %c0_84] : memref<10x5x128xf32, #tpu.memory_space<vmem>>, vector<1x5x128xf32>
    %104 = vector.shape_cast %103 : vector<1x5x128xf32> to vector<5x128xf32>
    %c0_85 = arith.constant 0 : index
    %c0_86 = arith.constant 0 : index
    %c0_87 = arith.constant 0 : index
    %105 = vector.load %arg26[%c0_85, %c0_86, %c0_87] : memref<10x4x128xf32, #tpu.memory_space<vmem>>, vector<1x4x128xf32>
    %106 = vector.shape_cast %105 : vector<1x4x128xf32> to vector<4x128xf32>
    %107 = vector.extract_strided_slice %104 {offsets = [0, 0], sizes = [4, 128], strides = [1, 1]} : vector<5x128xf32> to vector<4x128xf32>
    %108 = vector.extract_strided_slice %99 {offsets = [0, 0], sizes = [1, 128], strides = [1, 1]} : vector<9x128xf32> to vector<1x128xf32>
    %109 = vector.shape_cast %108 : vector<1x128xf32> to vector<128xf32>
    %110 = vector.shape_cast %109 : vector<128xf32> to vector<1x128xf32>
    %111 = vector.broadcast %110 : vector<1x128xf32> to vector<4x128xf32>
    %112 = arith.mulf %107, %111 : vector<4x128xf32>
    %113 = arith.addf %102, %112 : vector<4x128xf32>
    %114 = vector.extract_strided_slice %99 {offsets = [1, 0], sizes = [1, 128], strides = [1, 1]} : vector<9x128xf32> to vector<1x128xf32>
    %115 = vector.shape_cast %114 : vector<1x128xf32> to vector<128xf32>
    %116 = vector.shape_cast %115 : vector<128xf32> to vector<1x128xf32>
    %117 = vector.broadcast %116 : vector<1x128xf32> to vector<4x128xf32>
    %118 = arith.mulf %106, %117 : vector<4x128xf32>
    %119 = arith.addf %113, %118 : vector<4x128xf32>
    %120 = vector.extract_strided_slice %104 {offsets = [1, 0], sizes = [4, 128], strides = [1, 1]} : vector<5x128xf32> to vector<4x128xf32>
    %121 = vector.extract_strided_slice %99 {offsets = [2, 0], sizes = [1, 128], strides = [1, 1]} : vector<9x128xf32> to vector<1x128xf32>
    %122 = vector.shape_cast %121 : vector<1x128xf32> to vector<128xf32>
    %123 = vector.shape_cast %122 : vector<128xf32> to vector<1x128xf32>
    %124 = vector.broadcast %123 : vector<1x128xf32> to vector<4x128xf32>
    %125 = arith.mulf %120, %124 : vector<4x128xf32>
    %126 = arith.addf %119, %125 : vector<4x128xf32>
    %c1_88 = arith.constant 1 : index
    %c0_89 = arith.constant 0 : index
    %c0_90 = arith.constant 0 : index
    %127 = vector.load %arg25[%c1_88, %c0_89, %c0_90] : memref<10x5x128xf32, #tpu.memory_space<vmem>>, vector<1x5x128xf32>
    %128 = vector.shape_cast %127 : vector<1x5x128xf32> to vector<5x128xf32>
    %c1_91 = arith.constant 1 : index
    %c0_92 = arith.constant 0 : index
    %c0_93 = arith.constant 0 : index
    %129 = vector.load %arg26[%c1_91, %c0_92, %c0_93] : memref<10x4x128xf32, #tpu.memory_space<vmem>>, vector<1x4x128xf32>
    %130 = vector.shape_cast %129 : vector<1x4x128xf32> to vector<4x128xf32>
    %131 = vector.extract_strided_slice %128 {offsets = [0, 0], sizes = [4, 128], strides = [1, 1]} : vector<5x128xf32> to vector<4x128xf32>
    %132 = vector.extract_strided_slice %99 {offsets = [3, 0], sizes = [1, 128], strides = [1, 1]} : vector<9x128xf32> to vector<1x128xf32>
    %133 = vector.shape_cast %132 : vector<1x128xf32> to vector<128xf32>
    %134 = vector.shape_cast %133 : vector<128xf32> to vector<1x128xf32>
    %135 = vector.broadcast %134 : vector<1x128xf32> to vector<4x128xf32>
    %136 = arith.mulf %131, %135 : vector<4x128xf32>
    %137 = arith.addf %126, %136 : vector<4x128xf32>
    %138 = vector.extract_strided_slice %99 {offsets = [4, 0], sizes = [1, 128], strides = [1, 1]} : vector<9x128xf32> to vector<1x128xf32>
    %139 = vector.shape_cast %138 : vector<1x128xf32> to vector<128xf32>
    %140 = vector.shape_cast %139 : vector<128xf32> to vector<1x128xf32>
    %141 = vector.broadcast %140 : vector<1x128xf32> to vector<4x128xf32>
    %142 = arith.mulf %130, %141 : vector<4x128xf32>
    %143 = arith.addf %137, %142 : vector<4x128xf32>
    %144 = vector.extract_strided_slice %128 {offsets = [1, 0], sizes = [4, 128], strides = [1, 1]} : vector<5x128xf32> to vector<4x128xf32>
    %145 = vector.extract_strided_slice %99 {offsets = [5, 0], sizes = [1, 128], strides = [1, 1]} : vector<9x128xf32> to vector<1x128xf32>
    %146 = vector.shape_cast %145 : vector<1x128xf32> to vector<128xf32>
    %147 = vector.shape_cast %146 : vector<128xf32> to vector<1x128xf32>
    %148 = vector.broadcast %147 : vector<1x128xf32> to vector<4x128xf32>
    %149 = arith.mulf %144, %148 : vector<4x128xf32>
    %150 = arith.addf %143, %149 : vector<4x128xf32>
    %c2_94 = arith.constant 2 : index
    %c0_95 = arith.constant 0 : index
    %c0_96 = arith.constant 0 : index
    %151 = vector.load %arg25[%c2_94, %c0_95, %c0_96] : memref<10x5x128xf32, #tpu.memory_space<vmem>>, vector<1x5x128xf32>
    %152 = vector.shape_cast %151 : vector<1x5x128xf32> to vector<5x128xf32>
    %c2_97 = arith.constant 2 : index
    %c0_98 = arith.constant 0 : index
    %c0_99 = arith.constant 0 : index
    %153 = vector.load %arg26[%c2_97, %c0_98, %c0_99] : memref<10x4x128xf32, #tpu.memory_space<vmem>>, vector<1x4x128xf32>
    %154 = vector.shape_cast %153 : vector<1x4x128xf32> to vector<4x128xf32>
    %155 = vector.extract_strided_slice %152 {offsets = [0, 0], sizes = [4, 128], strides = [1, 1]} : vector<5x128xf32> to vector<4x128xf32>
    %156 = vector.extract_strided_slice %99 {offsets = [6, 0], sizes = [1, 128], strides = [1, 1]} : vector<9x128xf32> to vector<1x128xf32>
    %157 = vector.shape_cast %156 : vector<1x128xf32> to vector<128xf32>
    %158 = vector.shape_cast %157 : vector<128xf32> to vector<1x128xf32>
    %159 = vector.broadcast %158 : vector<1x128xf32> to vector<4x128xf32>
    %160 = arith.mulf %155, %159 : vector<4x128xf32>
    %161 = arith.addf %150, %160 : vector<4x128xf32>
    %162 = vector.extract_strided_slice %99 {offsets = [7, 0], sizes = [1, 128], strides = [1, 1]} : vector<9x128xf32> to vector<1x128xf32>
    %163 = vector.shape_cast %162 : vector<1x128xf32> to vector<128xf32>
    %164 = vector.shape_cast %163 : vector<128xf32> to vector<1x128xf32>
    %165 = vector.broadcast %164 : vector<1x128xf32> to vector<4x128xf32>
    %166 = arith.mulf %154, %165 : vector<4x128xf32>
    %167 = arith.addf %161, %166 : vector<4x128xf32>
    %168 = vector.extract_strided_slice %152 {offsets = [1, 0], sizes = [4, 128], strides = [1, 1]} : vector<5x128xf32> to vector<4x128xf32>
    %169 = vector.extract_strided_slice %99 {offsets = [8, 0], sizes = [1, 128], strides = [1, 1]} : vector<9x128xf32> to vector<1x128xf32>
    %170 = vector.shape_cast %169 : vector<1x128xf32> to vector<128xf32>
    %171 = vector.shape_cast %170 : vector<128xf32> to vector<1x128xf32>
    %172 = vector.broadcast %171 : vector<1x128xf32> to vector<4x128xf32>
    %173 = arith.mulf %168, %172 : vector<4x128xf32>
    %174 = arith.addf %167, %173 : vector<4x128xf32>
    %175 = vector.broadcast %100 : vector<1x128xf32> to vector<4x128xf32>
    %176 = arith.mulf %174, %175 : vector<4x128xf32>
    %177 = vector.broadcast %101 : vector<1x128xf32> to vector<4x128xf32>
    %178 = arith.addf %176, %177 : vector<4x128xf32>
    %cst_100 = arith.constant 0.000000e+00 : f32
    %cst_101 = arith.constant 6.000000e+00 : f32
    %179 = vector.broadcast %cst_100 : f32 to vector<4x128xf32>
    %180 = arith.maximumf %179, %178 : vector<4x128xf32>
    %181 = vector.broadcast %cst_101 : f32 to vector<4x128xf32>
    %182 = arith.minimumf %181, %180 : vector<4x128xf32>
    %183 = arith.truncf %182 : vector<4x128xf32> to vector<4x128xbf16>
    %c0_102 = arith.constant 0 : index
    %c0_103 = arith.constant 0 : index
    %184 = vector.load %arg27[%c0_102, %c0_103] : memref<16x128xbf16, #tpu.memory_space<vmem>>, vector<4x128xbf16>
    tpu.vector_store %arg27[%c0_102, %c0_103], %183 {strides = array<i32>} : memref<16x128xbf16, #tpu.memory_space<vmem>>, vector<4x128xbf16>,
    %cst_104 = arith.constant 0.000000e+00 : f32
    %185 = vector.broadcast %cst_104 : f32 to vector<4x128xf32>
    %c2_105 = arith.constant 2 : index
    %c0_106 = arith.constant 0 : index
    %c0_107 = arith.constant 0 : index
    %186 = vector.load %arg25[%c2_105, %c0_106, %c0_107] : memref<10x5x128xf32, #tpu.memory_space<vmem>>, vector<1x5x128xf32>
    %187 = vector.shape_cast %186 : vector<1x5x128xf32> to vector<5x128xf32>
    %c2_108 = arith.constant 2 : index
    %c0_109 = arith.constant 0 : index
    %c0_110 = arith.constant 0 : index
    %188 = vector.load %arg26[%c2_108, %c0_109, %c0_110] : memref<10x4x128xf32, #tpu.memory_space<vmem>>, vector<1x4x128xf32>
    %189 = vector.shape_cast %188 : vector<1x4x128xf32> to vector<4x128xf32>
    %190 = vector.extract_strided_slice %187 {offsets = [0, 0], sizes = [4, 128], strides = [1, 1]} : vector<5x128xf32> to vector<4x128xf32>
    %191 = vector.extract_strided_slice %99 {offsets = [0, 0], sizes = [1, 128], strides = [1, 1]} : vector<9x128xf32> to vector<1x128xf32>
    %192 = vector.shape_cast %191 : vector<1x128xf32> to vector<128xf32>
    %193 = vector.shape_cast %192 : vector<128xf32> to vector<1x128xf32>
    %194 = vector.broadcast %193 : vector<1x128xf32> to vector<4x128xf32>
    %195 = arith.mulf %190, %194 : vector<4x128xf32>
    %196 = arith.addf %185, %195 : vector<4x128xf32>
    %197 = vector.extract_strided_slice %99 {offsets = [1, 0], sizes = [1, 128], strides = [1, 1]} : vector<9x128xf32> to vector<1x128xf32>
    %198 = vector.shape_cast %197 : vector<1x128xf32> to vector<128xf32>
    %199 = vector.shape_cast %198 : vector<128xf32> to vector<1x128xf32>
    %200 = vector.broadcast %199 : vector<1x128xf32> to vector<4x128xf32>
    %201 = arith.mulf %189, %200 : vector<4x128xf32>
    %202 = arith.addf %196, %201 : vector<4x128xf32>
    %203 = vector.extract_strided_slice %187 {offsets = [1, 0], sizes = [4, 128], strides = [1, 1]} : vector<5x128xf32> to vector<4x128xf32>
    %204 = vector.extract_strided_slice %99 {offsets = [2, 0], sizes = [1, 128], strides = [1, 1]} : vector<9x128xf32> to vector<1x128xf32>
    %205 = vector.shape_cast %204 : vector<1x128xf32> to vector<128xf32>
    %206 = vector.shape_cast %205 : vector<128xf32> to vector<1x128xf32>
    %207 = vector.broadcast %206 : vector<1x128xf32> to vector<4x128xf32>
    %208 = arith.mulf %203, %207 : vector<4x128xf32>
    %209 = arith.addf %202, %208 : vector<4x128xf32>
    %c3_111 = arith.constant 3 : index
    %c0_112 = arith.constant 0 : index
    %c0_113 = arith.constant 0 : index
    %210 = vector.load %arg25[%c3_111, %c0_112, %c0_113] : memref<10x5x128xf32, #tpu.memory_space<vmem>>, vector<1x5x128xf32>
    %211 = vector.shape_cast %210 : vector<1x5x128xf32> to vector<5x128xf32>
    %c3_114 = arith.constant 3 : index
    %c0_115 = arith.constant 0 : index
    %c0_116 = arith.constant 0 : index
    %212 = vector.load %arg26[%c3_114, %c0_115, %c0_116] : memref<10x4x128xf32, #tpu.memory_space<vmem>>, vector<1x4x128xf32>
    %213 = vector.shape_cast %212 : vector<1x4x128xf32> to vector<4x128xf32>
    %214 = vector.extract_strided_slice %211 {offsets = [0, 0], sizes = [4, 128], strides = [1, 1]} : vector<5x128xf32> to vector<4x128xf32>
    %215 = vector.extract_strided_slice %99 {offsets = [3, 0], sizes = [1, 128], strides = [1, 1]} : vector<9x128xf32> to vector<1x128xf32>
    %216 = vector.shape_cast %215 : vector<1x128xf32> to vector<128xf32>
    %217 = vector.shape_cast %216 : vector<128xf32> to vector<1x128xf32>
    %218 = vector.broadcast %217 : vector<1x128xf32> to vector<4x128xf32>
    %219 = arith.mulf %214, %218 : vector<4x128xf32>
    %220 = arith.addf %209, %219 : vector<4x128xf32>
    %221 = vector.extract_strided_slice %99 {offsets = [4, 0], sizes = [1, 128], strides = [1, 1]} : vector<9x128xf32> to vector<1x128xf32>
    %222 = vector.shape_cast %221 : vector<1x128xf32> to vector<128xf32>
    %223 = vector.shape_cast %222 : vector<128xf32> to vector<1x128xf32>
    %224 = vector.broadcast %223 : vector<1x128xf32> to vector<4x128xf32>
    %225 = arith.mulf %213, %224 : vector<4x128xf32>
    %226 = arith.addf %220, %225 : vector<4x128xf32>
    %227 = vector.extract_strided_slice %211 {offsets = [1, 0], sizes = [4, 128], strides = [1, 1]} : vector<5x128xf32> to vector<4x128xf32>
    %228 = vector.extract_strided_slice %99 {offsets = [5, 0], sizes = [1, 128], strides = [1, 1]} : vector<9x128xf32> to vector<1x128xf32>
    %229 = vector.shape_cast %228 : vector<1x128xf32> to vector<128xf32>
    %230 = vector.shape_cast %229 : vector<128xf32> to vector<1x128xf32>
    %231 = vector.broadcast %230 : vector<1x128xf32> to vector<4x128xf32>
    %232 = arith.mulf %227, %231 : vector<4x128xf32>
    %233 = arith.addf %226, %232 : vector<4x128xf32>
    %c4_117 = arith.constant 4 : index
    %c0_118 = arith.constant 0 : index
    %c0_119 = arith.constant 0 : index
    %234 = vector.load %arg25[%c4_117, %c0_118, %c0_119] : memref<10x5x128xf32, #tpu.memory_space<vmem>>, vector<1x5x128xf32>
    %235 = vector.shape_cast %234 : vector<1x5x128xf32> to vector<5x128xf32>
    %c4_120 = arith.constant 4 : index
    %c0_121 = arith.constant 0 : index
    %c0_122 = arith.constant 0 : index
    %236 = vector.load %arg26[%c4_120, %c0_121, %c0_122] : memref<10x4x128xf32, #tpu.memory_space<vmem>>, vector<1x4x128xf32>
    %237 = vector.shape_cast %236 : vector<1x4x128xf32> to vector<4x128xf32>
    %238 = vector.extract_strided_slice %235 {offsets = [0, 0], sizes = [4, 128], strides = [1, 1]} : vector<5x128xf32> to vector<4x128xf32>
    %239 = vector.extract_strided_slice %99 {offsets = [6, 0], sizes = [1, 128], strides = [1, 1]} : vector<9x128xf32> to vector<1x128xf32>
    %240 = vector.shape_cast %239 : vector<1x128xf32> to vector<128xf32>
    %241 = vector.shape_cast %240 : vector<128xf32> to vector<1x128xf32>
    %242 = vector.broadcast %241 : vector<1x128xf32> to vector<4x128xf32>
    %243 = arith.mulf %238, %242 : vector<4x128xf32>
    %244 = arith.addf %233, %243 : vector<4x128xf32>
    %245 = vector.extract_strided_slice %99 {offsets = [7, 0], sizes = [1, 128], strides = [1, 1]} : vector<9x128xf32> to vector<1x128xf32>
    %246 = vector.shape_cast %245 : vector<1x128xf32> to vector<128xf32>
    %247 = vector.shape_cast %246 : vector<128xf32> to vector<1x128xf32>
    %248 = vector.broadcast %247 : vector<1x128xf32> to vector<4x128xf32>
    %249 = arith.mulf %237, %248 : vector<4x128xf32>
    %250 = arith.addf %244, %249 : vector<4x128xf32>
    %251 = vector.extract_strided_slice %235 {offsets = [1, 0], sizes = [4, 128], strides = [1, 1]} : vector<5x128xf32> to vector<4x128xf32>
    %252 = vector.extract_strided_slice %99 {offsets = [8, 0], sizes = [1, 128], strides = [1, 1]} : vector<9x128xf32> to vector<1x128xf32>
    %253 = vector.shape_cast %252 : vector<1x128xf32> to vector<128xf32>
    %254 = vector.shape_cast %253 : vector<128xf32> to vector<1x128xf32>
    %255 = vector.broadcast %254 : vector<1x128xf32> to vector<4x128xf32>
    %256 = arith.mulf %251, %255 : vector<4x128xf32>
    %257 = arith.addf %250, %256 : vector<4x128xf32>
    %258 = vector.broadcast %100 : vector<1x128xf32> to vector<4x128xf32>
    %259 = arith.mulf %257, %258 : vector<4x128xf32>
    %260 = vector.broadcast %101 : vector<1x128xf32> to vector<4x128xf32>
    %261 = arith.addf %259, %260 : vector<4x128xf32>
    %cst_123 = arith.constant 0.000000e+00 : f32
    %cst_124 = arith.constant 6.000000e+00 : f32
    %262 = vector.broadcast %cst_123 : f32 to vector<4x128xf32>
    %263 = arith.maximumf %262, %261 : vector<4x128xf32>
    %264 = vector.broadcast %cst_124 : f32 to vector<4x128xf32>
    %265 = arith.minimumf %264, %263 : vector<4x128xf32>
    %266 = arith.truncf %265 : vector<4x128xf32> to vector<4x128xbf16>
    %c4_125 = arith.constant 4 : index
    %c0_126 = arith.constant 0 : index
    %267 = vector.load %arg27[%c4_125, %c0_126] : memref<16x128xbf16, #tpu.memory_space<vmem>>, vector<4x128xbf16>
    tpu.vector_store %arg27[%c4_125, %c0_126], %266 {strides = array<i32>} : memref<16x128xbf16, #tpu.memory_space<vmem>>, vector<4x128xbf16>,
    %cst_127 = arith.constant 0.000000e+00 : f32
    %268 = vector.broadcast %cst_127 : f32 to vector<4x128xf32>
    %c4_128 = arith.constant 4 : index
    %c0_129 = arith.constant 0 : index
    %c0_130 = arith.constant 0 : index
    %269 = vector.load %arg25[%c4_128, %c0_129, %c0_130] : memref<10x5x128xf32, #tpu.memory_space<vmem>>, vector<1x5x128xf32>
    %270 = vector.shape_cast %269 : vector<1x5x128xf32> to vector<5x128xf32>
    %c4_131 = arith.constant 4 : index
    %c0_132 = arith.constant 0 : index
    %c0_133 = arith.constant 0 : index
    %271 = vector.load %arg26[%c4_131, %c0_132, %c0_133] : memref<10x4x128xf32, #tpu.memory_space<vmem>>, vector<1x4x128xf32>
    %272 = vector.shape_cast %271 : vector<1x4x128xf32> to vector<4x128xf32>
    %273 = vector.extract_strided_slice %270 {offsets = [0, 0], sizes = [4, 128], strides = [1, 1]} : vector<5x128xf32> to vector<4x128xf32>
    %274 = vector.extract_strided_slice %99 {offsets = [0, 0], sizes = [1, 128], strides = [1, 1]} : vector<9x128xf32> to vector<1x128xf32>
    %275 = vector.shape_cast %274 : vector<1x128xf32> to vector<128xf32>
    %276 = vector.shape_cast %275 : vector<128xf32> to vector<1x128xf32>
    %277 = vector.broadcast %276 : vector<1x128xf32> to vector<4x128xf32>
    %278 = arith.mulf %273, %277 : vector<4x128xf32>
    %279 = arith.addf %268, %278 : vector<4x128xf32>
    %280 = vector.extract_strided_slice %99 {offsets = [1, 0], sizes = [1, 128], strides = [1, 1]} : vector<9x128xf32> to vector<1x128xf32>
    %281 = vector.shape_cast %280 : vector<1x128xf32> to vector<128xf32>
    %282 = vector.shape_cast %281 : vector<128xf32> to vector<1x128xf32>
    %283 = vector.broadcast %282 : vector<1x128xf32> to vector<4x128xf32>
    %284 = arith.mulf %272, %283 : vector<4x128xf32>
    %285 = arith.addf %279, %284 : vector<4x128xf32>
    %286 = vector.extract_strided_slice %270 {offsets = [1, 0], sizes = [4, 128], strides = [1, 1]} : vector<5x128xf32> to vector<4x128xf32>
    %287 = vector.extract_strided_slice %99 {offsets = [2, 0], sizes = [1, 128], strides = [1, 1]} : vector<9x128xf32> to vector<1x128xf32>
    %288 = vector.shape_cast %287 : vector<1x128xf32> to vector<128xf32>
    %289 = vector.shape_cast %288 : vector<128xf32> to vector<1x128xf32>
    %290 = vector.broadcast %289 : vector<1x128xf32> to vector<4x128xf32>
    %291 = arith.mulf %286, %290 : vector<4x128xf32>
    %292 = arith.addf %285, %291 : vector<4x128xf32>
    %c5_134 = arith.constant 5 : index
    %c0_135 = arith.constant 0 : index
    %c0_136 = arith.constant 0 : index
    %293 = vector.load %arg25[%c5_134, %c0_135, %c0_136] : memref<10x5x128xf32, #tpu.memory_space<vmem>>, vector<1x5x128xf32>
    %294 = vector.shape_cast %293 : vector<1x5x128xf32> to vector<5x128xf32>
    %c5_137 = arith.constant 5 : index
    %c0_138 = arith.constant 0 : index
    %c0_139 = arith.constant 0 : index
    %295 = vector.load %arg26[%c5_137, %c0_138, %c0_139] : memref<10x4x128xf32, #tpu.memory_space<vmem>>, vector<1x4x128xf32>
    %296 = vector.shape_cast %295 : vector<1x4x128xf32> to vector<4x128xf32>
    %297 = vector.extract_strided_slice %294 {offsets = [0, 0], sizes = [4, 128], strides = [1, 1]} : vector<5x128xf32> to vector<4x128xf32>
    %298 = vector.extract_strided_slice %99 {offsets = [3, 0], sizes = [1, 128], strides = [1, 1]} : vector<9x128xf32> to vector<1x128xf32>
    %299 = vector.shape_cast %298 : vector<1x128xf32> to vector<128xf32>
    %300 = vector.shape_cast %299 : vector<128xf32> to vector<1x128xf32>
    %301 = vector.broadcast %300 : vector<1x128xf32> to vector<4x128xf32>
    %302 = arith.mulf %297, %301 : vector<4x128xf32>
    %303 = arith.addf %292, %302 : vector<4x128xf32>
    %304 = vector.extract_strided_slice %99 {offsets = [4, 0], sizes = [1, 128], strides = [1, 1]} : vector<9x128xf32> to vector<1x128xf32>
    %305 = vector.shape_cast %304 : vector<1x128xf32> to vector<128xf32>
    %306 = vector.shape_cast %305 : vector<128xf32> to vector<1x128xf32>
    %307 = vector.broadcast %306 : vector<1x128xf32> to vector<4x128xf32>
    %308 = arith.mulf %296, %307 : vector<4x128xf32>
    %309 = arith.addf %303, %308 : vector<4x128xf32>
    %310 = vector.extract_strided_slice %294 {offsets = [1, 0], sizes = [4, 128], strides = [1, 1]} : vector<5x128xf32> to vector<4x128xf32>
    %311 = vector.extract_strided_slice %99 {offsets = [5, 0], sizes = [1, 128], strides = [1, 1]} : vector<9x128xf32> to vector<1x128xf32>
    %312 = vector.shape_cast %311 : vector<1x128xf32> to vector<128xf32>
    %313 = vector.shape_cast %312 : vector<128xf32> to vector<1x128xf32>
    %314 = vector.broadcast %313 : vector<1x128xf32> to vector<4x128xf32>
    %315 = arith.mulf %310, %314 : vector<4x128xf32>
    %316 = arith.addf %309, %315 : vector<4x128xf32>
    %c6_140 = arith.constant 6 : index
    %c0_141 = arith.constant 0 : index
    %c0_142 = arith.constant 0 : index
    %317 = vector.load %arg25[%c6_140, %c0_141, %c0_142] : memref<10x5x128xf32, #tpu.memory_space<vmem>>, vector<1x5x128xf32>
    %318 = vector.shape_cast %317 : vector<1x5x128xf32> to vector<5x128xf32>
    %c6_143 = arith.constant 6 : index
    %c0_144 = arith.constant 0 : index
    %c0_145 = arith.constant 0 : index
    %319 = vector.load %arg26[%c6_143, %c0_144, %c0_145] : memref<10x4x128xf32, #tpu.memory_space<vmem>>, vector<1x4x128xf32>
    %320 = vector.shape_cast %319 : vector<1x4x128xf32> to vector<4x128xf32>
    %321 = vector.extract_strided_slice %318 {offsets = [0, 0], sizes = [4, 128], strides = [1, 1]} : vector<5x128xf32> to vector<4x128xf32>
    %322 = vector.extract_strided_slice %99 {offsets = [6, 0], sizes = [1, 128], strides = [1, 1]} : vector<9x128xf32> to vector<1x128xf32>
    %323 = vector.shape_cast %322 : vector<1x128xf32> to vector<128xf32>
    %324 = vector.shape_cast %323 : vector<128xf32> to vector<1x128xf32>
    %325 = vector.broadcast %324 : vector<1x128xf32> to vector<4x128xf32>
    %326 = arith.mulf %321, %325 : vector<4x128xf32>
    %327 = arith.addf %316, %326 : vector<4x128xf32>
    %328 = vector.extract_strided_slice %99 {offsets = [7, 0], sizes = [1, 128], strides = [1, 1]} : vector<9x128xf32> to vector<1x128xf32>
    %329 = vector.shape_cast %328 : vector<1x128xf32> to vector<128xf32>
    %330 = vector.shape_cast %329 : vector<128xf32> to vector<1x128xf32>
    %331 = vector.broadcast %330 : vector<1x128xf32> to vector<4x128xf32>
    %332 = arith.mulf %320, %331 : vector<4x128xf32>
    %333 = arith.addf %327, %332 : vector<4x128xf32>
    %334 = vector.extract_strided_slice %318 {offsets = [1, 0], sizes = [4, 128], strides = [1, 1]} : vector<5x128xf32> to vector<4x128xf32>
    %335 = vector.extract_strided_slice %99 {offsets = [8, 0], sizes = [1, 128], strides = [1, 1]} : vector<9x128xf32> to vector<1x128xf32>
    %336 = vector.shape_cast %335 : vector<1x128xf32> to vector<128xf32>
    %337 = vector.shape_cast %336 : vector<128xf32> to vector<1x128xf32>
    %338 = vector.broadcast %337 : vector<1x128xf32> to vector<4x128xf32>
    %339 = arith.mulf %334, %338 : vector<4x128xf32>
    %340 = arith.addf %333, %339 : vector<4x128xf32>
    %341 = vector.broadcast %100 : vector<1x128xf32> to vector<4x128xf32>
    %342 = arith.mulf %340, %341 : vector<4x128xf32>
    %343 = vector.broadcast %101 : vector<1x128xf32> to vector<4x128xf32>
    %344 = arith.addf %342, %343 : vector<4x128xf32>
    %cst_146 = arith.constant 0.000000e+00 : f32
    %cst_147 = arith.constant 6.000000e+00 : f32
    %345 = vector.broadcast %cst_146 : f32 to vector<4x128xf32>
    %346 = arith.maximumf %345, %344 : vector<4x128xf32>
    %347 = vector.broadcast %cst_147 : f32 to vector<4x128xf32>
    %348 = arith.minimumf %347, %346 : vector<4x128xf32>
    %349 = arith.truncf %348 : vector<4x128xf32> to vector<4x128xbf16>
    %c8_148 = arith.constant 8 : index
    %c0_149 = arith.constant 0 : index
    %350 = vector.load %arg27[%c8_148, %c0_149] : memref<16x128xbf16, #tpu.memory_space<vmem>>, vector<4x128xbf16>
    tpu.vector_store %arg27[%c8_148, %c0_149], %349 {strides = array<i32>} : memref<16x128xbf16, #tpu.memory_space<vmem>>, vector<4x128xbf16>,
    %cst_150 = arith.constant 0.000000e+00 : f32
    %351 = vector.broadcast %cst_150 : f32 to vector<4x128xf32>
    %c6_151 = arith.constant 6 : index
    %c0_152 = arith.constant 0 : index
    %c0_153 = arith.constant 0 : index
    %352 = vector.load %arg25[%c6_151, %c0_152, %c0_153] : memref<10x5x128xf32, #tpu.memory_space<vmem>>, vector<1x5x128xf32>
    %353 = vector.shape_cast %352 : vector<1x5x128xf32> to vector<5x128xf32>
    %c6_154 = arith.constant 6 : index
    %c0_155 = arith.constant 0 : index
    %c0_156 = arith.constant 0 : index
    %354 = vector.load %arg26[%c6_154, %c0_155, %c0_156] : memref<10x4x128xf32, #tpu.memory_space<vmem>>, vector<1x4x128xf32>
    %355 = vector.shape_cast %354 : vector<1x4x128xf32> to vector<4x128xf32>
    %356 = vector.extract_strided_slice %353 {offsets = [0, 0], sizes = [4, 128], strides = [1, 1]} : vector<5x128xf32> to vector<4x128xf32>
    %357 = vector.extract_strided_slice %99 {offsets = [0, 0], sizes = [1, 128], strides = [1, 1]} : vector<9x128xf32> to vector<1x128xf32>
    %358 = vector.shape_cast %357 : vector<1x128xf32> to vector<128xf32>
    %359 = vector.shape_cast %358 : vector<128xf32> to vector<1x128xf32>
    %360 = vector.broadcast %359 : vector<1x128xf32> to vector<4x128xf32>
    %361 = arith.mulf %356, %360 : vector<4x128xf32>
    %362 = arith.addf %351, %361 : vector<4x128xf32>
    %363 = vector.extract_strided_slice %99 {offsets = [1, 0], sizes = [1, 128], strides = [1, 1]} : vector<9x128xf32> to vector<1x128xf32>
    %364 = vector.shape_cast %363 : vector<1x128xf32> to vector<128xf32>
    %365 = vector.shape_cast %364 : vector<128xf32> to vector<1x128xf32>
    %366 = vector.broadcast %365 : vector<1x128xf32> to vector<4x128xf32>
    %367 = arith.mulf %355, %366 : vector<4x128xf32>
    %368 = arith.addf %362, %367 : vector<4x128xf32>
    %369 = vector.extract_strided_slice %353 {offsets = [1, 0], sizes = [4, 128], strides = [1, 1]} : vector<5x128xf32> to vector<4x128xf32>
    %370 = vector.extract_strided_slice %99 {offsets = [2, 0], sizes = [1, 128], strides = [1, 1]} : vector<9x128xf32> to vector<1x128xf32>
    %371 = vector.shape_cast %370 : vector<1x128xf32> to vector<128xf32>
    %372 = vector.shape_cast %371 : vector<128xf32> to vector<1x128xf32>
    %373 = vector.broadcast %372 : vector<1x128xf32> to vector<4x128xf32>
    %374 = arith.mulf %369, %373 : vector<4x128xf32>
    %375 = arith.addf %368, %374 : vector<4x128xf32>
    %c7_157 = arith.constant 7 : index
    %c0_158 = arith.constant 0 : index
    %c0_159 = arith.constant 0 : index
    %376 = vector.load %arg25[%c7_157, %c0_158, %c0_159] : memref<10x5x128xf32, #tpu.memory_space<vmem>>, vector<1x5x128xf32>
    %377 = vector.shape_cast %376 : vector<1x5x128xf32> to vector<5x128xf32>
    %c7_160 = arith.constant 7 : index
    %c0_161 = arith.constant 0 : index
    %c0_162 = arith.constant 0 : index
    %378 = vector.load %arg26[%c7_160, %c0_161, %c0_162] : memref<10x4x128xf32, #tpu.memory_space<vmem>>, vector<1x4x128xf32>
    %379 = vector.shape_cast %378 : vector<1x4x128xf32> to vector<4x128xf32>
    %380 = vector.extract_strided_slice %377 {offsets = [0, 0], sizes = [4, 128], strides = [1, 1]} : vector<5x128xf32> to vector<4x128xf32>
    %381 = vector.extract_strided_slice %99 {offsets = [3, 0], sizes = [1, 128], strides = [1, 1]} : vector<9x128xf32> to vector<1x128xf32>
    %382 = vector.shape_cast %381 : vector<1x128xf32> to vector<128xf32>
    %383 = vector.shape_cast %382 : vector<128xf32> to vector<1x128xf32>
    %384 = vector.broadcast %383 : vector<1x128xf32> to vector<4x128xf32>
    %385 = arith.mulf %380, %384 : vector<4x128xf32>
    %386 = arith.addf %375, %385 : vector<4x128xf32>
    %387 = vector.extract_strided_slice %99 {offsets = [4, 0], sizes = [1, 128], strides = [1, 1]} : vector<9x128xf32> to vector<1x128xf32>
    %388 = vector.shape_cast %387 : vector<1x128xf32> to vector<128xf32>
    %389 = vector.shape_cast %388 : vector<128xf32> to vector<1x128xf32>
    %390 = vector.broadcast %389 : vector<1x128xf32> to vector<4x128xf32>
    %391 = arith.mulf %379, %390 : vector<4x128xf32>
    %392 = arith.addf %386, %391 : vector<4x128xf32>
    %393 = vector.extract_strided_slice %377 {offsets = [1, 0], sizes = [4, 128], strides = [1, 1]} : vector<5x128xf32> to vector<4x128xf32>
    %394 = vector.extract_strided_slice %99 {offsets = [5, 0], sizes = [1, 128], strides = [1, 1]} : vector<9x128xf32> to vector<1x128xf32>
    %395 = vector.shape_cast %394 : vector<1x128xf32> to vector<128xf32>
    %396 = vector.shape_cast %395 : vector<128xf32> to vector<1x128xf32>
    %397 = vector.broadcast %396 : vector<1x128xf32> to vector<4x128xf32>
    %398 = arith.mulf %393, %397 : vector<4x128xf32>
    %399 = arith.addf %392, %398 : vector<4x128xf32>
    %c8_163 = arith.constant 8 : index
    %c0_164 = arith.constant 0 : index
    %c0_165 = arith.constant 0 : index
    %400 = vector.load %arg25[%c8_163, %c0_164, %c0_165] : memref<10x5x128xf32, #tpu.memory_space<vmem>>, vector<1x5x128xf32>
    %401 = vector.shape_cast %400 : vector<1x5x128xf32> to vector<5x128xf32>
    %c8_166 = arith.constant 8 : index
    %c0_167 = arith.constant 0 : index
    %c0_168 = arith.constant 0 : index
    %402 = vector.load %arg26[%c8_166, %c0_167, %c0_168] : memref<10x4x128xf32, #tpu.memory_space<vmem>>, vector<1x4x128xf32>
    %403 = vector.shape_cast %402 : vector<1x4x128xf32> to vector<4x128xf32>
    %404 = vector.extract_strided_slice %401 {offsets = [0, 0], sizes = [4, 128], strides = [1, 1]} : vector<5x128xf32> to vector<4x128xf32>
    %405 = vector.extract_strided_slice %99 {offsets = [6, 0], sizes = [1, 128], strides = [1, 1]} : vector<9x128xf32> to vector<1x128xf32>
    %406 = vector.shape_cast %405 : vector<1x128xf32> to vector<128xf32>
    %407 = vector.shape_cast %406 : vector<128xf32> to vector<1x128xf32>
    %408 = vector.broadcast %407 : vector<1x128xf32> to vector<4x128xf32>
    %409 = arith.mulf %404, %408 : vector<4x128xf32>
    %410 = arith.addf %399, %409 : vector<4x128xf32>
    %411 = vector.extract_strided_slice %99 {offsets = [7, 0], sizes = [1, 128], strides = [1, 1]} : vector<9x128xf32> to vector<1x128xf32>
    %412 = vector.shape_cast %411 : vector<1x128xf32> to vector<128xf32>
    %413 = vector.shape_cast %412 : vector<128xf32> to vector<1x128xf32>
    %414 = vector.broadcast %413 : vector<1x128xf32> to vector<4x128xf32>
    %415 = arith.mulf %403, %414 : vector<4x128xf32>
    %416 = arith.addf %410, %415 : vector<4x128xf32>
    %417 = vector.extract_strided_slice %401 {offsets = [1, 0], sizes = [4, 128], strides = [1, 1]} : vector<5x128xf32> to vector<4x128xf32>
    %418 = vector.extract_strided_slice %99 {offsets = [8, 0], sizes = [1, 128], strides = [1, 1]} : vector<9x128xf32> to vector<1x128xf32>
    %419 = vector.shape_cast %418 : vector<1x128xf32> to vector<128xf32>
    %420 = vector.shape_cast %419 : vector<128xf32> to vector<1x128xf32>
    %421 = vector.broadcast %420 : vector<1x128xf32> to vector<4x128xf32>
    %422 = arith.mulf %417, %421 : vector<4x128xf32>
    %423 = arith.addf %416, %422 : vector<4x128xf32>
    %424 = vector.broadcast %100 : vector<1x128xf32> to vector<4x128xf32>
    %425 = arith.mulf %423, %424 : vector<4x128xf32>
    %426 = vector.broadcast %101 : vector<1x128xf32> to vector<4x128xf32>
    %427 = arith.addf %425, %426 : vector<4x128xf32>
    %cst_169 = arith.constant 0.000000e+00 : f32
    %cst_170 = arith.constant 6.000000e+00 : f32
    %428 = vector.broadcast %cst_169 : f32 to vector<4x128xf32>
    %429 = arith.maximumf %428, %427 : vector<4x128xf32>
    %430 = vector.broadcast %cst_170 : f32 to vector<4x128xf32>
    %431 = arith.minimumf %430, %429 : vector<4x128xf32>
    %432 = arith.truncf %431 : vector<4x128xf32> to vector<4x128xbf16>
    %c12 = arith.constant 12 : index
    %c0_171 = arith.constant 0 : index
    %433 = vector.load %arg27[%c12, %c0_171] : memref<16x128xbf16, #tpu.memory_space<vmem>>, vector<4x128xbf16>
    tpu.vector_store %arg27[%c12, %c0_171], %432 {strides = array<i32>} : memref<16x128xbf16, #tpu.memory_space<vmem>>, vector<4x128xbf16>,
    %c0_172 = arith.constant 0 : index
    %c0_173 = arith.constant 0 : index
    %434 = vector.load %arg27[%c0_172, %c0_173] : memref<16x128xbf16, #tpu.memory_space<vmem>>, vector<16x128xbf16>
    %c0_174 = arith.constant 0 : index
    %c0_175 = arith.constant 0 : index
    %435 = vector.load %arg9[%c0_174, %c0_175] : memref<128x128xbf16, #tpu.memory_space<vmem>>, vector<128x128xbf16>
    %cst_176 = arith.constant dense<0.000000e+00> : vector<16x128xf32>
    %436 = tpu.matmul %434, %435, %cst_176 {dimension_numbers = #tpu.dot_dimension_numbers<[1], [0], [0], [1], [0, 0, 1, 1], [], []>} : vector<16x128xbf16>, vector<128x128xbf16>, vector<16x128xf32> -> vector<16x128xf32>
    %c0_177 = arith.constant 0 : index
    %c0_178 = arith.constant 0 : index
    %437 = vector.load %arg10[%c0_177, %c0_178] : memref<1x128xf32, #tpu.memory_space<vmem>>, vector<1x128xf32>
    %438 = vector.broadcast %437 : vector<1x128xf32> to vector<16x128xf32>
    %439 = arith.mulf %436, %438 : vector<16x128xf32>
    %c0_179 = arith.constant 0 : index
    %c0_180 = arith.constant 0 : index
    %440 = vector.load %arg11[%c0_179, %c0_180] : memref<1x128xf32, #tpu.memory_space<vmem>>, vector<1x128xf32>
    %441 = vector.broadcast %440 : vector<1x128xf32> to vector<16x128xf32>
    %442 = arith.addf %439, %441 : vector<16x128xf32>
    %443 = arith.truncf %442 : vector<16x128xf32> to vector<16x128xbf16>
    %c0_181 = arith.constant 0 : index
    %c0_182 = arith.constant 0 : index
    %444 = vector.load %arg28[%c0_181, %c0_182] : memref<16x128xbf16, #tpu.memory_space<vmem>>, vector<16x128xbf16>
    tpu.vector_store %arg28[%c0_181, %c0_182], %443 {strides = array<i32>} : memref<16x128xbf16, #tpu.memory_space<vmem>>, vector<16x128xbf16>,
    %c0_183 = arith.constant 0 : index
    %c0_184 = arith.constant 0 : index
    %445 = vector.load %arg28[%c0_183, %c0_184] : memref<16x128xbf16, #tpu.memory_space<vmem>>, vector<16x128xbf16>
    %c0_185 = arith.constant 0 : index
    %c0_186 = arith.constant 0 : index
    %446 = vector.load %arg12[%c0_185, %c0_186] : memref<128x128xbf16, #tpu.memory_space<vmem>>, vector<128x128xbf16>
    %c0_187 = arith.constant 0 : index
    %c0_188 = arith.constant 0 : index
    %447 = vector.load %arg13[%c0_187, %c0_188] : memref<1x128xf32, #tpu.memory_space<vmem>>, vector<1x128xf32>
    %c0_189 = arith.constant 0 : index
    %c0_190 = arith.constant 0 : index
    %448 = vector.load %arg14[%c0_189, %c0_190] : memref<1x128xf32, #tpu.memory_space<vmem>>, vector<1x128xf32>
    %cst_191 = arith.constant 0.000000e+00 : f32
    %449 = vector.broadcast %cst_191 : f32 to vector<1x6x128xf32>
    %c0_192 = arith.constant 0 : index
    %c0_193 = arith.constant 0 : index
    %c0_194 = arith.constant 0 : index
    %450 = vector.load %arg29[%c0_192, %c0_193, %c0_194] : memref<6x6x128xf32, #tpu.memory_space<vmem>>, vector<1x6x128xf32>
    tpu.vector_store %arg29[%c0_192, %c0_193, %c0_194], %449 {strides = array<i32>} : memref<6x6x128xf32, #tpu.memory_space<vmem>>, vector<1x6x128xf32>,
    %cst_195 = arith.constant 0.000000e+00 : f32
    %451 = vector.broadcast %cst_195 : f32 to vector<1x6x128xf32>
    %c5_196 = arith.constant 5 : index
    %c0_197 = arith.constant 0 : index
    %c0_198 = arith.constant 0 : index
    %452 = vector.load %arg29[%c5_196, %c0_197, %c0_198] : memref<6x6x128xf32, #tpu.memory_space<vmem>>, vector<1x6x128xf32>
    tpu.vector_store %arg29[%c5_196, %c0_197, %c0_198], %451 {strides = array<i32>} : memref<6x6x128xf32, #tpu.memory_space<vmem>>, vector<1x6x128xf32>,
    %cst_199 = arith.constant 0.000000e+00 : f32
    %453 = vector.broadcast %cst_199 : f32 to vector<6x1x128xf32>
    %c0_200 = arith.constant 0 : index
    %c0_201 = arith.constant 0 : index
    %c0_202 = arith.constant 0 : index
    %454 = vector.load %arg29[%c0_200, %c0_201, %c0_202] : memref<6x6x128xf32, #tpu.memory_space<vmem>>, vector<6x1x128xf32>
    tpu.vector_store %arg29[%c0_200, %c0_201, %c0_202], %453 {strides = array<i32>} : memref<6x6x128xf32, #tpu.memory_space<vmem>>, vector<6x1x128xf32>,
    %cst_203 = arith.constant 0.000000e+00 : f32
    %455 = vector.broadcast %cst_203 : f32 to vector<6x1x128xf32>
    %c0_204 = arith.constant 0 : index
    %c5_205 = arith.constant 5 : index
    %c0_206 = arith.constant 0 : index
    %456 = vector.load %arg29[%c0_204, %c5_205, %c0_206] : memref<6x6x128xf32, #tpu.memory_space<vmem>>, vector<6x1x128xf32>
    tpu.vector_store %arg29[%c0_204, %c5_205, %c0_206], %455 {strides = array<i32>} : memref<6x6x128xf32, #tpu.memory_space<vmem>>, vector<6x1x128xf32>,
    %cst_207 = arith.constant dense<0.000000e+00> : vector<16x128xf32>
    %457 = tpu.matmul %445, %446, %cst_207 {dimension_numbers = #tpu.dot_dimension_numbers<[1], [0], [0], [1], [0, 0, 1, 1], [], []>} : vector<16x128xbf16>, vector<128x128xbf16>, vector<16x128xf32> -> vector<16x128xf32>
    %458 = vector.broadcast %447 : vector<1x128xf32> to vector<16x128xf32>
    %459 = arith.mulf %457, %458 : vector<16x128xf32>
    %460 = vector.broadcast %448 : vector<1x128xf32> to vector<16x128xf32>
    %461 = arith.addf %459, %460 : vector<16x128xf32>
    %cst_208 = arith.constant 0.000000e+00 : f32
    %cst_209 = arith.constant 6.000000e+00 : f32
    %462 = vector.broadcast %cst_208 : f32 to vector<16x128xf32>
    %463 = arith.maximumf %462, %461 : vector<16x128xf32>
    %464 = vector.broadcast %cst_209 : f32 to vector<16x128xf32>
    %465 = arith.minimumf %464, %463 : vector<16x128xf32>
    %466 = vector.extract_strided_slice %465 {offsets = [0, 0], sizes = [4, 128], strides = [1, 1]} : vector<16x128xf32> to vector<4x128xf32>
    %c1_210 = arith.constant 1 : index
    %c1_211 = arith.constant 1 : index
    %c0_212 = arith.constant 0 : index
    %467 = vector.load %arg29[%c1_210, %c1_211, %c0_212] : memref<6x6x128xf32, #tpu.memory_space<vmem>>, vector<1x4x128xf32>
    %468 = vector.shape_cast %467 : vector<1x4x128xf32> to vector<4x128xf32>
    %469 = vector.shape_cast %466 : vector<4x128xf32> to vector<1x4x128xf32>
    tpu.vector_store %arg29[%c1_210, %c1_211, %c0_212], %469 {strides = array<i32>} : memref<6x6x128xf32, #tpu.memory_space<vmem>>, vector<1x4x128xf32>,
    %470 = vector.extract_strided_slice %465 {offsets = [4, 0], sizes = [4, 128], strides = [1, 1]} : vector<16x128xf32> to vector<4x128xf32>
    %c2_213 = arith.constant 2 : index
    %c1_214 = arith.constant 1 : index
    %c0_215 = arith.constant 0 : index
    %471 = vector.load %arg29[%c2_213, %c1_214, %c0_215] : memref<6x6x128xf32, #tpu.memory_space<vmem>>, vector<1x4x128xf32>
    %472 = vector.shape_cast %471 : vector<1x4x128xf32> to vector<4x128xf32>
    %473 = vector.shape_cast %470 : vector<4x128xf32> to vector<1x4x128xf32>
    tpu.vector_store %arg29[%c2_213, %c1_214, %c0_215], %473 {strides = array<i32>} : memref<6x6x128xf32, #tpu.memory_space<vmem>>, vector<1x4x128xf32>,
    %474 = vector.extract_strided_slice %465 {offsets = [8, 0], sizes = [4, 128], strides = [1, 1]} : vector<16x128xf32> to vector<4x128xf32>
    %c3_216 = arith.constant 3 : index
    %c1_217 = arith.constant 1 : index
    %c0_218 = arith.constant 0 : index
    %475 = vector.load %arg29[%c3_216, %c1_217, %c0_218] : memref<6x6x128xf32, #tpu.memory_space<vmem>>, vector<1x4x128xf32>
    %476 = vector.shape_cast %475 : vector<1x4x128xf32> to vector<4x128xf32>
    %477 = vector.shape_cast %474 : vector<4x128xf32> to vector<1x4x128xf32>
    tpu.vector_store %arg29[%c3_216, %c1_217, %c0_218], %477 {strides = array<i32>} : memref<6x6x128xf32, #tpu.memory_space<vmem>>, vector<1x4x128xf32>,
    %478 = vector.extract_strided_slice %465 {offsets = [12, 0], sizes = [4, 128], strides = [1, 1]} : vector<16x128xf32> to vector<4x128xf32>
    %c4_219 = arith.constant 4 : index
    %c1_220 = arith.constant 1 : index
    %c0_221 = arith.constant 0 : index
    %479 = vector.load %arg29[%c4_219, %c1_220, %c0_221] : memref<6x6x128xf32, #tpu.memory_space<vmem>>, vector<1x4x128xf32>
    %480 = vector.shape_cast %479 : vector<1x4x128xf32> to vector<4x128xf32>
    %481 = vector.shape_cast %478 : vector<4x128xf32> to vector<1x4x128xf32>
    tpu.vector_store %arg29[%c4_219, %c1_220, %c0_221], %481 {strides = array<i32>} : memref<6x6x128xf32, #tpu.memory_space<vmem>>, vector<1x4x128xf32>,
    %c0_222 = arith.constant 0 : index
    %c0_223 = arith.constant 0 : index
    %482 = vector.load %arg15[%c0_222, %c0_223] : memref<9x128xf32, #tpu.memory_space<vmem>>, vector<9x128xf32>
    %c0_224 = arith.constant 0 : index
    %c0_225 = arith.constant 0 : index
    %483 = vector.load %arg16[%c0_224, %c0_225] : memref<1x128xf32, #tpu.memory_space<vmem>>, vector<1x128xf32>
    %c0_226 = arith.constant 0 : index
    %c0_227 = arith.constant 0 : index
    %484 = vector.load %arg17[%c0_226, %c0_227] : memref<1x128xf32, #tpu.memory_space<vmem>>, vector<1x128xf32>
    %cst_228 = arith.constant 0.000000e+00 : f32
    %485 = vector.broadcast %cst_228 : f32 to vector<4x128xf32>
    %c0_229 = arith.constant 0 : index
    %c0_230 = arith.constant 0 : index
    %c0_231 = arith.constant 0 : index
    %486 = vector.load %arg29[%c0_229, %c0_230, %c0_231] : memref<6x6x128xf32, #tpu.memory_space<vmem>>, vector<1x6x128xf32>
    %487 = vector.shape_cast %486 : vector<1x6x128xf32> to vector<6x128xf32>
    %488 = vector.extract_strided_slice %487 {offsets = [0, 0], sizes = [4, 128], strides = [1, 1]} : vector<6x128xf32> to vector<4x128xf32>
    %489 = vector.extract_strided_slice %482 {offsets = [0, 0], sizes = [1, 128], strides = [1, 1]} : vector<9x128xf32> to vector<1x128xf32>
    %490 = vector.shape_cast %489 : vector<1x128xf32> to vector<128xf32>
    %491 = vector.shape_cast %490 : vector<128xf32> to vector<1x128xf32>
    %492 = vector.broadcast %491 : vector<1x128xf32> to vector<4x128xf32>
    %493 = arith.mulf %488, %492 : vector<4x128xf32>
    %494 = arith.addf %485, %493 : vector<4x128xf32>
    %495 = vector.extract_strided_slice %487 {offsets = [1, 0], sizes = [4, 128], strides = [1, 1]} : vector<6x128xf32> to vector<4x128xf32>
    %496 = vector.extract_strided_slice %482 {offsets = [1, 0], sizes = [1, 128], strides = [1, 1]} : vector<9x128xf32> to vector<1x128xf32>
    %497 = vector.shape_cast %496 : vector<1x128xf32> to vector<128xf32>
    %498 = vector.shape_cast %497 : vector<128xf32> to vector<1x128xf32>
    %499 = vector.broadcast %498 : vector<1x128xf32> to vector<4x128xf32>
    %500 = arith.mulf %495, %499 : vector<4x128xf32>
    %501 = arith.addf %494, %500 : vector<4x128xf32>
    %502 = vector.extract_strided_slice %487 {offsets = [2, 0], sizes = [4, 128], strides = [1, 1]} : vector<6x128xf32> to vector<4x128xf32>
    %503 = vector.extract_strided_slice %482 {offsets = [2, 0], sizes = [1, 128], strides = [1, 1]} : vector<9x128xf32> to vector<1x128xf32>
    %504 = vector.shape_cast %503 : vector<1x128xf32> to vector<128xf32>
    %505 = vector.shape_cast %504 : vector<128xf32> to vector<1x128xf32>
    %506 = vector.broadcast %505 : vector<1x128xf32> to vector<4x128xf32>
    %507 = arith.mulf %502, %506 : vector<4x128xf32>
    %508 = arith.addf %501, %507 : vector<4x128xf32>
    %c1_232 = arith.constant 1 : index
    %c0_233 = arith.constant 0 : index
    %c0_234 = arith.constant 0 : index
    %509 = vector.load %arg29[%c1_232, %c0_233, %c0_234] : memref<6x6x128xf32, #tpu.memory_space<vmem>>, vector<1x6x128xf32>
    %510 = vector.shape_cast %509 : vector<1x6x128xf32> to vector<6x128xf32>
    %511 = vector.extract_strided_slice %510 {offsets = [0, 0], sizes = [4, 128], strides = [1, 1]} : vector<6x128xf32> to vector<4x128xf32>
    %512 = vector.extract_strided_slice %482 {offsets = [3, 0], sizes = [1, 128], strides = [1, 1]} : vector<9x128xf32> to vector<1x128xf32>
    %513 = vector.shape_cast %512 : vector<1x128xf32> to vector<128xf32>
    %514 = vector.shape_cast %513 : vector<128xf32> to vector<1x128xf32>
    %515 = vector.broadcast %514 : vector<1x128xf32> to vector<4x128xf32>
    %516 = arith.mulf %511, %515 : vector<4x128xf32>
    %517 = arith.addf %508, %516 : vector<4x128xf32>
    %518 = vector.extract_strided_slice %510 {offsets = [1, 0], sizes = [4, 128], strides = [1, 1]} : vector<6x128xf32> to vector<4x128xf32>
    %519 = vector.extract_strided_slice %482 {offsets = [4, 0], sizes = [1, 128], strides = [1, 1]} : vector<9x128xf32> to vector<1x128xf32>
    %520 = vector.shape_cast %519 : vector<1x128xf32> to vector<128xf32>
    %521 = vector.shape_cast %520 : vector<128xf32> to vector<1x128xf32>
    %522 = vector.broadcast %521 : vector<1x128xf32> to vector<4x128xf32>
    %523 = arith.mulf %518, %522 : vector<4x128xf32>
    %524 = arith.addf %517, %523 : vector<4x128xf32>
    %525 = vector.extract_strided_slice %510 {offsets = [2, 0], sizes = [4, 128], strides = [1, 1]} : vector<6x128xf32> to vector<4x128xf32>
    %526 = vector.extract_strided_slice %482 {offsets = [5, 0], sizes = [1, 128], strides = [1, 1]} : vector<9x128xf32> to vector<1x128xf32>
    %527 = vector.shape_cast %526 : vector<1x128xf32> to vector<128xf32>
    %528 = vector.shape_cast %527 : vector<128xf32> to vector<1x128xf32>
    %529 = vector.broadcast %528 : vector<1x128xf32> to vector<4x128xf32>
    %530 = arith.mulf %525, %529 : vector<4x128xf32>
    %531 = arith.addf %524, %530 : vector<4x128xf32>
    %c2_235 = arith.constant 2 : index
    %c0_236 = arith.constant 0 : index
    %c0_237 = arith.constant 0 : index
    %532 = vector.load %arg29[%c2_235, %c0_236, %c0_237] : memref<6x6x128xf32, #tpu.memory_space<vmem>>, vector<1x6x128xf32>
    %533 = vector.shape_cast %532 : vector<1x6x128xf32> to vector<6x128xf32>
    %534 = vector.extract_strided_slice %533 {offsets = [0, 0], sizes = [4, 128], strides = [1, 1]} : vector<6x128xf32> to vector<4x128xf32>
    %535 = vector.extract_strided_slice %482 {offsets = [6, 0], sizes = [1, 128], strides = [1, 1]} : vector<9x128xf32> to vector<1x128xf32>
    %536 = vector.shape_cast %535 : vector<1x128xf32> to vector<128xf32>
    %537 = vector.shape_cast %536 : vector<128xf32> to vector<1x128xf32>
    %538 = vector.broadcast %537 : vector<1x128xf32> to vector<4x128xf32>
    %539 = arith.mulf %534, %538 : vector<4x128xf32>
    %540 = arith.addf %531, %539 : vector<4x128xf32>
    %541 = vector.extract_strided_slice %533 {offsets = [1, 0], sizes = [4, 128], strides = [1, 1]} : vector<6x128xf32> to vector<4x128xf32>
    %542 = vector.extract_strided_slice %482 {offsets = [7, 0], sizes = [1, 128], strides = [1, 1]} : vector<9x128xf32> to vector<1x128xf32>
    %543 = vector.shape_cast %542 : vector<1x128xf32> to vector<128xf32>
    %544 = vector.shape_cast %543 : vector<128xf32> to vector<1x128xf32>
    %545 = vector.broadcast %544 : vector<1x128xf32> to vector<4x128xf32>
    %546 = arith.mulf %541, %545 : vector<4x128xf32>
    %547 = arith.addf %540, %546 : vector<4x128xf32>
    %548 = vector.extract_strided_slice %533 {offsets = [2, 0], sizes = [4, 128], strides = [1, 1]} : vector<6x128xf32> to vector<4x128xf32>
    %549 = vector.extract_strided_slice %482 {offsets = [8, 0], sizes = [1, 128], strides = [1, 1]} : vector<9x128xf32> to vector<1x128xf32>
    %550 = vector.shape_cast %549 : vector<1x128xf32> to vector<128xf32>
    %551 = vector.shape_cast %550 : vector<128xf32> to vector<1x128xf32>
    %552 = vector.broadcast %551 : vector<1x128xf32> to vector<4x128xf32>
    %553 = arith.mulf %548, %552 : vector<4x128xf32>
    %554 = arith.addf %547, %553 : vector<4x128xf32>
    %555 = vector.broadcast %483 : vector<1x128xf32> to vector<4x128xf32>
    %556 = arith.mulf %554, %555 : vector<4x128xf32>
    %557 = vector.broadcast %484 : vector<1x128xf32> to vector<4x128xf32>
    %558 = arith.addf %556, %557 : vector<4x128xf32>
    %cst_238 = arith.constant 0.000000e+00 : f32
    %cst_239 = arith.constant 6.000000e+00 : f32
    %559 = vector.broadcast %cst_238 : f32 to vector<4x128xf32>
    %560 = arith.maximumf %559, %558 : vector<4x128xf32>
    %561 = vector.broadcast %cst_239 : f32 to vector<4x128xf32>
    %562 = arith.minimumf %561, %560 : vector<4x128xf32>
    %563 = arith.truncf %562 : vector<4x128xf32> to vector<4x128xbf16>
    %c0_240 = arith.constant 0 : index
    %c0_241 = arith.constant 0 : index
    %564 = vector.load %arg30[%c0_240, %c0_241] : memref<16x128xbf16, #tpu.memory_space<vmem>>, vector<4x128xbf16>
    tpu.vector_store %arg30[%c0_240, %c0_241], %563 {strides = array<i32>} : memref<16x128xbf16, #tpu.memory_space<vmem>>, vector<4x128xbf16>,
    %cst_242 = arith.constant 0.000000e+00 : f32
    %565 = vector.broadcast %cst_242 : f32 to vector<4x128xf32>
    %c1_243 = arith.constant 1 : index
    %c0_244 = arith.constant 0 : index
    %c0_245 = arith.constant 0 : index
    %566 = vector.load %arg29[%c1_243, %c0_244, %c0_245] : memref<6x6x128xf32, #tpu.memory_space<vmem>>, vector<1x6x128xf32>
    %567 = vector.shape_cast %566 : vector<1x6x128xf32> to vector<6x128xf32>
    %568 = vector.extract_strided_slice %567 {offsets = [0, 0], sizes = [4, 128], strides = [1, 1]} : vector<6x128xf32> to vector<4x128xf32>
    %569 = vector.extract_strided_slice %482 {offsets = [0, 0], sizes = [1, 128], strides = [1, 1]} : vector<9x128xf32> to vector<1x128xf32>
    %570 = vector.shape_cast %569 : vector<1x128xf32> to vector<128xf32>
    %571 = vector.shape_cast %570 : vector<128xf32> to vector<1x128xf32>
    %572 = vector.broadcast %571 : vector<1x128xf32> to vector<4x128xf32>
    %573 = arith.mulf %568, %572 : vector<4x128xf32>
    %574 = arith.addf %565, %573 : vector<4x128xf32>
    %575 = vector.extract_strided_slice %567 {offsets = [1, 0], sizes = [4, 128], strides = [1, 1]} : vector<6x128xf32> to vector<4x128xf32>
    %576 = vector.extract_strided_slice %482 {offsets = [1, 0], sizes = [1, 128], strides = [1, 1]} : vector<9x128xf32> to vector<1x128xf32>
    %577 = vector.shape_cast %576 : vector<1x128xf32> to vector<128xf32>
    %578 = vector.shape_cast %577 : vector<128xf32> to vector<1x128xf32>
    %579 = vector.broadcast %578 : vector<1x128xf32> to vector<4x128xf32>
    %580 = arith.mulf %575, %579 : vector<4x128xf32>
    %581 = arith.addf %574, %580 : vector<4x128xf32>
    %582 = vector.extract_strided_slice %567 {offsets = [2, 0], sizes = [4, 128], strides = [1, 1]} : vector<6x128xf32> to vector<4x128xf32>
    %583 = vector.extract_strided_slice %482 {offsets = [2, 0], sizes = [1, 128], strides = [1, 1]} : vector<9x128xf32> to vector<1x128xf32>
    %584 = vector.shape_cast %583 : vector<1x128xf32> to vector<128xf32>
    %585 = vector.shape_cast %584 : vector<128xf32> to vector<1x128xf32>
    %586 = vector.broadcast %585 : vector<1x128xf32> to vector<4x128xf32>
    %587 = arith.mulf %582, %586 : vector<4x128xf32>
    %588 = arith.addf %581, %587 : vector<4x128xf32>
    %c2_246 = arith.constant 2 : index
    %c0_247 = arith.constant 0 : index
    %c0_248 = arith.constant 0 : index
    %589 = vector.load %arg29[%c2_246, %c0_247, %c0_248] : memref<6x6x128xf32, #tpu.memory_space<vmem>>, vector<1x6x128xf32>
    %590 = vector.shape_cast %589 : vector<1x6x128xf32> to vector<6x128xf32>
    %591 = vector.extract_strided_slice %590 {offsets = [0, 0], sizes = [4, 128], strides = [1, 1]} : vector<6x128xf32> to vector<4x128xf32>
    %592 = vector.extract_strided_slice %482 {offsets = [3, 0], sizes = [1, 128], strides = [1, 1]} : vector<9x128xf32> to vector<1x128xf32>
    %593 = vector.shape_cast %592 : vector<1x128xf32> to vector<128xf32>
    %594 = vector.shape_cast %593 : vector<128xf32> to vector<1x128xf32>
    %595 = vector.broadcast %594 : vector<1x128xf32> to vector<4x128xf32>
    %596 = arith.mulf %591, %595 : vector<4x128xf32>
    %597 = arith.addf %588, %596 : vector<4x128xf32>
    %598 = vector.extract_strided_slice %590 {offsets = [1, 0], sizes = [4, 128], strides = [1, 1]} : vector<6x128xf32> to vector<4x128xf32>
    %599 = vector.extract_strided_slice %482 {offsets = [4, 0], sizes = [1, 128], strides = [1, 1]} : vector<9x128xf32> to vector<1x128xf32>
    %600 = vector.shape_cast %599 : vector<1x128xf32> to vector<128xf32>
    %601 = vector.shape_cast %600 : vector<128xf32> to vector<1x128xf32>
    %602 = vector.broadcast %601 : vector<1x128xf32> to vector<4x128xf32>
    %603 = arith.mulf %598, %602 : vector<4x128xf32>
    %604 = arith.addf %597, %603 : vector<4x128xf32>
    %605 = vector.extract_strided_slice %590 {offsets = [2, 0], sizes = [4, 128], strides = [1, 1]} : vector<6x128xf32> to vector<4x128xf32>
    %606 = vector.extract_strided_slice %482 {offsets = [5, 0], sizes = [1, 128], strides = [1, 1]} : vector<9x128xf32> to vector<1x128xf32>
    %607 = vector.shape_cast %606 : vector<1x128xf32> to vector<128xf32>
    %608 = vector.shape_cast %607 : vector<128xf32> to vector<1x128xf32>
    %609 = vector.broadcast %608 : vector<1x128xf32> to vector<4x128xf32>
    %610 = arith.mulf %605, %609 : vector<4x128xf32>
    %611 = arith.addf %604, %610 : vector<4x128xf32>
    %c3_249 = arith.constant 3 : index
    %c0_250 = arith.constant 0 : index
    %c0_251 = arith.constant 0 : index
    %612 = vector.load %arg29[%c3_249, %c0_250, %c0_251] : memref<6x6x128xf32, #tpu.memory_space<vmem>>, vector<1x6x128xf32>
    %613 = vector.shape_cast %612 : vector<1x6x128xf32> to vector<6x128xf32>
    %614 = vector.extract_strided_slice %613 {offsets = [0, 0], sizes = [4, 128], strides = [1, 1]} : vector<6x128xf32> to vector<4x128xf32>
    %615 = vector.extract_strided_slice %482 {offsets = [6, 0], sizes = [1, 128], strides = [1, 1]} : vector<9x128xf32> to vector<1x128xf32>
    %616 = vector.shape_cast %615 : vector<1x128xf32> to vector<128xf32>
    %617 = vector.shape_cast %616 : vector<128xf32> to vector<1x128xf32>
    %618 = vector.broadcast %617 : vector<1x128xf32> to vector<4x128xf32>
    %619 = arith.mulf %614, %618 : vector<4x128xf32>
    %620 = arith.addf %611, %619 : vector<4x128xf32>
    %621 = vector.extract_strided_slice %613 {offsets = [1, 0], sizes = [4, 128], strides = [1, 1]} : vector<6x128xf32> to vector<4x128xf32>
    %622 = vector.extract_strided_slice %482 {offsets = [7, 0], sizes = [1, 128], strides = [1, 1]} : vector<9x128xf32> to vector<1x128xf32>
    %623 = vector.shape_cast %622 : vector<1x128xf32> to vector<128xf32>
    %624 = vector.shape_cast %623 : vector<128xf32> to vector<1x128xf32>
    %625 = vector.broadcast %624 : vector<1x128xf32> to vector<4x128xf32>
    %626 = arith.mulf %621, %625 : vector<4x128xf32>
    %627 = arith.addf %620, %626 : vector<4x128xf32>
    %628 = vector.extract_strided_slice %613 {offsets = [2, 0], sizes = [4, 128], strides = [1, 1]} : vector<6x128xf32> to vector<4x128xf32>
    %629 = vector.extract_strided_slice %482 {offsets = [8, 0], sizes = [1, 128], strides = [1, 1]} : vector<9x128xf32> to vector<1x128xf32>
    %630 = vector.shape_cast %629 : vector<1x128xf32> to vector<128xf32>
    %631 = vector.shape_cast %630 : vector<128xf32> to vector<1x128xf32>
    %632 = vector.broadcast %631 : vector<1x128xf32> to vector<4x128xf32>
    %633 = arith.mulf %628, %632 : vector<4x128xf32>
    %634 = arith.addf %627, %633 : vector<4x128xf32>
    %635 = vector.broadcast %483 : vector<1x128xf32> to vector<4x128xf32>
    %636 = arith.mulf %634, %635 : vector<4x128xf32>
    %637 = vector.broadcast %484 : vector<1x128xf32> to vector<4x128xf32>
    %638 = arith.addf %636, %637 : vector<4x128xf32>
    %cst_252 = arith.constant 0.000000e+00 : f32
    %cst_253 = arith.constant 6.000000e+00 : f32
    %639 = vector.broadcast %cst_252 : f32 to vector<4x128xf32>
    %640 = arith.maximumf %639, %638 : vector<4x128xf32>
    %641 = vector.broadcast %cst_253 : f32 to vector<4x128xf32>
    %642 = arith.minimumf %641, %640 : vector<4x128xf32>
    %643 = arith.truncf %642 : vector<4x128xf32> to vector<4x128xbf16>
    %c4_254 = arith.constant 4 : index
    %c0_255 = arith.constant 0 : index
    %644 = vector.load %arg30[%c4_254, %c0_255] : memref<16x128xbf16, #tpu.memory_space<vmem>>, vector<4x128xbf16>
    tpu.vector_store %arg30[%c4_254, %c0_255], %643 {strides = array<i32>} : memref<16x128xbf16, #tpu.memory_space<vmem>>, vector<4x128xbf16>,
    %cst_256 = arith.constant 0.000000e+00 : f32
    %645 = vector.broadcast %cst_256 : f32 to vector<4x128xf32>
    %c2_257 = arith.constant 2 : index
    %c0_258 = arith.constant 0 : index
    %c0_259 = arith.constant 0 : index
    %646 = vector.load %arg29[%c2_257, %c0_258, %c0_259] : memref<6x6x128xf32, #tpu.memory_space<vmem>>, vector<1x6x128xf32>
    %647 = vector.shape_cast %646 : vector<1x6x128xf32> to vector<6x128xf32>
    %648 = vector.extract_strided_slice %647 {offsets = [0, 0], sizes = [4, 128], strides = [1, 1]} : vector<6x128xf32> to vector<4x128xf32>
    %649 = vector.extract_strided_slice %482 {offsets = [0, 0], sizes = [1, 128], strides = [1, 1]} : vector<9x128xf32> to vector<1x128xf32>
    %650 = vector.shape_cast %649 : vector<1x128xf32> to vector<128xf32>
    %651 = vector.shape_cast %650 : vector<128xf32> to vector<1x128xf32>
    %652 = vector.broadcast %651 : vector<1x128xf32> to vector<4x128xf32>
    %653 = arith.mulf %648, %652 : vector<4x128xf32>
    %654 = arith.addf %645, %653 : vector<4x128xf32>
    %655 = vector.extract_strided_slice %647 {offsets = [1, 0], sizes = [4, 128], strides = [1, 1]} : vector<6x128xf32> to vector<4x128xf32>
    %656 = vector.extract_strided_slice %482 {offsets = [1, 0], sizes = [1, 128], strides = [1, 1]} : vector<9x128xf32> to vector<1x128xf32>
    %657 = vector.shape_cast %656 : vector<1x128xf32> to vector<128xf32>
    %658 = vector.shape_cast %657 : vector<128xf32> to vector<1x128xf32>
    %659 = vector.broadcast %658 : vector<1x128xf32> to vector<4x128xf32>
    %660 = arith.mulf %655, %659 : vector<4x128xf32>
    %661 = arith.addf %654, %660 : vector<4x128xf32>
    %662 = vector.extract_strided_slice %647 {offsets = [2, 0], sizes = [4, 128], strides = [1, 1]} : vector<6x128xf32> to vector<4x128xf32>
    %663 = vector.extract_strided_slice %482 {offsets = [2, 0], sizes = [1, 128], strides = [1, 1]} : vector<9x128xf32> to vector<1x128xf32>
    %664 = vector.shape_cast %663 : vector<1x128xf32> to vector<128xf32>
    %665 = vector.shape_cast %664 : vector<128xf32> to vector<1x128xf32>
    %666 = vector.broadcast %665 : vector<1x128xf32> to vector<4x128xf32>
    %667 = arith.mulf %662, %666 : vector<4x128xf32>
    %668 = arith.addf %661, %667 : vector<4x128xf32>
    %c3_260 = arith.constant 3 : index
    %c0_261 = arith.constant 0 : index
    %c0_262 = arith.constant 0 : index
    %669 = vector.load %arg29[%c3_260, %c0_261, %c0_262] : memref<6x6x128xf32, #tpu.memory_space<vmem>>, vector<1x6x128xf32>
    %670 = vector.shape_cast %669 : vector<1x6x128xf32> to vector<6x128xf32>
    %671 = vector.extract_strided_slice %670 {offsets = [0, 0], sizes = [4, 128], strides = [1, 1]} : vector<6x128xf32> to vector<4x128xf32>
    %672 = vector.extract_strided_slice %482 {offsets = [3, 0], sizes = [1, 128], strides = [1, 1]} : vector<9x128xf32> to vector<1x128xf32>
    %673 = vector.shape_cast %672 : vector<1x128xf32> to vector<128xf32>
    %674 = vector.shape_cast %673 : vector<128xf32> to vector<1x128xf32>
    %675 = vector.broadcast %674 : vector<1x128xf32> to vector<4x128xf32>
    %676 = arith.mulf %671, %675 : vector<4x128xf32>
    %677 = arith.addf %668, %676 : vector<4x128xf32>
    %678 = vector.extract_strided_slice %670 {offsets = [1, 0], sizes = [4, 128], strides = [1, 1]} : vector<6x128xf32> to vector<4x128xf32>
    %679 = vector.extract_strided_slice %482 {offsets = [4, 0], sizes = [1, 128], strides = [1, 1]} : vector<9x128xf32> to vector<1x128xf32>
    %680 = vector.shape_cast %679 : vector<1x128xf32> to vector<128xf32>
    %681 = vector.shape_cast %680 : vector<128xf32> to vector<1x128xf32>
    %682 = vector.broadcast %681 : vector<1x128xf32> to vector<4x128xf32>
    %683 = arith.mulf %678, %682 : vector<4x128xf32>
    %684 = arith.addf %677, %683 : vector<4x128xf32>
    %685 = vector.extract_strided_slice %670 {offsets = [2, 0], sizes = [4, 128], strides = [1, 1]} : vector<6x128xf32> to vector<4x128xf32>
    %686 = vector.extract_strided_slice %482 {offsets = [5, 0], sizes = [1, 128], strides = [1, 1]} : vector<9x128xf32> to vector<1x128xf32>
    %687 = vector.shape_cast %686 : vector<1x128xf32> to vector<128xf32>
    %688 = vector.shape_cast %687 : vector<128xf32> to vector<1x128xf32>
    %689 = vector.broadcast %688 : vector<1x128xf32> to vector<4x128xf32>
    %690 = arith.mulf %685, %689 : vector<4x128xf32>
    %691 = arith.addf %684, %690 : vector<4x128xf32>
    %c4_263 = arith.constant 4 : index
    %c0_264 = arith.constant 0 : index
    %c0_265 = arith.constant 0 : index
    %692 = vector.load %arg29[%c4_263, %c0_264, %c0_265] : memref<6x6x128xf32, #tpu.memory_space<vmem>>, vector<1x6x128xf32>
    %693 = vector.shape_cast %692 : vector<1x6x128xf32> to vector<6x128xf32>
    %694 = vector.extract_strided_slice %693 {offsets = [0, 0], sizes = [4, 128], strides = [1, 1]} : vector<6x128xf32> to vector<4x128xf32>
    %695 = vector.extract_strided_slice %482 {offsets = [6, 0], sizes = [1, 128], strides = [1, 1]} : vector<9x128xf32> to vector<1x128xf32>
    %696 = vector.shape_cast %695 : vector<1x128xf32> to vector<128xf32>
    %697 = vector.shape_cast %696 : vector<128xf32> to vector<1x128xf32>
    %698 = vector.broadcast %697 : vector<1x128xf32> to vector<4x128xf32>
    %699 = arith.mulf %694, %698 : vector<4x128xf32>
    %700 = arith.addf %691, %699 : vector<4x128xf32>
    %701 = vector.extract_strided_slice %693 {offsets = [1, 0], sizes = [4, 128], strides = [1, 1]} : vector<6x128xf32> to vector<4x128xf32>
    %702 = vector.extract_strided_slice %482 {offsets = [7, 0], sizes = [1, 128], strides = [1, 1]} : vector<9x128xf32> to vector<1x128xf32>
    %703 = vector.shape_cast %702 : vector<1x128xf32> to vector<128xf32>
    %704 = vector.shape_cast %703 : vector<128xf32> to vector<1x128xf32>
    %705 = vector.broadcast %704 : vector<1x128xf32> to vector<4x128xf32>
    %706 = arith.mulf %701, %705 : vector<4x128xf32>
    %707 = arith.addf %700, %706 : vector<4x128xf32>
    %708 = vector.extract_strided_slice %693 {offsets = [2, 0], sizes = [4, 128], strides = [1, 1]} : vector<6x128xf32> to vector<4x128xf32>
    %709 = vector.extract_strided_slice %482 {offsets = [8, 0], sizes = [1, 128], strides = [1, 1]} : vector<9x128xf32> to vector<1x128xf32>
    %710 = vector.shape_cast %709 : vector<1x128xf32> to vector<128xf32>
    %711 = vector.shape_cast %710 : vector<128xf32> to vector<1x128xf32>
    %712 = vector.broadcast %711 : vector<1x128xf32> to vector<4x128xf32>
    %713 = arith.mulf %708, %712 : vector<4x128xf32>
    %714 = arith.addf %707, %713 : vector<4x128xf32>
    %715 = vector.broadcast %483 : vector<1x128xf32> to vector<4x128xf32>
    %716 = arith.mulf %714, %715 : vector<4x128xf32>
    %717 = vector.broadcast %484 : vector<1x128xf32> to vector<4x128xf32>
    %718 = arith.addf %716, %717 : vector<4x128xf32>
    %cst_266 = arith.constant 0.000000e+00 : f32
    %cst_267 = arith.constant 6.000000e+00 : f32
    %719 = vector.broadcast %cst_266 : f32 to vector<4x128xf32>
    %720 = arith.maximumf %719, %718 : vector<4x128xf32>
    %721 = vector.broadcast %cst_267 : f32 to vector<4x128xf32>
    %722 = arith.minimumf %721, %720 : vector<4x128xf32>
    %723 = arith.truncf %722 : vector<4x128xf32> to vector<4x128xbf16>
    %c8_268 = arith.constant 8 : index
    %c0_269 = arith.constant 0 : index
    %724 = vector.load %arg30[%c8_268, %c0_269] : memref<16x128xbf16, #tpu.memory_space<vmem>>, vector<4x128xbf16>
    tpu.vector_store %arg30[%c8_268, %c0_269], %723 {strides = array<i32>} : memref<16x128xbf16, #tpu.memory_space<vmem>>, vector<4x128xbf16>,
    %cst_270 = arith.constant 0.000000e+00 : f32
    %725 = vector.broadcast %cst_270 : f32 to vector<4x128xf32>
    %c3_271 = arith.constant 3 : index
    %c0_272 = arith.constant 0 : index
    %c0_273 = arith.constant 0 : index
    %726 = vector.load %arg29[%c3_271, %c0_272, %c0_273] : memref<6x6x128xf32, #tpu.memory_space<vmem>>, vector<1x6x128xf32>
    %727 = vector.shape_cast %726 : vector<1x6x128xf32> to vector<6x128xf32>
    %728 = vector.extract_strided_slice %727 {offsets = [0, 0], sizes = [4, 128], strides = [1, 1]} : vector<6x128xf32> to vector<4x128xf32>
    %729 = vector.extract_strided_slice %482 {offsets = [0, 0], sizes = [1, 128], strides = [1, 1]} : vector<9x128xf32> to vector<1x128xf32>
    %730 = vector.shape_cast %729 : vector<1x128xf32> to vector<128xf32>
    %731 = vector.shape_cast %730 : vector<128xf32> to vector<1x128xf32>
    %732 = vector.broadcast %731 : vector<1x128xf32> to vector<4x128xf32>
    %733 = arith.mulf %728, %732 : vector<4x128xf32>
    %734 = arith.addf %725, %733 : vector<4x128xf32>
    %735 = vector.extract_strided_slice %727 {offsets = [1, 0], sizes = [4, 128], strides = [1, 1]} : vector<6x128xf32> to vector<4x128xf32>
    %736 = vector.extract_strided_slice %482 {offsets = [1, 0], sizes = [1, 128], strides = [1, 1]} : vector<9x128xf32> to vector<1x128xf32>
    %737 = vector.shape_cast %736 : vector<1x128xf32> to vector<128xf32>
    %738 = vector.shape_cast %737 : vector<128xf32> to vector<1x128xf32>
    %739 = vector.broadcast %738 : vector<1x128xf32> to vector<4x128xf32>
    %740 = arith.mulf %735, %739 : vector<4x128xf32>
    %741 = arith.addf %734, %740 : vector<4x128xf32>
    %742 = vector.extract_strided_slice %727 {offsets = [2, 0], sizes = [4, 128], strides = [1, 1]} : vector<6x128xf32> to vector<4x128xf32>
    %743 = vector.extract_strided_slice %482 {offsets = [2, 0], sizes = [1, 128], strides = [1, 1]} : vector<9x128xf32> to vector<1x128xf32>
    %744 = vector.shape_cast %743 : vector<1x128xf32> to vector<128xf32>
    %745 = vector.shape_cast %744 : vector<128xf32> to vector<1x128xf32>
    %746 = vector.broadcast %745 : vector<1x128xf32> to vector<4x128xf32>
    %747 = arith.mulf %742, %746 : vector<4x128xf32>
    %748 = arith.addf %741, %747 : vector<4x128xf32>
    %c4_274 = arith.constant 4 : index
    %c0_275 = arith.constant 0 : index
    %c0_276 = arith.constant 0 : index
    %749 = vector.load %arg29[%c4_274, %c0_275, %c0_276] : memref<6x6x128xf32, #tpu.memory_space<vmem>>, vector<1x6x128xf32>
    %750 = vector.shape_cast %749 : vector<1x6x128xf32> to vector<6x128xf32>
    %751 = vector.extract_strided_slice %750 {offsets = [0, 0], sizes = [4, 128], strides = [1, 1]} : vector<6x128xf32> to vector<4x128xf32>
    %752 = vector.extract_strided_slice %482 {offsets = [3, 0], sizes = [1, 128], strides = [1, 1]} : vector<9x128xf32> to vector<1x128xf32>
    %753 = vector.shape_cast %752 : vector<1x128xf32> to vector<128xf32>
    %754 = vector.shape_cast %753 : vector<128xf32> to vector<1x128xf32>
    %755 = vector.broadcast %754 : vector<1x128xf32> to vector<4x128xf32>
    %756 = arith.mulf %751, %755 : vector<4x128xf32>
    %757 = arith.addf %748, %756 : vector<4x128xf32>
    %758 = vector.extract_strided_slice %750 {offsets = [1, 0], sizes = [4, 128], strides = [1, 1]} : vector<6x128xf32> to vector<4x128xf32>
    %759 = vector.extract_strided_slice %482 {offsets = [4, 0], sizes = [1, 128], strides = [1, 1]} : vector<9x128xf32> to vector<1x128xf32>
    %760 = vector.shape_cast %759 : vector<1x128xf32> to vector<128xf32>
    %761 = vector.shape_cast %760 : vector<128xf32> to vector<1x128xf32>
    %762 = vector.broadcast %761 : vector<1x128xf32> to vector<4x128xf32>
    %763 = arith.mulf %758, %762 : vector<4x128xf32>
    %764 = arith.addf %757, %763 : vector<4x128xf32>
    %765 = vector.extract_strided_slice %750 {offsets = [2, 0], sizes = [4, 128], strides = [1, 1]} : vector<6x128xf32> to vector<4x128xf32>
    %766 = vector.extract_strided_slice %482 {offsets = [5, 0], sizes = [1, 128], strides = [1, 1]} : vector<9x128xf32> to vector<1x128xf32>
    %767 = vector.shape_cast %766 : vector<1x128xf32> to vector<128xf32>
    %768 = vector.shape_cast %767 : vector<128xf32> to vector<1x128xf32>
    %769 = vector.broadcast %768 : vector<1x128xf32> to vector<4x128xf32>
    %770 = arith.mulf %765, %769 : vector<4x128xf32>
    %771 = arith.addf %764, %770 : vector<4x128xf32>
    %c5_277 = arith.constant 5 : index
    %c0_278 = arith.constant 0 : index
    %c0_279 = arith.constant 0 : index
    %772 = vector.load %arg29[%c5_277, %c0_278, %c0_279] : memref<6x6x128xf32, #tpu.memory_space<vmem>>, vector<1x6x128xf32>
    %773 = vector.shape_cast %772 : vector<1x6x128xf32> to vector<6x128xf32>
    %774 = vector.extract_strided_slice %773 {offsets = [0, 0], sizes = [4, 128], strides = [1, 1]} : vector<6x128xf32> to vector<4x128xf32>
    %775 = vector.extract_strided_slice %482 {offsets = [6, 0], sizes = [1, 128], strides = [1, 1]} : vector<9x128xf32> to vector<1x128xf32>
    %776 = vector.shape_cast %775 : vector<1x128xf32> to vector<128xf32>
    %777 = vector.shape_cast %776 : vector<128xf32> to vector<1x128xf32>
    %778 = vector.broadcast %777 : vector<1x128xf32> to vector<4x128xf32>
    %779 = arith.mulf %774, %778 : vector<4x128xf32>
    %780 = arith.addf %771, %779 : vector<4x128xf32>
    %781 = vector.extract_strided_slice %773 {offsets = [1, 0], sizes = [4, 128], strides = [1, 1]} : vector<6x128xf32> to vector<4x128xf32>
    %782 = vector.extract_strided_slice %482 {offsets = [7, 0], sizes = [1, 128], strides = [1, 1]} : vector<9x128xf32> to vector<1x128xf32>
    %783 = vector.shape_cast %782 : vector<1x128xf32> to vector<128xf32>
    %784 = vector.shape_cast %783 : vector<128xf32> to vector<1x128xf32>
    %785 = vector.broadcast %784 : vector<1x128xf32> to vector<4x128xf32>
    %786 = arith.mulf %781, %785 : vector<4x128xf32>
    %787 = arith.addf %780, %786 : vector<4x128xf32>
    %788 = vector.extract_strided_slice %773 {offsets = [2, 0], sizes = [4, 128], strides = [1, 1]} : vector<6x128xf32> to vector<4x128xf32>
    %789 = vector.extract_strided_slice %482 {offsets = [8, 0], sizes = [1, 128], strides = [1, 1]} : vector<9x128xf32> to vector<1x128xf32>
    %790 = vector.shape_cast %789 : vector<1x128xf32> to vector<128xf32>
    %791 = vector.shape_cast %790 : vector<128xf32> to vector<1x128xf32>
    %792 = vector.broadcast %791 : vector<1x128xf32> to vector<4x128xf32>
    %793 = arith.mulf %788, %792 : vector<4x128xf32>
    %794 = arith.addf %787, %793 : vector<4x128xf32>
    %795 = vector.broadcast %483 : vector<1x128xf32> to vector<4x128xf32>
    %796 = arith.mulf %794, %795 : vector<4x128xf32>
    %797 = vector.broadcast %484 : vector<1x128xf32> to vector<4x128xf32>
    %798 = arith.addf %796, %797 : vector<4x128xf32>
    %cst_280 = arith.constant 0.000000e+00 : f32
    %cst_281 = arith.constant 6.000000e+00 : f32
    %799 = vector.broadcast %cst_280 : f32 to vector<4x128xf32>
    %800 = arith.maximumf %799, %798 : vector<4x128xf32>
    %801 = vector.broadcast %cst_281 : f32 to vector<4x128xf32>
    %802 = arith.minimumf %801, %800 : vector<4x128xf32>
    %803 = arith.truncf %802 : vector<4x128xf32> to vector<4x128xbf16>
    %c12_282 = arith.constant 12 : index
    %c0_283 = arith.constant 0 : index
    %804 = vector.load %arg30[%c12_282, %c0_283] : memref<16x128xbf16, #tpu.memory_space<vmem>>, vector<4x128xbf16>
    tpu.vector_store %arg30[%c12_282, %c0_283], %803 {strides = array<i32>} : memref<16x128xbf16, #tpu.memory_space<vmem>>, vector<4x128xbf16>,
    %c0_284 = arith.constant 0 : index
    %c0_285 = arith.constant 0 : index
    %805 = vector.load %arg30[%c0_284, %c0_285] : memref<16x128xbf16, #tpu.memory_space<vmem>>, vector<16x128xbf16>
    %c0_286 = arith.constant 0 : index
    %c0_287 = arith.constant 0 : index
    %806 = vector.load %arg18[%c0_286, %c0_287] : memref<128x128xbf16, #tpu.memory_space<vmem>>, vector<128x128xbf16>
    %cst_288 = arith.constant dense<0.000000e+00> : vector<16x128xf32>
    %807 = tpu.matmul %805, %806, %cst_288 {dimension_numbers = #tpu.dot_dimension_numbers<[1], [0], [0], [1], [0, 0, 1, 1], [], []>} : vector<16x128xbf16>, vector<128x128xbf16>, vector<16x128xf32> -> vector<16x128xf32>
    %c0_289 = arith.constant 0 : index
    %c0_290 = arith.constant 0 : index
    %808 = vector.load %arg19[%c0_289, %c0_290] : memref<1x128xf32, #tpu.memory_space<vmem>>, vector<1x128xf32>
    %809 = vector.broadcast %808 : vector<1x128xf32> to vector<16x128xf32>
    %810 = arith.mulf %807, %809 : vector<16x128xf32>
    %c0_291 = arith.constant 0 : index
    %c0_292 = arith.constant 0 : index
    %811 = vector.load %arg20[%c0_291, %c0_292] : memref<1x128xf32, #tpu.memory_space<vmem>>, vector<1x128xf32>
    %812 = vector.broadcast %811 : vector<1x128xf32> to vector<16x128xf32>
    %813 = arith.addf %810, %812 : vector<16x128xf32>
    %c0_293 = arith.constant 0 : index
    %c0_294 = arith.constant 0 : index
    %814 = vector.load %arg28[%c0_293, %c0_294] : memref<16x128xbf16, #tpu.memory_space<vmem>>, vector<16x128xbf16>
    %815 = arith.extf %814 : vector<16x128xbf16> to vector<16x128xf32>
    %816 = arith.addf %813, %815 : vector<16x128xf32>
    %817 = arith.truncf %816 : vector<16x128xf32> to vector<16x128xbf16>
    %c0_295 = arith.constant 0 : index
    %c0_296 = arith.constant 0 : index
    %818 = vector.load %arg21[%c0_295, %c0_296] : memref<128x128xbf16, #tpu.memory_space<vmem>>, vector<128x128xbf16>
    %cst_297 = arith.constant dense<0.000000e+00> : vector<16x128xf32>
    %819 = tpu.matmul %817, %818, %cst_297 {dimension_numbers = #tpu.dot_dimension_numbers<[1], [0], [0], [1], [0, 0, 1, 1], [], []>} : vector<16x128xbf16>, vector<128x128xbf16>, vector<16x128xf32> -> vector<16x128xf32>
    %c0_298 = arith.constant 0 : index
    %c0_299 = arith.constant 0 : index
    %820 = vector.load %arg22[%c0_298, %c0_299] : memref<1x128xf32, #tpu.memory_space<vmem>>, vector<1x128xf32>
    %821 = vector.broadcast %820 : vector<1x128xf32> to vector<16x128xf32>
    %822 = arith.mulf %819, %821 : vector<16x128xf32>
    %c0_300 = arith.constant 0 : index
    %c0_301 = arith.constant 0 : index
    %823 = vector.load %arg23[%c0_300, %c0_301] : memref<1x128xf32, #tpu.memory_space<vmem>>, vector<1x128xf32>
    %824 = vector.broadcast %823 : vector<1x128xf32> to vector<16x128xf32>
    %825 = arith.addf %822, %824 : vector<16x128xf32>
    %cst_302 = arith.constant 0.000000e+00 : f32
    %cst_303 = arith.constant 6.000000e+00 : f32
    %826 = vector.broadcast %cst_302 : f32 to vector<16x128xf32>
    %827 = arith.maximumf %826, %825 : vector<16x128xf32>
    %828 = vector.broadcast %cst_303 : f32 to vector<16x128xf32>
    %829 = arith.minimumf %828, %827 : vector<16x128xf32>
    %cst_304 = arith.constant dense<0.000000e+00> : vector<128xf32>
    %830 = vector.multi_reduction <add>, %829, %cst_304 [0] : vector<16x128xf32> to vector<128xf32>
    %831 = vector.shape_cast %830 : vector<128xf32> to vector<1x128xf32>
    %cst_305 = arith.constant 6.250000e-02 : f32
    %832 = vector.broadcast %cst_305 : f32 to vector<1x128xf32>
    %833 = arith.mulf %831, %832 : vector<1x128xf32>
    %834 = arith.truncf %833 : vector<1x128xf32> to vector<1x128xbf16>
    %c0_306 = arith.constant 0 : index
    %c0_307 = arith.constant 0 : index
    %c0_308 = arith.constant 0 : index
    %835 = vector.load %arg24[%c0_306, %c0_307, %c0_308] : memref<1x1x128xbf16, #tpu.memory_space<vmem>>, vector<1x1x128xbf16>
    %836 = vector.shape_cast %835 : vector<1x1x128xbf16> to vector<1x128xbf16>
    %837 = vector.shape_cast %834 : vector<1x128xbf16> to vector<1x1x128xbf16>
    tpu.vector_store %arg24[%c0_306, %c0_307, %c0_308], %837 {strides = array<i32>} : memref<1x1x128xbf16, #tpu.memory_space<vmem>>, vector<1x1x128xbf16>,
    return
  }
  func.func @transform_0(%arg0: i32) -> (i32, i32, i32) {
    %c0_i32 = arith.constant 0 : i32
    %c0_i32_0 = arith.constant 0 : i32
    %c0_i32_1 = arith.constant 0 : i32
    return %arg0, %c0_i32, %c0_i32_0 : i32, i32, i32
  }
  func.func @transform_1(%arg0: i32) -> (i32, i32, i32) {
    %c0_i32 = arith.constant 0 : i32
    %c0_i32_0 = arith.constant 0 : i32
    %c0_i32_1 = arith.constant 0 : i32
    return %arg0, %c0_i32, %c0_i32_0 : i32, i32, i32
  }
  func.func @transform_2(%arg0: i32) -> (i32, i32) {
    %c0_i32 = arith.constant 0 : i32
    %c0_i32_0 = arith.constant 0 : i32
    %c0_i32_1 = arith.constant 0 : i32
    return %c0_i32, %c0_i32_0 : i32, i32
  }
  func.func @transform_3(%arg0: i32) -> (i32, i32) {
    %c0_i32 = arith.constant 0 : i32
    %c0_i32_0 = arith.constant 0 : i32
    %c0_i32_1 = arith.constant 0 : i32
    return %c0_i32, %c0_i32_0 : i32, i32
  }
  func.func @transform_4(%arg0: i32) -> (i32, i32) {
    %c0_i32 = arith.constant 0 : i32
    %c0_i32_0 = arith.constant 0 : i32
    %c0_i32_1 = arith.constant 0 : i32
    return %c0_i32, %c0_i32_0 : i32, i32
  }
  func.func @transform_5(%arg0: i32) -> (i32, i32) {
    %c0_i32 = arith.constant 0 : i32
    %c0_i32_0 = arith.constant 0 : i32
    %c0_i32_1 = arith.constant 0 : i32
    return %c0_i32, %c0_i32_0 : i32, i32
  }
  func.func @transform_6(%arg0: i32) -> (i32, i32) {
    %c0_i32 = arith.constant 0 : i32
    %c0_i32_0 = arith.constant 0 : i32
    %c0_i32_1 = arith.constant 0 : i32
    return %c0_i32, %c0_i32_0 : i32, i32
  }
  func.func @transform_7(%arg0: i32) -> (i32, i32) {
    %c0_i32 = arith.constant 0 : i32
    %c0_i32_0 = arith.constant 0 : i32
    %c0_i32_1 = arith.constant 0 : i32
    return %c0_i32, %c0_i32_0 : i32, i32
  }
  func.func @transform_8(%arg0: i32) -> (i32, i32) {
    %c0_i32 = arith.constant 0 : i32
    %c0_i32_0 = arith.constant 0 : i32
    %c0_i32_1 = arith.constant 0 : i32
    return %c0_i32, %c0_i32_0 : i32, i32
  }
  func.func @transform_9(%arg0: i32) -> (i32, i32) {
    %c0_i32 = arith.constant 0 : i32
    %c0_i32_0 = arith.constant 0 : i32
    %c0_i32_1 = arith.constant 0 : i32
    return %c0_i32, %c0_i32_0 : i32, i32
  }
  func.func @transform_10(%arg0: i32) -> (i32, i32) {
    %c0_i32 = arith.constant 0 : i32
    %c0_i32_0 = arith.constant 0 : i32
    %c0_i32_1 = arith.constant 0 : i32
    return %c0_i32, %c0_i32_0 : i32, i32
  }
  func.func @transform_11(%arg0: i32) -> (i32, i32) {
    %c0_i32 = arith.constant 0 : i32
    %c0_i32_0 = arith.constant 0 : i32
    %c0_i32_1 = arith.constant 0 : i32
    return %c0_i32, %c0_i32_0 : i32, i32
  }
  func.func @transform_12(%arg0: i32) -> (i32, i32) {
    %c0_i32 = arith.constant 0 : i32
    %c0_i32_0 = arith.constant 0 : i32
    %c0_i32_1 = arith.constant 0 : i32
    return %c0_i32, %c0_i32_0 : i32, i32
  }
  func.func @transform_13(%arg0: i32) -> (i32, i32) {
    %c0_i32 = arith.constant 0 : i32
    %c0_i32_0 = arith.constant 0 : i32
    %c0_i32_1 = arith.constant 0 : i32
    return %c0_i32, %c0_i32_0 : i32, i32
  }
  func.func @transform_14(%arg0: i32) -> (i32, i32) {
    %c0_i32 = arith.constant 0 : i32
    %c0_i32_0 = arith.constant 0 : i32
    %c0_i32_1 = arith.constant 0 : i32
    return %c0_i32, %c0_i32_0 : i32, i32
  }
  func.func @transform_15(%arg0: i32) -> (i32, i32) {
    %c0_i32 = arith.constant 0 : i32
    %c0_i32_0 = arith.constant 0 : i32
    %c0_i32_1 = arith.constant 0 : i32
    return %c0_i32, %c0_i32_0 : i32, i32
  }
  func.func @transform_16(%arg0: i32) -> (i32, i32) {
    %c0_i32 = arith.constant 0 : i32
    %c0_i32_0 = arith.constant 0 : i32
    %c0_i32_1 = arith.constant 0 : i32
    return %c0_i32, %c0_i32_0 : i32, i32
  }
  func.func @transform_17(%arg0: i32) -> (i32, i32) {
    %c0_i32 = arith.constant 0 : i32
    %c0_i32_0 = arith.constant 0 : i32
    %c0_i32_1 = arith.constant 0 : i32
    return %c0_i32, %c0_i32_0 : i32, i32
  }
  func.func @transform_18(%arg0: i32) -> (i32, i32) {
    %c0_i32 = arith.constant 0 : i32
    %c0_i32_0 = arith.constant 0 : i32
    %c0_i32_1 = arith.constant 0 : i32
    return %c0_i32, %c0_i32_0 : i32, i32
  }
  func.func @transform_19(%arg0: i32) -> (i32, i32) {
    %c0_i32 = arith.constant 0 : i32
    %c0_i32_0 = arith.constant 0 : i32
    %c0_i32_1 = arith.constant 0 : i32
    return %c0_i32, %c0_i32_0 : i32, i32
  }
  func.func @transform_20(%arg0: i32) -> (i32, i32) {
    %c0_i32 = arith.constant 0 : i32
    %c0_i32_0 = arith.constant 0 : i32
    %c0_i32_1 = arith.constant 0 : i32
    return %c0_i32, %c0_i32_0 : i32, i32
  }
  func.func @transform_21(%arg0: i32) -> (i32, i32) {
    %c0_i32 = arith.constant 0 : i32
    %c0_i32_0 = arith.constant 0 : i32
    %c0_i32_1 = arith.constant 0 : i32
    return %c0_i32, %c0_i32_0 : i32, i32
  }
  func.func @transform_22(%arg0: i32) -> (i32, i32) {
    %c0_i32 = arith.constant 0 : i32
    %c0_i32_0 = arith.constant 0 : i32
    %c0_i32_1 = arith.constant 0 : i32
    return %c0_i32, %c0_i32_0 : i32, i32
  }
  func.func @transform_23(%arg0: i32) -> (i32, i32, i32) {
    %c0_i32 = arith.constant 0 : i32
    %c0_i32_0 = arith.constant 0 : i32
    %c0_i32_1 = arith.constant 0 : i32
    return %arg0, %c0_i32, %c0_i32_0 : i32, i32, i32
  }
}

</mosaic_0001>

<bundles_post_ra>
// kernel: _backbone.2
= control target key start
LH: loop header
LB: loop body
LE: loop exit
PB: predicated region body
PF: predicated region fallthrough
CT: control target
= control target key end

     0   :  { %s2126_s25 = smov 0   ;;  %s2680_s0 = inlined_call_operand.vmem [shape: bf16[2,64,128], index: 0, kind: input, shape index: {}]   ;;  %s2681_s1 = inlined_call_operand.vmem [shape: bf16[128,128], index: 1, kind: input, shape index: {}]   ;;  %s2682_s2 = inlined_call_operand.vmem [shape: f32[1,128], index: 2, kind: input, shape index: {}]   ;;  %s2683_s3 = inlined_call_operand.vmem [shape: f32[1,128], index: 3, kind: input, shape index: {}]   ;;  %s2684_s4 = inlined_call_operand.vmem [shape: bf16[128,128], index: 4, kind: input, shape index: {}]   ;;  %s2685_s5 = inlined_call_operand.vmem [shape: f32[1,128], index: 5, kind: input, shape index: {}]   ;;  %s2686_s6 = inlined_call_operand.vmem [shape: f32[1,128], index: 6, kind: input, shape index: {}]   ;;  %s2687_s7 = inlined_call_operand.vmem [shape: f32[9,128], index: 7, kind: input, shape index: {}]   ;;  %s2688_s8 = inlined_call_operand.vmem [shape: f32[1,128], index: 8, kind: input, shape index: {}]   ;;  %s2689_s9 = inlined_call_operand.vmem [shape: f32[1,128], index: 9, kind: input, shape index: {}]   ;;  %s2690_s10 = inlined_call_operand.vmem [shape: bf16[128,128], index: 10, kind: input, shape index: {}]   ;;  %s2691_s11 = inlined_call_operand.vmem [shape: f32[1,128], index: 11, kind: input, shape index: {}]   ;;  %s2692_s12 = inlined_call_operand.vmem [shape: f32[1,128], index: 12, kind: input, shape index: {}]   ;;  %s2693_s13 = inlined_call_operand.vmem [shape: bf16[2,64,128], index: 13, kind: output, shape index: {}]  }
   0x1 LB: > { %s1797_s26 = sadd.s32 4294967295, %s2053_s25   ;;  %p1801_p0 = scmp.ge.s32.totalorder %s2053_s25, 1  ;;  %s2053_s25 = sphi %s2126_s25, %s23_s25  }
   0x2   : > { %p387_p1 = scmp.lt.s32.totalorder %s2053_s25, 3 }
   0x4   : > { %p388_p2 = pnand %p1801_p0, %p387_p1 }
   0x6   : > { %391 = sbr.rel (%p388_p2) target bundleno = 831 (0x33f), region = 72 }
   0xd   : > { %v2019_v0 = vld [vmem:[%s2681_s1] sm:$0xff]   ;;  %p431_p3 = scmp.lt.s32.totalorder %s1797_s26, 1  ;;  %v2020_v1 = vld [vmem:[%s2681_s1 + $0x8] sm:$0xff]   ;;  %v2021_v2 = vld [vmem:[%s2681_s1 + $0x10] sm:$0xff]   ;;  %v2055_v20 = vmov 0.0   ;;  %vm897_vm0 = vcmask 1046528  }
   0xe   : > { %1922 = vmatprep.subr.bf16.mxu0 %v2019_v0  ;;  %v2022_v3 = vld [vmem:[%s2681_s1 + $0x18] sm:$0xff]   ;;  %v2023_v5 = vld [vmem:[%s2681_s1 + $0x20] sm:$0xff]   ;;  %v2032_v7 = vld [vmem:[%s2684_s4 + $0x8] sm:$0xff]   ;;  %687 = vst [vmem:[#allocation3 + $0x30] sm:$0x1] %v2055_v20  ;;  %vm911_vm1 = vcmask 1045504  }
   0xf   : > { %s2724_s26 = smov (!%p431_p3, %s1797_s26), 1  ;;  %1923 = vmatpush3.bf16.msra.mxu0 %v2019_v0  ;;  %v2031_v6 = vld [vmem:[%s2684_s4] sm:$0xff]   ;;  %v2024_v8 = vld [vmem:[%s2681_s1 + $0x28] sm:$0xff]   ;;  %v2033_v9 = vld [vmem:[%s2684_s4 + $0x10] sm:$0xff]   ;;  %697 = vst [vmem:[#allocation3 + $0x39] sm:$0x1] %v2055_v20 }
  0x10   : > { %1924 = vmatprep.subr.bf16.mxu0 %v2020_v1  ;;  %s1853_s16 = sshll.u32 %s2724_s26, 5  ;;  %1946 = vmatprep.subr.bf16.mxu1 %v2031_v6  ;;  %v2025_v10 = vld [vmem:[%s2681_s1 + $0x30] sm:$0xff]   ;;  %v2034_v11 = vld [vmem:[%s2684_s4 + $0x18] sm:$0xff]   ;;  %v2035_v13 = vld [vmem:[%s2684_s4 + $0x20] sm:$0xff]   ;;  %679 = vst [vmem:[#allocation3] sm:$0xff] %v2055_v20 }
  0x11   : > { %s2151_s19 = scalar_lea.vmem %s2680_s0, %s1853_s16  ;;  %1947 = vmatpush3.bf16.msra.mxu1 %v2031_v6  ;;  %v2026_v12 = vld [vmem:[%s2681_s1 + $0x38] sm:$0xff]   ;;  %v2036_v17 = vld [vmem:[%s2684_s4 + $0x28] sm:$0xff]   ;;  %v2037_v18 = vld [vmem:[%s2684_s4 + $0x30] sm:$0xff]   ;;  %680 = vst [vmem:[#allocation3 + $0x8] sm:$0x3] %v2055_v20  ;;  %s440_s14 = scalar_lea.vmem %s2693_s13, %s1853_s16 }
  0x12   : > { %v2027_v4 = vld [vmem:[%s2151_s19] sm:$0xff]   ;;  %1948 = vmatprep.subr.bf16.mxu1 %v2032_v7  ;;  %v2028_v14 = vld [vmem:[%s2151_s19 + $0x8] sm:$0xff]   ;;  %v2029_v15 = vld [vmem:[%s2151_s19 + $0x10] sm:$0xff]   ;;  %682 = vst [vmem:[#allocation3 + $0x90] sm:$0xff] %v2055_v20 }
  0x13   : > { %1925 = vmatpush3.bf16.msra.mxu0 %v2020_v1  ;;  %1938 = vmatprep.mubr.bf16.mxu0 %v2027_v4  ;;  %v2030_v16 = vld [vmem:[%s2151_s19 + $0x18] sm:$0xff]   ;;  %683 = vst [vmem:[#allocation3 + $0x98] sm:$0x3] %v2055_v20  ;;  %685 = vst [vmem:[#allocation3 + $0x10] sm:$0x1] %v2055_v20  ;;  %v2040_v4 = vld [vmem:[%s2690_s10 + $0x8] sm:$0xff]  }
  0x14   : > { %1926 = vmatprep.subr.bf16.mxu0 %v2021_v2  ;;  %v2038_v19 = vld [vmem:[%s2684_s4 + $0x38] sm:$0xff]   ;;  %686 = vst [vmem:[#allocation3 + $0x20] sm:$0x1] %v2055_v20  ;;  %688 = vst [vmem:[#allocation3 + $0x40] sm:$0x1] %v2055_v20 }
  0x15   : > { %1949 = vmatpush3.bf16.msra.mxu1 %v2032_v7  ;;  %689 = vst [vmem:[#allocation3 + $0x50] sm:$0x1] %v2055_v20  ;;  %690 = vst [vmem:[#allocation3 + $0x60] sm:$0x1] %v2055_v20  ;;  %v1818_v21 = vld [vmem:[%s2682_s2] ss:$0 sm:$0xff] }
  0x16   : > { %1950 = vmatprep.subr.bf16.mxu1 %v2033_v9  ;;  %691 = vst [vmem:[#allocation3 + $0x70] sm:$0x1] %v2055_v20  ;;  %692 = vst [vmem:[#allocation3 + $0x80] sm:$0x1] %v2055_v20  ;;  %v1819_v23 = vld [vmem:[%s2683_s3] ss:$0 sm:$0xff] }
  0x17   : > { %1927 = vmatpush3.bf16.msra.mxu0 %v2021_v2  ;;  %695 = vst [vmem:[#allocation3 + $0x19] sm:$0x1] %v2055_v20  ;;  %696 = vst [vmem:[#allocation3 + $0x29] sm:$0x1] %v2055_v20  ;;  %v2042_v6 = vld [vmem:[%s2690_s10 + $0x18] sm:$0xff]   ;;  %v2043_v7 = vld [vmem:[%s2690_s10 + $0x20] sm:$0xff]  }
  0x18   : > { %1928 = vmatprep.subr.bf16.mxu0 %v2022_v3  ;;  %698 = vst [vmem:[#allocation3 + $0x49] sm:$0x1] %v2055_v20  ;;  %699 = vst [vmem:[#allocation3 + $0x59] sm:$0x1] %v2055_v20 }
  0x19   : > { %1951 = vmatpush3.bf16.msra.mxu1 %v2033_v9  ;;  %700 = vst [vmem:[#allocation3 + $0x69] sm:$0x1] %v2055_v20  ;;  %701 = vst [vmem:[#allocation3 + $0x79] sm:$0x1] %v2055_v20  ;;  %v2045_v9 = vld [vmem:[%s2690_s10 + $0x30] sm:$0xff]  }
  0x1a   : > { %1952 = vmatprep.subr.bf16.mxu1 %v2034_v11  ;;  %702 = vst [vmem:[#allocation3 + $0x89] sm:$0x1] %v2055_v20  ;;  %684 = vst [vmem:[#allocation3] sm:$0x1] %v2055_v20 }
  0x1b   : > { %1929 = vmatpush3.bf16.msra.mxu0 %v2022_v3  ;;  %694 = vst [vmem:[#allocation3 + $0x9] sm:$0x1] %v2055_v20  ;;  %693 = vst [vmem:[#allocation3 + $0x90] sm:$0x1] %v2055_v20  ;;  %v2039_v3 = vld [vmem:[%s2690_s10] sm:$0xff]  }
  0x1c   : > { %1930 = vmatprep.subr.bf16.mxu0 %v2023_v5  ;;  %703 = vst [vmem:[#allocation3 + $0x99] sm:$0x1] %v2055_v20  ;;  %v2256_v20 = vld [vmem:[%s2686_s6] ss:$0 sm:$0xff] }
  0x1d   : > { %1953 = vmatpush3.bf16.msra.mxu1 %v2034_v11  ;;  %v883_v11 = vlaneseq }
  0x1e   : > { %1954 = vmatprep.subr.bf16.mxu1 %v2035_v13 }
  0x1f   : > { %1931 = vmatpush3.bf16.msra.mxu0 %v2023_v5  ;;  %v2041_v5 = vld [vmem:[%s2690_s10 + $0x10] sm:$0xff]  }
  0x20   : > { %1932 = vmatprep.subr.bf16.mxu0 %v2024_v8 }
  0x21   : > { %1955 = vmatpush3.bf16.msra.mxu1 %v2035_v13 }
  0x22   : > { %1956 = vmatprep.subr.bf16.mxu1 %v2036_v17 }
  0x23   : > { %1933 = vmatpush3.bf16.msra.mxu0 %v2024_v8  ;;  %v2044_v8 = vld [vmem:[%s2690_s10 + $0x28] sm:$0xff]  }
  0x24   : > { %1934 = vmatprep.subr.bf16.mxu0 %v2025_v10 }
  0x25   : > { %1957 = vmatpush3.bf16.msra.mxu1 %v2036_v17 }
  0x26   : > { %1958 = vmatprep.subr.bf16.mxu1 %v2037_v18 }
  0x27   : > { %1935 = vmatpush3.bf16.msra.mxu0 %v2025_v10  ;;  %v2046_v10 = vld [vmem:[%s2690_s10 + $0x38] sm:$0xff]  }
  0x28   : > { %1936 = vmatprep.subr.bf16.mxu0 %v2026_v12 }
  0x29   : > { %1959 = vmatpush3.bf16.msra.mxu1 %v2037_v18  ;;  %v881_v18 = vld [vmem:[#allocation3] sm:$0xff] }
  0x2a   : > { %1960 = vmatprep.subr.bf16.mxu1 %v2038_v19 }
  0x2b   : > { %1937 = vmatpush3.bf16.msra.mxu0 %v2026_v12  ;;  %v2238_v12 = vshrl.u32 %v883_v11, 7 }
  0x2c   : > { %1970 = vmatprep.subr.bf16.mxu0 %v2039_v3 }
  0x2d   : > { %1961 = vmatpush3.bf16.msra.mxu1 %v2038_v19  ;;  %v891_v13 = vsub.s32 1, %v2238_v12  ;;  %v905_v17 = vsub.s32 2, %v2238_v12  ;;  %v882_v19 = vld [vmem:[#allocation3 + $0x8] sm:$0x3] }
  0x2e   : > { %1939 = vmatmul.mubr.bf16.vlgmr.msra.gmra.mrb[0].mxu0 %v2028_v14  ;;  %1994 = vmatprep.subr.bf16.mxu1 %v2039_v3  ;;  %v2244_v14 = vld [vmem:[%s2687_s7] sm:$0xff] }
  0x2f   : > { %1942 = vmatprep.mubr.bf16.mxu0 %v2029_v15  ;;  %1971 = vmatpush3.bf16.msra.mxu0 %v2039_v3  ;;  %v2247_v15 = vrot.slane %v2244_v14, %v891_v13 }
  0x30   : > { %1972 = vmatprep.subr.bf16.mxu0 %v2040_v4 }
  0x33   : > { %1973 = vmatpush3.bf16.msra.mxu0 %v2040_v4 }
  0x34   : > { %1974 = vmatprep.subr.bf16.mxu0 %v2041_v5 }
  0x36   : > { %1943 = vmatmul.mubr.bf16.gmra.mrb[4].mxu0 %v2030_v16  ;;  %v1828_v16 = vld [vmem:[%s2685_s5] ss:$0 sm:$0xff] }
  0x37   : > { %1975 = vmatpush3.bf16.msra.mxu0 %v2041_v5 }
  0x38   : > { %1976 = vmatprep.subr.bf16.mxu0 %v2042_v6 }
  0x3b   : > { %1977 = vmatpush3.bf16.msra.mxu0 %v2042_v6 }
  0x3c   : > { %1978 = vmatprep.subr.bf16.mxu0 %v2043_v7 }
  0x3f   : > { %1979 = vmatpush3.bf16.msra.mxu0 %v2043_v7 }
  0x40   : > { %1980 = vmatprep.subr.bf16.mxu0 %v2044_v8 }
  0x43   : > { %1981 = vmatpush3.bf16.msra.mxu0 %v2044_v8 }
  0x44   : > { %1982 = vmatprep.subr.bf16.mxu0 %v2045_v9 }
  0x47   : > { %1983 = vmatpush3.bf16.msra.mxu0 %v2045_v9 }
  0x48   : > { %1984 = vmatprep.subr.bf16.mxu0 %v2046_v10 }
  0x4b   : > { %1985 = vmatpush3.bf16.msra.mxu0 %v2046_v10 }
 0x101   : > { %v1940_v22 = vpop.f32.mrb[0].mxu0 }
 0x102   : > { %v612_v24 = vmul.f32 %v1940_v22, %v1818_v21  ;;  %v572_v25 = vpop.f32.mrb[1].mxu0  ;;  %v885_v22 = vsub.s32 0, %v2238_v12 }
 0x103   : > { %v610_v26 = vmul.f32 %v1818_v21, %v572_v25  ;;  %v1941_v27 = vpop.f32.mrb[2].mxu0  ;;  %v893_v25 = vmul.f32 %v2247_v15, %v881_v18 }
 0x104   : > { %v627_v28 = vadd.f32 %v1819_v23, %v612_v24  ;;  %v613_v29 = vmul.f32 %v1941_v27, %v1818_v21  ;;  %v575_v30 = vpop.f32.mrb[3].mxu0  ;;  %v2262_v27 = vrot.slane %v2244_v14, %v905_v17  ;;  %v921_v17 = vsub.s32 3, %v2238_v12 }
 0x105   : > { %v625_v31 = vadd.f32 %v1819_v23, %v610_v26  ;;  %v611_v32 = vmul.f32 %v1818_v21, %v575_v30  ;;  %v894_v26 = vmul.f32 %v2247_v15, %v882_v19 }
 0x106   : > { %v635_v33 = vmax.f32 %v627_v28, 0.0  ;;  %v628_v34 = vadd.f32 %v1819_v23, %v613_v29 }
 0x107   : > { %v633_v35 = vmax.f32 %v625_v31, 0.0  ;;  %v626_v36 = vadd.f32 %v1819_v23, %v611_v32 }
 0x108   : > { %v636_v37 = vmax.f32 %v628_v34, 0.0  ;;  %v643_v40 = vmin.f32 %v635_v33, 6.0  ;;  %v2266_v33 = vrot.slane %v2244_v14, %v885_v22  ;;  %v961_v34 = vsub.s32 7, %v2238_v12 }
 0x109   : > { %v634_v38 = vmax.f32 %v626_v36, 0.0  ;;  %v1944_v39 = vpop.f32.mrb[4].mxu0  ;;  %v641_v44 = vmin.f32 %v633_v35, 6.0  ;;  %v955_v22 = vsub.s32 6, %v2238_v12 }
 0x10a   : > { %v644_v41 = vmin.f32 %v636_v37, 6.0  ;;  %v616_v42 = vmul.f32 %v1944_v39, %v1818_v21  ;;  %v588_v43 = vpop.f32.mrb[5].mxu0  ;;  %v899_v39 = vrot.slane %v894_v26, 1 }
 0x10b   : > { %v642_v45 = vmin.f32 %v634_v38, 6.0  ;;  %v614_v46 = vmul.f32 %v1818_v21, %v588_v43  ;;  %v1945_v47 = vpop.f32.mrb[6].mxu0  ;;  %v898_v38 = vrot.slane %v893_v25, 1  ;;  %v908_v43 = vmul.f32 %v2262_v27, %v882_v19 }
 0x10c   : > { %v631_v48 = vadd.f32 %v1819_v23, %v616_v42  ;;  %v617_v49 = vmul.f32 %v1945_v47, %v1818_v21  ;;  %v591_v50 = vpop.f32.mrb[7].mxu0  ;;  %v2202_v51 = vpack.c.bf16 %v644_v41, %v643_v40  ;;  %v907_v42 = vmul.f32 %v2262_v27, %v881_v18 }
 0x10d   : > { %v629_v52 = vadd.f32 %v1819_v23, %v614_v46  ;;  %v615_v53 = vmul.f32 %v1818_v21, %v591_v50  ;;  %v2204_v54 = vpack.c.bf16 %v642_v45, %v641_v44  ;;  %v2275_v47 = vrot.slane %v2244_v14, %v961_v34 }
 0x10e   : > { %2702 = vst [vmem:[#allocation5_spill] sm:$0xff] %v2202_v51  ;;  %v639_v55 = vmax.f32 %v631_v48, 0.0  ;;  %v632_v56 = vadd.f32 %v1819_v23, %v617_v49  ;;  %v940_v19 = vsub.s32 5, %v2238_v12 }
 0x10f   : > { %2703 = vst [vmem:[#allocation6_spill] sm:$0xff] %v2204_v54  ;;  %v637_v57 = vmax.f32 %v629_v52, 0.0  ;;  %v630_v58 = vadd.f32 %v1819_v23, %v615_v53  ;;  %1962 = vmatprep.mubr.bf16.mxu1 %v2204_v54  ;;  %v1488_v52 = vld [vmem:[#allocation3 + $0x90] sm:$0xff]  ;;  %v1489_v53 = vld [vmem:[#allocation3 + $0x98] sm:$0x3] }
 0x110   : > { %v640_v59 = vmax.f32 %v632_v56, 0.0  ;;  %1963 = vmatmul.mubr.bf16.vlgmr.msra.gmra.mrb[0].mxu1 %v2202_v51  ;;  %v647_v61 = vmin.f32 %v639_v55, 6.0  ;;  %v887_v55 = vmul.f32 %v2266_v33, %v881_v18  ;;  %v900_v56 = vsel %vm897_vm0, %v898_v38, %v899_v39 }
 0x111   : > { %v638_v60 = vmax.f32 %v630_v58, 0.0  ;;  %v645_v63 = vmin.f32 %v637_v57, 6.0  ;;  %2002 = vmatpush3.bf16.msra.mxu1 %v2039_v3  ;;  %v927_v18 = vsub.s32 4, %v2238_v12 }
 0x112   : > { %v648_v62 = vmin.f32 %v640_v59, 6.0  ;;  %1995 = vmatprep.subr.bf16.mxu1 %v2040_v4 }
 0x113   : > { %v646_v0 = vmin.f32 %v638_v60, 6.0  ;;  %v2282_v60 = vld [vmem:[%s2687_s7 + $0x8] ss:$0 sm:$0xff]  ;;  %v2302_v12 = vrot.slane %v2244_v14, %v927_v18 }
 0x114   : > { %v2208_v1 = vpack.c.bf16 %v648_v62, %v647_v61  ;;  %v912_v61 = vrot.slane %v907_v42, 2  ;;  %v913_v62 = vrot.slane %v908_v43, 2  ;;  %v1502_v13 = vmul.f32 %v2282_v60, %v1489_v53 }
 0x115   : > { %v2210_v2 = vpack.c.bf16 %v646_v0, %v645_v63  ;;  %2003 = vmatpush3.bf16.msra.mxu1 %v2040_v4 }
 0x116   : > { %2704 = vst [vmem:[#allocation7_spill] sm:$0xff] %v2208_v1  ;;  %1996 = vmatprep.subr.bf16.mxu1 %v2041_v5  ;;  %v914_v26 = vsel %vm911_vm1, %v912_v61, %v913_v62 }
 0x117   : > { %2705 = vst [vmem:[#allocation8_spill] sm:$0xff] %v2210_v2  ;;  %1966 = vmatprep.mubr.bf16.mxu1 %v2210_v2 }
 0x118   : > { %1967 = vmatmul.mubr.bf16.gmra.mrb[4].mxu1 %v2208_v1 }
 0x119   : > { %2004 = vmatpush3.bf16.msra.mxu1 %v2041_v5  ;;  %v1492_v5 = vmul.f32 %v1488_v52, %v2275_v47 }
 0x11a   : > { %1997 = vmatprep.subr.bf16.mxu1 %v2042_v6 }
 0x11d   : > { %2005 = vmatpush3.bf16.msra.mxu1 %v2042_v6 }
 0x11e   : > { %1998 = vmatprep.subr.bf16.mxu1 %v2043_v7 }
 0x121   : > { %2006 = vmatpush3.bf16.msra.mxu1 %v2043_v7  ;;  %v1493_v7 = vmul.f32 %v1489_v53, %v2275_v47 }
 0x122   : > { %1999 = vmatprep.subr.bf16.mxu1 %v2044_v8 }
 0x125   : > { %2007 = vmatpush3.bf16.msra.mxu1 %v2044_v8  ;;  %v1501_v8 = vmul.f32 %v2282_v60, %v1488_v52 }
 0x126   : > { %2000 = vmatprep.subr.bf16.mxu1 %v2045_v9 }
 0x129   : > { %2008 = vmatpush3.bf16.msra.mxu1 %v2045_v9 }
 0x12a   : > { %2001 = vmatprep.subr.bf16.mxu1 %v2046_v10 }
 0x12d   : > { %2009 = vmatpush3.bf16.msra.mxu1 %v2046_v10 }
 0x1e3   : > { %v1964_v21 = vpop.f32.mrb[0].mxu1 }
 0x1e4   : > { %v825_v23 = vmul.f32 %v1964_v21, %v1828_v16  ;;  %v786_v24 = vpop.f32.mrb[1].mxu1 }
 0x1e5   : > { %v823_v28 = vmul.f32 %v1828_v16, %v786_v24  ;;  %v1965_v29 = vpop.f32.mrb[2].mxu1 }
 0x1e6   : > { %v839_v30 = vadd.f32 %v2256_v20, %v825_v23  ;;  %v826_v31 = vmul.f32 %v1965_v29, %v1828_v16  ;;  %v789_v32 = vpop.f32.mrb[3].mxu1  ;;  %v902_v23 = vadd.f32 %v900_v56, %v887_v55  ;;  %v1497_v29 = vrot.slane %v1493_v7, 1 }
 0x1e7   : > { %v837_v35 = vadd.f32 %v2256_v20, %v823_v28  ;;  %v824_v36 = vmul.f32 %v1828_v16, %v789_v32 }
 0x1e8   : > { %v847_v37 = vmax.f32 %v839_v30, 0.0  ;;  %v840_v40 = vadd.f32 %v2256_v20, %v826_v31  ;;  %v916_v43 = vadd.f32 %v914_v26, %v902_v23 }
 0x1e9   : > { %v845_v41 = vmax.f32 %v837_v35, 0.0  ;;  %v838_v44 = vadd.f32 %v2256_v20, %v824_v36  ;;  %v1505_v35 = vrot.slane %v1501_v8, 2  ;;  %v1506_v36 = vrot.slane %v1502_v13, 2 }
 0x1ea   : > { %v855_v45 = vmin.f32 %v847_v37, 6.0  ;;  %v848_v46 = vmax.f32 %v840_v40, 0.0  ;;  %v2305_v37 = vrot.slane %v2244_v14, %v955_v22 }
 0x1eb   : > { %v853_v48 = vmin.f32 %v845_v41, 6.0  ;;  %v846_v49 = vmax.f32 %v838_v44, 0.0  ;;  %v1968_v50 = vpop.f32.mrb[4].mxu1  ;;  %v2310_v41 = vrot.slane %v2244_v14, %v921_v17 }
 0x1ec   : > { %866 = vst [vmem:[#allocation3 + $0x31] sm:$0xff] %v855_v45  ;;  %v856_v57 = vmin.f32 %v848_v46, 6.0  ;;  %v829_v58 = vmul.f32 %v1968_v50, %v1828_v16  ;;  %v802_v59 = vpop.f32.mrb[5].mxu1  ;;  %v2317_v46 = vmul.f32 %v1488_v52, %v2305_v37 }
 0x1ed   : > { %862 = vst [vmem:[#allocation3 + $0x11] sm:$0xff] %v853_v48  ;;  %v854_v63 = vmin.f32 %v846_v49, 6.0  ;;  %v827_v0 = vmul.f32 %v1828_v16, %v802_v59  ;;  %v1969_v3 = vpop.f32.mrb[6].mxu1  ;;  %v2323_v49 = vsel %vm911_vm1, %v1505_v35, %v1506_v36 }
 0x1ee   : > { %868 = vst [vmem:[#allocation3 + $0x41] sm:$0xff] %v856_v57  ;;  %v843_v4 = vadd.f32 %v2256_v20, %v829_v58  ;;  %v805_v6 = vpop.f32.mrb[7].mxu1  ;;  %v830_v10 = vmul.f32 %v1969_v3, %v1828_v16  ;;  %2707 = vst [vmem:[#allocation10_spill] sm:$0xff] %v2323_v49 }
 0x1ef   : > { %864 = vst [vmem:[#allocation3 + $0x21] sm:$0xff] %v854_v63  ;;  %v841_v9 = vadd.f32 %v2256_v20, %v827_v0  ;;  %v828_v11 = vmul.f32 %v1828_v16, %v805_v6  ;;  %v1496_v16 = vrot.slane %v1492_v5, 1 }
 0x1f0   : > { %v851_v21 = vmax.f32 %v843_v4, 0.0  ;;  %v2299_v34 = vadd.f32 %v2256_v20, %v830_v10 }
 0x1f1   : > { %v849_v24 = vmax.f32 %v841_v9, 0.0  ;;  %v2295_v25 = vadd.f32 %v2256_v20, %v828_v11  ;;  %v2313_v20 = vrot.slane %v2244_v14, %v940_v19  ;;  %v2320_v48 = vsel %vm897_vm0, %v1496_v16, %v1497_v29 }
 0x1f2   : > { %v859_v28 = vmin.f32 %v851_v21, 6.0  ;;  %2706 = vst [vmem:[#allocation9_spill] sm:$0xff] %v2320_v48 }
 0x1f3   : > { %v1047_v30 = vld [vmem:[#allocation3 + $0x30] sm:$0xff]  ;;  %v1048_v31 = vld [vmem:[#allocation3 + $0x38] sm:$0x3]  ;;  %v857_v32 = vmin.f32 %v849_v24, 6.0 }
 0x1f4   : > { %874 = vst [vmem:[#allocation3 + $0x71] sm:$0xff] %v859_v28  ;;  %v1051_v38 = vmul.f32 %v1047_v30, %v2275_v47  ;;  %v1052_v39 = vmul.f32 %v1048_v31, %v2275_v47  ;;  %v1101_v40 = vld [vmem:[#allocation3 + $0x38] sm:$0x3]  ;;  %v917_v44 = vld [vmem:[#allocation3 + $0x10] sm:$0xff]  ;;  %v2326_v50 = vmul.f32 %v2282_v60, %v1047_v30  ;;  %v1104_v14 = vmul.f32 %v1047_v30, %v2302_v12 }
 0x1f5   : > { %870 = vst [vmem:[#allocation3 + $0x51] sm:$0xff] %v857_v32  ;;  %v1151_v42 = vld [vmem:[#allocation3 + $0x38] sm:$0x3]  ;;  %v1105_v53 = vmul.f32 %v1101_v40, %v2302_v12  ;;  %v1154_v55 = vmul.f32 %v1047_v30, %v2247_v15  ;;  %v2332_v52 = vmul.f32 %v2282_v60, %v1048_v31  ;;  %v2336_v61 = vmul.f32 %v1047_v30, %v2305_v37 }
 0x1f6   : > { %v918_v56 = vld [vmem:[#allocation3 + $0x18] sm:$0x3]  ;;  %v1055_v57 = vrot.slane %v1051_v38, 1  ;;  %v1056_v58 = vrot.slane %v1052_v39, 1  ;;  %v1155_v59 = vmul.f32 %v1151_v42, %v2247_v15  ;;  %v2339_v62 = vmul.f32 %v1047_v30, %v2310_v41  ;;  %v1122_v38 = vld [vmem:[#allocation3 + $0x40] sm:$0xff] }
 0x1f7   : > { %v1158_v63 = vrot.slane %v1154_v55, 1  ;;  %v929_v0 = vmul.f32 %v2302_v12, %v917_v44  ;;  %v1163_v4 = vmul.f32 %v1047_v30, %v2262_v27  ;;  %v1164_v5 = vmul.f32 %v1151_v42, %v2262_v27  ;;  %v1004_v11 = vld [vmem:[#allocation3 + $0x18] sm:$0x3]  ;;  %v1123_v39 = vld [vmem:[#allocation3 + $0x48] sm:$0x3] }
 0x1f8   : > { %v1159_v3 = vrot.slane %v1155_v59, 1  ;;  %v930_v6 = vmul.f32 %v2302_v12, %v918_v56  ;;  %v1108_v8 = vrot.slane %v1104_v14, 1  ;;  %v1109_v9 = vrot.slane %v1105_v53, 1  ;;  %v1173_v59 = vld [vmem:[#allocation3 + $0x48] sm:$0x3] }
 0x1f9   : > { %v2347_v10 = vmul.f32 %v1047_v30, %v2313_v20  ;;  %v2350_v13 = vsel %vm897_vm0, %v1055_v57, %v1056_v58  ;;  %v1114_v18 = vmul.f32 %v1101_v40, %v2313_v20  ;;  %v923_v19 = vmul.f32 %v2310_v41, %v917_v44 }
 0x1fa   : > { %v1160_v21 = vsel %vm897_vm0, %v1158_v63, %v1159_v3  ;;  %v933_v22 = vrot.slane %v929_v0, 1  ;;  %v934_v23 = vrot.slane %v930_v6, 1  ;;  %v1007_v24 = vmul.f32 %v917_v44, %v2247_v15 }
 0x1fb   : > { %v1152_v26 = vmul.f32 %v1047_v30, %v2266_v33  ;;  %v1167_v28 = vrot.slane %v1163_v4, 2  ;;  %v1168_v16 = vrot.slane %v1164_v5, 2  ;;  %v1008_v29 = vmul.f32 %v1004_v11, %v2247_v15 }
 0x1fc   : > { %v2360_v31 = vsel %vm897_vm0, %v1108_v8, %v1109_v9  ;;  %v1117_v32 = vrot.slane %v2347_v10, 2  ;;  %v942_v35 = vmul.f32 %v2313_v20, %v917_v44  ;;  %v943_v36 = vmul.f32 %v2313_v20, %v918_v56 }
 0x1fd   : > { %v1118_v40 = vrot.slane %v1114_v18, 2  ;;  %v1162_v42 = vadd.f32 %v1160_v21, %v1152_v26  ;;  %v924_v14 = vadd.f32 %v923_v19, %v916_v43  ;;  %v1005_v30 = vmul.f32 %v917_v44, %v2266_v33 }
 0x1fe   : > { %v935_v53 = vsel %vm897_vm0, %v933_v22, %v934_v23  ;;  %v1011_v55 = vrot.slane %v1007_v24, 1  ;;  %v1012_v57 = vrot.slane %v1008_v29, 1  ;;  %v1016_v58 = vmul.f32 %v917_v44, %v2262_v27 }
 0x1ff   : > { %v1169_v63 = vsel %vm911_vm1, %v1167_v28, %v1168_v16  ;;  %v1017_v0 = vmul.f32 %v1004_v11, %v2262_v27  ;;  %v1126_v56 = vmul.f32 %v1122_v38, %v2275_v47  ;;  %v1127_v3 = vmul.f32 %v1123_v39, %v2275_v47  ;;  %v1226_v28 = vld [vmem:[#allocation3 + $0x48] sm:$0x3] }
 0x200   : > { %v946_v4 = vrot.slane %v942_v35, 2  ;;  %v947_v5 = vrot.slane %v943_v36, 2  ;;  %v1135_v43 = vmul.f32 %v2282_v60, %v1122_v38  ;;  %v1136_v6 = vmul.f32 %v2282_v60, %v1123_v39 }
 0x201   : > { %v937_v8 = vadd.f32 %v935_v53, %v924_v14  ;;  %v1171_v9 = vadd.f32 %v1169_v63, %v1162_v42  ;;  %v1176_v10 = vmul.f32 %v1122_v38, %v2302_v12  ;;  %v1177_v44 = vmul.f32 %v1173_v59, %v2302_v12 }
 0x202   : > { %v1013_v18 = vsel %vm897_vm0, %v1011_v55, %v1012_v57  ;;  %v1020_v19 = vrot.slane %v1016_v58, 2  ;;  %v1185_v11 = vmul.f32 %v1122_v38, %v2313_v20  ;;  %v1186_v21 = vmul.f32 %v1173_v59, %v2313_v20 }
 0x203   : > { %v1021_v22 = vrot.slane %v1017_v0, 2  ;;  %v1130_v23 = vrot.slane %v1126_v56, 1  ;;  %v1131_v24 = vrot.slane %v1127_v3, 1  ;;  %v1174_v26 = vmul.f32 %v1122_v38, %v2310_v41 }
 0x204   : > { %v1139_v16 = vrot.slane %v1135_v43, 2  ;;  %v1140_v29 = vrot.slane %v1136_v6, 2  ;;  %v1180_v35 = vrot.slane %v1176_v10, 1  ;;  %v1181_v36 = vrot.slane %v1177_v44, 1  ;;  %v951_v10 = vld [vmem:[#allocation3 + $0x20] sm:$0xff] }
 0x205   : > { %v1015_v39 = vadd.f32 %v1013_v18, %v1005_v30  ;;  %v1175_v42 = vadd.f32 %v1174_v26, %v1171_v9  ;;  %v1189_v14 = vrot.slane %v1185_v11, 2  ;;  %v1229_v53 = vmul.f32 %v1122_v38, %v2247_v15  ;;  %v952_v44 = vld [vmem:[#allocation3 + $0x28] sm:$0x3] }
 0x206   : > { %v1190_v55 = vrot.slane %v1186_v21, 2  ;;  %v1230_v57 = vmul.f32 %v1226_v28, %v2247_v15  ;;  %v1238_v58 = vmul.f32 %v1122_v38, %v2262_v27  ;;  %v1239_v59 = vmul.f32 %v1226_v28, %v2262_v27  ;;  %v1079_v28 = vld [vmem:[#allocation3 + $0x28] sm:$0x3] }
 0x207   : > { %v2385_v63 = vsel %vm911_vm1, %v1117_v32, %v1118_v40  ;;  %v948_v0 = vsel %vm911_vm1, %v946_v4, %v947_v5  ;;  %v1022_v56 = vsel %vm911_vm1, %v1020_v19, %v1021_v22  ;;  %v2390_v30 = vmul.f32 %v1122_v38, %v2305_v37  ;;  %v1026_v32 = vld [vmem:[#allocation3 + $0x28] sm:$0x3] }
 0x208   : > { %v2393_v3 = vsel %vm897_vm0, %v1130_v23, %v1131_v24  ;;  %v2396_v43 = vsel %vm911_vm1, %v1139_v16, %v1140_v29  ;;  %v1182_v6 = vsel %vm897_vm0, %v1180_v35, %v1181_v36  ;;  %v1227_v9 = vmul.f32 %v1122_v38, %v2266_v33 }
 0x209   : > { %v2400_v40 = vadd.f32 %v1182_v6, %v1175_v42  ;;  %v1233_v4 = vrot.slane %v1229_v53, 1  ;;  %v950_v5 = vadd.f32 %v948_v0, %v937_v8  ;;  %v1024_v18 = vadd.f32 %v1022_v56, %v1015_v39 }
 0x20a   : > { %v2403_v19 = vsel %vm911_vm1, %v1189_v14, %v1190_v55  ;;  %v1234_v11 = vrot.slane %v1230_v57, 1  ;;  %v1242_v21 = vrot.slane %v1238_v58, 2  ;;  %v1243_v22 = vrot.slane %v1239_v59, 2 }
 0x20b   : > { %v963_v23 = vmul.f32 %v2275_v47, %v951_v10  ;;  %v1027_v24 = vmul.f32 %v951_v10, %v2310_v41  ;;  %v1029_v38 = vmul.f32 %v951_v10, %v2302_v12  ;;  %v1030_v26 = vmul.f32 %v1026_v32, %v2302_v12 }
 0x20c   : > { %v957_v16 = vmul.f32 %v2305_v37, %v951_v10  ;;  %v964_v8 = vmul.f32 %v2275_v47, %v952_v44  ;;  %v1038_v29 = vmul.f32 %v951_v10, %v2313_v20  ;;  %v1082_v35 = vmul.f32 %v951_v10, %v2247_v15 }
 0x20d   : > { %v1028_v36 = vadd.f32 %v1027_v24, %v1024_v18  ;;  %v1033_v39 = vrot.slane %v1029_v38, 1  ;;  %v1034_v42 = vrot.slane %v1030_v26, 1  ;;  %v1039_v14 = vmul.f32 %v1026_v32, %v2313_v20  ;;  %v2424_v18 = vld [vmem:[#allocation3 + $0x70] sm:$0xff] }
 0x20e   : > { %v1083_v53 = vmul.f32 %v1079_v28, %v2247_v15  ;;  %v1086_v55 = vrot.slane %v1082_v35, 1  ;;  %v1091_v57 = vmul.f32 %v951_v10, %v2262_v27  ;;  %v1092_v58 = vmul.f32 %v1079_v28, %v2262_v27  ;;  %v1342_v35 = vld [vmem:[#allocation3 + $0x78] sm:$0x3] }
 0x20f   : > { %v1235_v59 = vsel %vm897_vm0, %v1233_v4, %v1234_v11  ;;  %v967_v0 = vrot.slane %v963_v23, 1  ;;  %v2419_v56 = vmul.f32 %v2282_v60, %v951_v10  ;;  %v2422_v6 = vmul.f32 %v2282_v60, %v952_v44 }
 0x210   : > { %v968_v24 = vrot.slane %v964_v8, 1  ;;  %v1087_v32 = vrot.slane %v1083_v53, 1  ;;  %v1095_v38 = vrot.slane %v1091_v57, 2  ;;  %v1096_v26 = vrot.slane %v1092_v58, 2 }
 0x211   : > { %v1035_v7 = vsel %vm897_vm0, %v1033_v39, %v1034_v42  ;;  %v1042_v17 = vrot.slane %v1038_v29, 2  ;;  %v1043_v28 = vrot.slane %v1039_v14, 2  ;;  %v1080_v4 = vmul.f32 %v951_v10, %v2266_v33 }
 0x212   : > { %v1237_v11 = vadd.f32 %v1235_v59, %v1227_v9  ;;  %v1037_v23 = vadd.f32 %v1035_v7, %v1028_v36  ;;  %v1088_v45 = vsel %vm897_vm0, %v1086_v55, %v1087_v32  ;;  %v2431_v44 = vmul.f32 %v2424_v18, %v2275_v47  ;;  %v1445_v36 = vld [vmem:[#allocation3 + $0x78] sm:$0x3] }
 0x213   : > { %v1244_v8 = vsel %vm911_vm1, %v1242_v21, %v1243_v22  ;;  %v2434_v53 = vadd.f32 %v957_v16, %v950_v5  ;;  %v1090_v57 = vadd.f32 %v1088_v45, %v1080_v4  ;;  %v2437_v58 = vmul.f32 %v1342_v35, %v2275_v47  ;;  %v1395_v45 = vld [vmem:[#allocation3 + $0x78] sm:$0x3] }
 0x214   : > { %v2440_v29 = vsel %vm897_vm0, %v967_v0, %v968_v24  ;;  %v1097_v10 = vsel %vm911_vm1, %v1095_v38, %v1096_v26  ;;  %v1044_v39 = vsel %vm911_vm1, %v1042_v17, %v1043_v28  ;;  %v2448_v5 = vmul.f32 %v2424_v18, %v2305_v37  ;;  %v1194_v17 = vld [vmem:[#allocation3 + $0x50] sm:$0xff]  ;;  %v1195_v38 = vld [vmem:[#allocation3 + $0x58] sm:$0x3] }
 0x215   : > { %v1099_v42 = vadd.f32 %v1097_v10, %v1090_v57  ;;  %v1448_v21 = vmul.f32 %v2424_v18, %v2247_v15  ;;  %v2452_v22 = vadd.f32 %v1044_v39, %v1037_v23  ;;  %v2457_v14 = vmul.f32 %v2282_v60, %v2424_v18  ;;  %v1248_v9 = vld [vmem:[#allocation3 + $0x58] sm:$0x3] }
 0x216   : > { %2708 = vst [vmem:[#allocation11_spill] sm:$0xff] %v2448_v5  ;;  %v2460_v55 = vmul.f32 %v2282_v60, %v1342_v35  ;;  %v2466_v24 = vmul.f32 %v2424_v18, %v2302_v12  ;;  %v1449_v32 = vmul.f32 %v1445_v36, %v2247_v15  ;;  %v2470_v26 = vmul.f32 %v1395_v45, %v2302_v12 }
 0x217   : > { %v1103_v59 = vadd.f32 %v2339_v62, %v1099_v42  ;;  %v2474_v28 = vmul.f32 %v2424_v18, %v2313_v20  ;;  %v2477_v35 = vmul.f32 %v1395_v45, %v2313_v20  ;;  %v1193_v62 = vadd.f32 %v2403_v19, %v2400_v40 }
 0x218   : > { %v1446_v4 = vmul.f32 %v2424_v18, %v2266_v33  ;;  %v1452_v23 = vrot.slane %v1448_v21, 1  ;;  %v2485_v57 = vmul.f32 %v2424_v18, %v2262_v27  ;;  %v1196_v10 = vmul.f32 %v1194_v17, %v2305_v37 }
 0x219   : > { %v2489_v39 = vmul.f32 %v1445_v36, %v2262_v27  ;;  %v1198_v42 = vmul.f32 %v1194_v17, %v2275_v47  ;;  %v1199_v45 = vmul.f32 %v1195_v38, %v2275_v47  ;;  %v1207_v16 = vmul.f32 %v2282_v60, %v1194_v17 }
 0x21a   : > { %v1112_v40 = vadd.f32 %v2360_v31, %v1103_v59  ;;  %v1453_v19 = vrot.slane %v1449_v32, 1  ;;  %v1197_v0 = vadd.f32 %v1196_v10, %v1193_v62  ;;  %v1208_v21 = vmul.f32 %v2282_v60, %v1195_v38  ;;  %v1298_v62 = vld [vmem:[#allocation3 + $0x58] sm:$0x3] }
 0x21b   : > { %v1402_v7 = vrot.slane %v2466_v24, 1  ;;  %v1403_v2 = vrot.slane %v2470_v26, 1  ;;  %v1202_v1 = vrot.slane %v1198_v42, 1  ;;  %v1203_v36 = vrot.slane %v1199_v45, 1 }
 0x21c   : > { %v1411_v54 = vrot.slane %v2474_v28, 2  ;;  %v1412_v51 = vrot.slane %v2477_v35, 2  ;;  %v1461_v49 = vrot.slane %v2485_v57, 2  ;;  %v1211_v48 = vrot.slane %v1207_v16, 2 }
 0x21d   : > { %v1204_v31 = vsel %vm897_vm0, %v1202_v1, %v1203_v36  ;;  %v1212_v59 = vrot.slane %v1208_v21, 2  ;;  %v1251_v32 = vmul.f32 %v1194_v17, %v2302_v12  ;;  %v1252_v38 = vmul.f32 %v1248_v9, %v2302_v12 }
 0x21e   : > { %v1121_v24 = vadd.f32 %v2385_v63, %v1112_v40  ;;  %v1454_v26 = vsel %vm897_vm0, %v1452_v23, %v1453_v19  ;;  %v1462_v10 = vrot.slane %v2489_v39, 2  ;;  %v1206_v28 = vadd.f32 %v1204_v31, %v1197_v0 }
 0x21f   : > { %v1246_v42 = vadd.f32 %v1244_v8, %v1237_v11  ;;  %v1249_v35 = vmul.f32 %v1194_v17, %v2310_v41  ;;  %v1260_v16 = vmul.f32 %v1194_v17, %v2313_v20  ;;  %v1261_v1 = vmul.f32 %v1248_v9, %v2313_v20 }
 0x220   : > { %v1255_v57 = vrot.slane %v1251_v32, 1  ;;  %v1256_v45 = vrot.slane %v1252_v38, 1  ;;  %v1301_v21 = vmul.f32 %v1194_v17, %v2247_v15  ;;  %v1302_v36 = vmul.f32 %v1298_v62, %v2247_v15 }
 0x221   : > { %v1456_v5 = vadd.f32 %v1454_v26, %v1446_v4  ;;  %v1213_v63 = vsel %vm911_vm1, %v1211_v48, %v1212_v59  ;;  %v1310_v23 = vmul.f32 %v1194_v17, %v2262_v27  ;;  %v2709_v0 = vmax.f32 %v2299_v34, 0.0 }
 0x222   : > { %v1215_v8 = vadd.f32 %v1213_v63, %v1206_v28  ;;  %v1305_v39 = vrot.slane %v1301_v21, 1  ;;  %v1306_v40 = vrot.slane %v1302_v36, 1  ;;  %v1311_v19 = vmul.f32 %v1298_v62, %v2262_v27  ;;  %v2526_v62 = vld [vmem:[%s2688_s8] ss:$0 sm:$0xff] }
 0x223   : > { %v860_v11 = vmin.f32 %v2709_v0, 6.0  ;;  %v1250_v9 = vadd.f32 %v1249_v35, %v1246_v42  ;;  %v1264_v31 = vrot.slane %v1260_v16, 2  ;;  %v1299_v32 = vmul.f32 %v1194_v17, %v2266_v33 }
 0x224   : > { %v850_v38 = vmax.f32 %v2295_v25, 0.0  ;;  %v1257_v4 = vsel %vm897_vm0, %v1255_v57, %v1256_v45  ;;  %v1265_v48 = vrot.slane %v1261_v1, 2  ;;  %v1307_v59 = vsel %vm897_vm0, %v1305_v39, %v1306_v40 }
 0x225   : > { %876 = vst [vmem:[#allocation3 + $0x81] sm:$0xff] %v860_v11  ;;  %v971_v34 = vadd.f32 %v2440_v29, %v2434_v53  ;;  %v1314_v26 = vrot.slane %v1310_v23, 2  ;;  %v2710_v17 = vrot.slane %v2422_v6, 2  ;;  %v2711_v42 = vrot.slane %v2419_v56, 2 }
 0x226   : > { %v858_v28 = vmin.f32 %v850_v38, 6.0  ;;  %v1050_v35 = vadd.f32 %v2336_v61, %v2452_v22  ;;  %v1315_v16 = vrot.slane %v1311_v19, 2  ;;  %v1125_v53 = vadd.f32 %v2390_v30, %v1121_v24  ;;  %v2556_v22 = vld [vmem:[%s2689_s9] ss:$0 sm:$0xff] }
 0x227   : > { %v982_v25 = vsel %vm911_vm1, %v2711_v42, %v2710_v17  ;;  %v1216_v29 = vmul.f32 %v2526_v62, %v1215_v8  ;;  %v1358_v57 = vrot.slane %v2457_v14, 2  ;;  %v1359_v45 = vrot.slane %v2460_v55, 2 }
 0x228   : > { %v984_v1 = vadd.f32 %v982_v25, %v971_v34  ;;  %v1259_v21 = vadd.f32 %v1257_v4, %v1250_v9  ;;  %v1309_v36 = vadd.f32 %v1307_v59, %v1299_v32  ;;  %872 = vst [vmem:[#allocation3 + $0x61] sm:$0xff] %v858_v28  ;;  %v2712_v56 = vrot.slane %v2437_v58, 1 }
 0x229   : > { %v2713_v6 = vrot.slane %v2431_v44, 1  ;;  %v2548_v61 = vmul.f32 %v2424_v18, %v2310_v41  ;;  %v2551_v30 = vsel %vm897_vm0, %v1402_v7, %v1403_v2  ;;  %v1059_v14 = vadd.f32 %v2350_v13, %v1050_v35 }
 0x22a   : > { %v1463_v58 = vsel %vm911_vm1, %v1461_v49, %v1462_v10  ;;  %v991_v44 = vmul.f32 %v2526_v62, %v984_v1  ;;  %v1134_v55 = vadd.f32 %v2393_v3, %v1125_v53  ;;  %v2563_v24 = vadd.f32 %v2556_v22, %v1216_v29 }
 0x22b   : > { %v2544_v63 = vsel %vm897_vm0, %v2713_v6, %v2712_v56  ;;  %v2566_v18 = vsel %vm911_vm1, %v1411_v54, %v1412_v51  ;;  %v1266_v2 = vsel %vm911_vm1, %v1264_v31, %v1265_v48  ;;  %v1316_v7 = vsel %vm911_vm1, %v1314_v26, %v1315_v16 }
 0x22c   : > { %v2570_v23 = vld [vmem:[#allocation3 + $0x80] sm:$0xff]  ;;  %v1465_v0 = vadd.f32 %v1463_v58, %v1456_v5  ;;  %v1467_v13 = vld [vmem:[#allocation3 + $0x88] sm:$0x3]  ;;  %v1268_v11 = vadd.f32 %v1266_v2, %v1259_v21  ;;  %v1318_v49 = vadd.f32 %v1316_v7, %v1309_v36  ;;  %v2714_v10 = vrot.slane %v2332_v52, 2 }
 0x22d   : > { %v2715_v3 = vrot.slane %v2326_v50, 2  ;;  %v2578_v39 = vsel %vm911_vm1, %v1358_v57, %v1359_v45  ;;  %v2580_v51 = vld [vmem:[#allocation3 + $0x88] sm:$0x3]  ;;  %v1468_v54 = vmul.f32 %v2570_v23, %v2310_v41  ;;  %v1470_v5 = vmul.f32 %v2570_v23, %v2302_v12 }
 0x22e   : > { %v1471_v40 = vmul.f32 %v1467_v13, %v2302_v12  ;;  %v1479_v52 = vmul.f32 %v2570_v23, %v2313_v20  ;;  %v998_v50 = vadd.f32 %v2556_v22, %v991_v44  ;;  %v1143_v9 = vadd.f32 %v2396_v43, %v1134_v55 }
 0x22f   : > { %v1066_v8 = vsel %vm911_vm1, %v2715_v3, %v2714_v10  ;;  %v1218_v31 = vmax.f32 %v2563_v24, 0.0  ;;  %v2594_v32 = vmul.f32 %v2570_v23, %v2275_v47  ;;  %v1469_v38 = vadd.f32 %v1468_v54, %v1465_v0  ;;  %v1269_v59 = vld [vmem:[#allocation3 + $0x60] sm:$0xff]  ;;  %v1270_v34 = vld [vmem:[#allocation3 + $0x68] sm:$0x3] }
 0x230   : > { %v1068_v19 = vadd.f32 %v1066_v8, %v1059_v14  ;;  %v1474_v4 = vrot.slane %v1470_v5, 1  ;;  %v1475_v48 = vrot.slane %v1471_v40, 1  ;;  %v2598_v26 = vmul.f32 %v2580_v51, %v2275_v47  ;;  %v1320_v1 = vld [vmem:[#allocation3 + $0x68] sm:$0x3] }
 0x231   : > { %v1480_v28 = vmul.f32 %v1467_v13, %v2313_v20  ;;  %v1483_v17 = vrot.slane %v1479_v52, 2  ;;  %v1271_v43 = vmul.f32 %v1269_v59, %v2305_v37  ;;  %v2604_v42 = vmul.f32 %v2282_v60, %v2570_v23 }
 0x232   : > { %v1476_v25 = vsel %vm897_vm0, %v1474_v4, %v1475_v48  ;;  %v1273_v35 = vmul.f32 %v1269_v59, %v2275_v47  ;;  %v1274_v16 = vmul.f32 %v1270_v34, %v2275_v47  ;;  %v1282_v45 = vmul.f32 %v2282_v60, %v1269_v59  ;;  %v1373_v47 = vld [vmem:[#allocation3 + $0x68] sm:$0x3] }
 0x233   : > { %v1478_v53 = vadd.f32 %v1476_v25, %v1469_v38  ;;  %v1484_v29 = vrot.slane %v1480_v28, 2  ;;  %v1272_v57 = vadd.f32 %v1271_v43, %v1268_v11  ;;  %v1283_v56 = vmul.f32 %v2282_v60, %v1270_v34 }
 0x234   : > { %v1277_v21 = vrot.slane %v1273_v35, 1  ;;  %v1278_v36 = vrot.slane %v1274_v16, 1  ;;  %v1321_v6 = vmul.f32 %v1269_v59, %v2310_v41  ;;  %v1286_v58 = vrot.slane %v1282_v45, 2 }
 0x235   : > { %v1485_v14 = vsel %vm911_vm1, %v1483_v17, %v1484_v29  ;;  %v1323_v44 = vmul.f32 %v1269_v59, %v2302_v12  ;;  %v1324_v55 = vmul.f32 %v1320_v1, %v2302_v12  ;;  %v1287_v7 = vrot.slane %v1283_v56, 2 }
 0x236   : > { %v1487_v24 = vadd.f32 %v1485_v14, %v1478_v53  ;;  %v1279_v2 = vsel %vm897_vm0, %v1277_v21, %v1278_v36  ;;  %v1322_v0 = vadd.f32 %v1321_v6, %v1318_v49  ;;  %v1332_v10 = vmul.f32 %v1269_v59, %v2313_v20  ;;  %v2716_v14 = vld [vmem:[#allocation11_spill] sm:$0xff] }
 0x237   : > { %v1327_v13 = vrot.slane %v1323_v44, 1  ;;  %v1328_v11 = vrot.slane %v1324_v55, 1  ;;  %v1333_v3 = vmul.f32 %v1320_v1, %v2313_v20  ;;  %v1374_v8 = vmul.f32 %v1269_v59, %v2266_v33  ;;  %v2717_v44 = vld [vmem:[#allocation9_spill] sm:$0xff] }
 0x238   : > { %v1491_v41 = vadd.f32 %v2317_v46, %v1487_v24  ;;  %v1376_v54 = vmul.f32 %v1269_v59, %v2247_v15  ;;  %v1377_v12 = vmul.f32 %v1373_v47, %v2247_v15  ;;  %v1336_v40 = vrot.slane %v1332_v10, 2 }
 0x239   : > { %v1329_v5 = vsel %vm897_vm0, %v1327_v13, %v1328_v11  ;;  %v1337_v52 = vrot.slane %v1333_v3, 2  ;;  %v1385_v49 = vmul.f32 %v1269_v59, %v2262_v27  ;;  %v1386_v34 = vmul.f32 %v1373_v47, %v2262_v27 }
 0x23a   : > { %v1331_v38 = vadd.f32 %v1329_v5, %v1322_v0  ;;  %v1380_v4 = vrot.slane %v1376_v54, 1  ;;  %v1381_v48 = vrot.slane %v1377_v12, 1  ;;  %v999_v28 = vmax.f32 %v998_v50, 0.0  ;;  %v2718_v0 = vld [vmem:[#allocation10_spill] sm:$0xff] }
 0x23b   : > { %v1338_v20 = vsel %vm911_vm1, %v1336_v40, %v1337_v52  ;;  %v1389_v46 = vrot.slane %v1385_v49, 2  ;;  %v1069_v33 = vmul.f32 %v2526_v62, %v1068_v19  ;;  %v1390_v43 = vrot.slane %v1386_v34, 2 }
 0x23c   : > { %v1340_v17 = vadd.f32 %v1338_v20, %v1331_v38  ;;  %v1382_v15 = vsel %vm897_vm0, %v1380_v4, %v1381_v48  ;;  %v1144_v25 = vmul.f32 %v2526_v62, %v1143_v9  ;;  %v1000_v16 = vmin.f32 %v999_v28, 6.0 }
 0x23d   : > { %v1384_v35 = vadd.f32 %v1382_v15, %v1374_v8  ;;  %v1070_v59 = vadd.f32 %v2556_v22, %v1069_v33  ;;  %v1219_v1 = vmin.f32 %v1218_v31, 6.0  ;;  %v1391_v53 = vsel %vm911_vm1, %v1389_v46, %v1390_v43 }
 0x23e   : > { %v1145_v27 = vadd.f32 %v2556_v22, %v1144_v25  ;;  %v1281_v29 = vadd.f32 %v1279_v2, %v1272_v57  ;;  %v1288_v50 = vsel %vm911_vm1, %v1286_v58, %v1287_v7  ;;  %v1001_v19 = vpack.c.bf16 %v1000_v16, %v1000_v16 }
 0x23f   : > { %v1393_v45 = vadd.f32 %v1391_v53, %v1384_v35  ;;  %v1071_v21 = vmax.f32 %v1070_v59, 0.0  ;;  %v1220_v36 = vpack.c.bf16 %v1219_v1, %v1219_v1  ;;  %v1344_v9 = vadd.f32 %v2716_v14, %v1340_v17 }
 0x240   : > { %v1146_v56 = vmax.f32 %v1145_v27, 0.0  ;;  %v1290_v6 = vadd.f32 %v1288_v50, %v1281_v29  ;;  %v1500_v55 = vadd.f32 %v2717_v44, %v1491_v41  ;;  %v1430_v31 = vmul.f32 %v2282_v60, %v2580_v51  ;;  %1002 = vst [vmem:[#allocation4] sm:$0xf] %v1001_v19 }
 0x241   : > { %v1397_v47 = vadd.f32 %v2548_v61, %v1393_v45  ;;  %v1072_v24 = vmin.f32 %v1071_v21, 6.0  ;;  %v1222_v57 = vrot.slane %v1220_v36, 4  ;;  %v1353_v7 = vadd.f32 %v2544_v63, %v1344_v9 }
 0x242   : > { %v1147_v2 = vmin.f32 %v1146_v56, 6.0  ;;  %v1291_v58 = vmul.f32 %v2526_v62, %v1290_v6  ;;  %v1509_v13 = vadd.f32 %v2718_v0, %v1500_v55  ;;  %v1424_v11 = vrot.slane %v2594_v32, 1  ;;  %v2719_v56 = vld [vmem:[#allocation5_spill] sm:$0xff]  ;;  %v2720_v55 = vld [vmem:[#allocation6_spill] sm:$0xff] }
 0x243   : > { %v1425_v10 = vrot.slane %v2598_v26, 1  ;;  %v1406_v3 = vadd.f32 %v2551_v30, %v1397_v47  ;;  %v1073_v41 = vpack.c.bf16 %v1072_v24, %v1072_v24  ;;  %1224 = vst [vmem:[#allocation4 + $0x8] sm:$0xf0] %v1222_v57  ;;  %v1362_v51 = vadd.f32 %v2578_v39, %v1353_v7 }
 0x244   : > { %v1148_v60 = vpack.c.bf16 %v1147_v2, %v1147_v2  ;;  %v1292_v61 = vadd.f32 %v2556_v22, %v1291_v58  ;;  %v1510_v8 = vmul.f32 %v2526_v62, %v1509_v13  ;;  %v1418_v63 = vmul.f32 %v2570_v23, %v2305_v37 }
 0x245   : > { %v1433_v54 = vrot.slane %v2604_v42, 2  ;;  %v1415_v32 = vadd.f32 %v2566_v18, %v1406_v3  ;;  %v1075_v12 = vrot.slane %v1073_v41, 4  ;;  %v1434_v26 = vrot.slane %v1430_v31, 2 }
 0x246   : > { %1149 = vst [vmem:[#allocation4 + $0x8] sm:$0xf] %v1148_v60  ;;  %v1293_v30 = vmax.f32 %v1292_v61, 0.0  ;;  %v1363_v5 = vmul.f32 %v2526_v62, %v1362_v51  ;;  %v1511_v40 = vadd.f32 %v2556_v22, %v1510_v8  ;;  %v1426_v39 = vsel %vm897_vm0, %v1424_v11, %v1425_v10 }
 0x247   : > { %1077 = vst [vmem:[#allocation4] sm:$0xf0] %v1075_v12  ;;  %v1419_v52 = vadd.f32 %v1418_v63, %v1415_v32  ;;  %v1435_v42 = vsel %vm911_vm1, %v1433_v54, %v1434_v26  ;;  %v1688_v6 = vunpack.c.l.bf16 %v2719_v56  ;;  %v1686_v31 = vunpack.c.l.bf16 %v2720_v55  ;;  %v2721_v54 = vld [vmem:[#allocation7_spill] sm:$0xff] }
 0x248   : > { %v1294_v49 = vmin.f32 %v1293_v30, 6.0  ;;  %v1364_v38 = vadd.f32 %v2556_v22, %v1363_v5  ;;  %v1512_v37 = vmax.f32 %v1511_v40, 0.0  ;;  %v1689_v2 = vunpack.c.h.bf16 %v2719_v56  ;;  %v2722_v5 = vld [vmem:[#allocation8_spill] sm:$0xff] }
 0x249   : > { %v1428_v23 = vadd.f32 %v1426_v39, %v1419_v52  ;;  %v1687_v0 = vunpack.c.h.bf16 %v2720_v55  ;;  %v1692_v32 = vunpack.c.l.bf16 %v2721_v54  ;;  %v1690_v40 = vunpack.c.l.bf16 %v2722_v5 }
 0x24a   : > { %v1295_v18 = vpack.c.bf16 %v1294_v49, %v1294_v49  ;;  %v1365_v4 = vmax.f32 %v1364_v38, 0.0  ;;  %v1513_v48 = vmin.f32 %v1512_v37, 6.0  ;;  %v1693_v38 = vunpack.c.h.bf16 %v2721_v54 }
 0x24b   : > { %v1437_v34 = vadd.f32 %v1435_v42, %v1428_v23  ;;  %v1691_v42 = vunpack.c.h.bf16 %v2722_v5 }
 0x24c   : > { %1296 = vst [vmem:[#allocation4 + $0x10] sm:$0xf] %v1295_v18  ;;  %v1366_v20 = vmin.f32 %v1365_v4, 6.0  ;;  %v1514_v46 = vpack.c.bf16 %v1513_v48, %v1513_v48 }
 0x24d   : > { %v1520_v28 = vld [vmem:[#allocation4 + $0x8] sm:$0xff]  ;;  %v1438_v33 = vmul.f32 %v2526_v62, %v1437_v34  ;;  %v1841_v62 = vld [vmem:[%s2691_s11] ss:$0 sm:$0xff] }
 0x24e   : > { %v1519_v17 = vld [vmem:[#allocation4] sm:$0xff]  ;;  %v1367_v15 = vpack.c.bf16 %v1366_v20, %v1366_v20  ;;  %v1516_v43 = vrot.slane %v1514_v46, 4 }
 0x24f   : > { %1986 = vmatprep.mubr.bf16.mxu0 %v1519_v17  ;;  %v1439_v25 = vadd.f32 %v2556_v22, %v1438_v33  ;;  %v1842_v22 = vld [vmem:[%s2692_s12] ss:$0 sm:$0xff] }
 0x250   : > { %1987 = vmatmul.mubr.bf16.vlgmr.msra.gmra.mrb[8].mxu0 %v1520_v28  ;;  %v1369_v35 = vrot.slane %v1367_v15, 4  ;;  %1518 = vst [vmem:[#allocation4 + $0x18] sm:$0xf0] %v1516_v43 }
 0x251   : > { %v1440_v16 = vmax.f32 %v1439_v25, 0.0 }
 0x252   : > { %1371 = vst [vmem:[#allocation4 + $0x10] sm:$0xf0] %v1369_v35 }
 0x253   : > { %v1441_v59 = vmin.f32 %v1440_v16, 6.0 }
 0x255   : > { %v1442_v1 = vpack.c.bf16 %v1441_v59, %v1441_v59 }
 0x257   : > { %1443 = vst [vmem:[#allocation4 + $0x18] sm:$0xf] %v1442_v1 }
 0x259   : > { %v1521_v53 = vld [vmem:[#allocation4 + $0x10] sm:$0xff] }
 0x25a   : > { %1990 = vmatprep.mubr.bf16.mxu1 %v1521_v53 }
 0x25e   : > { %v1522_v27 = vld [vmem:[#allocation4 + $0x18] sm:$0xff] }
 0x25f   : > { %1991 = vmatmul.mubr.bf16.vlgmr.msra.gmra.mrb[8].mxu1 %v1522_v27 }
 0x323   : > { %v1988_v29 = vpop.f32.mrb[8].mxu0 }
 0x324   : > { %v1661_v50 = vmul.f32 %v1988_v29, %v1841_v62  ;;  %v1621_v45 = vpop.f32.mrb[9].mxu0 }
 0x325   : > { %v1659_v19 = vmul.f32 %v1841_v62, %v1621_v45  ;;  %v1989_v21 = vpop.f32.mrb[10].mxu0 }
 0x326   : > { %v1676_v36 = vadd.f32 %v1842_v22, %v1661_v50  ;;  %v1662_v14 = vmul.f32 %v1989_v21, %v1841_v62  ;;  %v1624_v9 = vpop.f32.mrb[11].mxu0 }
 0x327   : > { %v1674_v44 = vadd.f32 %v1842_v22, %v1659_v19  ;;  %v1660_v47 = vmul.f32 %v1841_v62, %v1624_v9 }
 0x328   : > { %v1696_v24 = vadd.f32 %v1688_v6, %v1676_v36  ;;  %v1677_v57 = vadd.f32 %v1842_v22, %v1662_v14 }
 0x329   : > { %v1694_v58 = vadd.f32 %v1686_v31, %v1674_v44  ;;  %v1675_v7 = vadd.f32 %v1842_v22, %v1660_v47 }
 0x32a   : > { %v1697_v13 = vadd.f32 %v1689_v2, %v1677_v57 }
 0x32b   : > { %v1695_v11 = vadd.f32 %v1687_v0, %v1675_v7 }
 0x32c   : > { %v1871_v10 = vpack.c.bf16 %v1697_v13, %v1696_v24 }
 0x32d   : > { %v1866_v3 = vpack.c.bf16 %v1695_v11, %v1694_v58 }
 0x32e   : > { %1883 = vst [vmem:[%s440_s14 + $0x8] sm:$0xff] %v1871_v10  }
 0x32f   : > { %1867 = vst [vmem:[%s440_s14] sm:$0xff] %v1866_v3  }
 0x332   : > { %v1992_v41 = vpop.f32.mrb[8].mxu1 }
 0x333   : > { %v1665_v60 = vmul.f32 %v1992_v41, %v1841_v62  ;;  %v1637_v61 = vpop.f32.mrb[9].mxu1 }
 0x334   : > { %v1663_v51 = vmul.f32 %v1841_v62, %v1637_v61  ;;  %v1993_v8 = vpop.f32.mrb[10].mxu1 }
 0x335   : > { %v1680_v63 = vadd.f32 %v1842_v22, %v1665_v60  ;;  %v1666_v12 = vmul.f32 %v1993_v8, %v1841_v62  ;;  %v1640_v26 = vpop.f32.mrb[11].mxu1 }
 0x336   : > { %v1678_v30 = vadd.f32 %v1842_v22, %v1663_v51  ;;  %v1664_v52 = vmul.f32 %v1841_v62, %v1640_v26 }
 0x337   : > { %v1700_v39 = vadd.f32 %v1692_v32, %v1680_v63  ;;  %v1681_v49 = vadd.f32 %v1842_v22, %v1666_v12 }
 0x338   : > { %v1698_v37 = vadd.f32 %v1690_v40, %v1678_v30  ;;  %v1679_v23 = vadd.f32 %v1842_v22, %v1664_v52 }
 0x339   : > { %v1701_v18 = vadd.f32 %v1693_v38, %v1681_v49 }
 0x33a   : > { %v1699_v4 = vadd.f32 %v1691_v42, %v1679_v23 }
 0x33b   : > { %v1881_v48 = vpack.c.bf16 %v1701_v18, %v1700_v39 }
 0x33c   : > { %v1876_v34 = vpack.c.bf16 %v1699_v4, %v1698_v37 }
 0x33d   : > { %1885 = vst [vmem:[%s440_s14 + $0x18] sm:$0xff] %v1881_v48  }
 0x33e   : > { %1884 = vst [vmem:[%s440_s14 + $0x10] sm:$0xff] %v1876_v34  }
 0x33f PF: > { %s23_s25 = sadd.s32 1, %s2053_s25  }
 0x340   : > { %p20_p4 = scmp.ge.s32.totalorder %s23_s25, 4  }
 0x342   :  { %22 = sbr.rel (!%p20_p4) target bundleno = 1 (0x1), region = 111 }

// kernel: _backbone.3
= control target key start
LH: loop header
LB: loop body
LE: loop exit
PB: predicated region body
PF: predicated region fallthrough
CT: control target
= control target key end

     0   :  { %s2951_s0 = inlined_call_operand.vmem [shape: bf16[2,32,128], index: 0, kind: input, shape index: {}]   ;;  %s2952_s1 = inlined_call_operand.vmem [shape: bf16[2,32,128], index: 1, kind: input, shape index: {}]   ;;  %s2953_s2 = inlined_call_operand.vmem [shape: bf16[128,128], index: 2, kind: input, shape index: {}]   ;;  %s2954_s3 = inlined_call_operand.vmem [shape: f32[1,128], index: 3, kind: input, shape index: {}]   ;;  %s2955_s4 = inlined_call_operand.vmem [shape: f32[1,128], index: 4, kind: input, shape index: {}]   ;;  %s2956_s5 = inlined_call_operand.vmem [shape: f32[9,128], index: 5, kind: input, shape index: {}]   ;;  %s2957_s6 = inlined_call_operand.vmem [shape: f32[1,128], index: 6, kind: input, shape index: {}]   ;;  %s2958_s7 = inlined_call_operand.vmem [shape: f32[1,128], index: 7, kind: input, shape index: {}]   ;;  %s2959_s8 = inlined_call_operand.vmem [shape: bf16[128,128], index: 8, kind: input, shape index: {}]   ;;  %s2960_s9 = inlined_call_operand.vmem [shape: f32[1,128], index: 9, kind: input, shape index: {}]   ;;  %s2961_s10 = inlined_call_operand.vmem [shape: f32[1,128], index: 10, kind: input, shape index: {}]   ;;  %s2962_s11 = inlined_call_operand.vmem [shape: bf16[128,128], index: 11, kind: input, shape index: {}]   ;;  %s2963_s12 = inlined_call_operand.vmem [shape: f32[1,128], index: 12, kind: input, shape index: {}]   ;;  %s2964_s13 = inlined_call_operand.vmem [shape: f32[1,128], index: 13, kind: input, shape index: {}]   ;;  %s2965_s14 = inlined_call_operand.vmem [shape: f32[9,128], index: 14, kind: input, shape index: {}]   ;;  %s2966_s15 = inlined_call_operand.vmem [shape: f32[1,128], index: 15, kind: input, shape index: {}]   ;;  %s2967_s16 = inlined_call_operand.vmem [shape: f32[1,128], index: 16, kind: input, shape index: {}]   ;;  %s2968_s17 = inlined_call_operand.vmem [shape: bf16[128,128], index: 17, kind: input, shape index: {}]   ;;  %s2969_s18 = inlined_call_operand.vmem [shape: f32[1,128], index: 18, kind: input, shape index: {}]   ;;  %s2970_s19 = inlined_call_operand.vmem [shape: f32[1,128], index: 19, kind: input, shape index: {}]   ;;  %s2971_s20 = inlined_call_operand.vmem [shape: bf16[128,128], index: 20, kind: input, shape index: {}]   ;;  %s2972_s21 = inlined_call_operand.vmem [shape: f32[1,128], index: 21, kind: input, shape index: {}]   ;;  %s2973_s22 = inlined_call_operand.vmem [shape: f32[1,128], index: 22, kind: input, shape index: {}]   ;;  %s2974_s23 = inlined_call_operand.vmem [shape: bf16[2,1,128], index: 23, kind: output, shape index: {}]  }
   0x1   :  { %2978 = sst [smem:[#allocation9_spill]] %s2951_s0 }
   0x2   :  { %2979 = sst [smem:[#allocation10_spill]] %s2952_s1 }
   0x3   :  { %2980 = sst [smem:[#allocation11_spill]] %s2953_s2 }
   0x4   :  { %2981 = sst [smem:[#allocation12_spill]] %s2954_s3 }
   0x5   :  { %2982 = sst [smem:[#allocation13_spill]] %s2955_s4  ;;  %s2515_s4 = smov 0  }
   0x6   :  { %2983 = sst [smem:[#allocation14_spill]] %s2956_s5 }
   0x7   :  { %2984 = sst [smem:[#allocation15_spill]] %s2957_s6 }
   0x8   :  { %2985 = sst [smem:[#allocation16_spill]] %s2958_s7 }
   0x9 LB: > { %2986 = sst [smem:[#allocation8_spill]] %s2391_s4  ;;  %s2082_s30 = sadd.s32 4294967295, %s2391_s4   ;;  %s2391_s4 = sphi %s2515_s4, %s33_s4  }
   0xa   : > { %p2086_p0 = scmp.ge.s32.totalorder %s2391_s4, 1  ;;  %p647_p1 = scmp.lt.s32.totalorder %s2391_s4, 3 }
   0xc   : > { %p648_p2 = pnand %p2086_p0, %p647_p1 }
   0xd   : > { %s2987_s5 = sld [smem:[#allocation11_spill]] (!%p648_p2)  ;;  %p714_p3 = scmp.lt.s32.totalorder (!%p648_p2), %s2082_s30, 1  ;;  %v2393_v12 = vmov (!%p648_p2), 0.0   ;;  %v2353_v13 = vld [vmem:[%s2959_s8] sm:$0xff] (!%p648_p2)   ;;  %v2354_v14 = vld [vmem:[%s2959_s8 + $0x8] sm:$0xff] (!%p648_p2)   ;;  %v2355_v15 = vld [vmem:[%s2959_s8 + $0x10] sm:$0xff] (!%p648_p2)   ;;  %v1022_v27 = vlaneseq (!%p648_p2) }
   0xe   : > { %651 = sbr.rel (%p648_p2) target bundleno = 1288 (0x508), region = 112  ;;  %s2988_s29 = sld [smem:[#allocation9_spill]] (!%p648_p2)  ;;  %736 = vst [vmem:[#allocation2 + $0x28] sm:$0x1] (!%p648_p2), %v2393_v12  ;;  %737 = vst [vmem:[#allocation2 + $0x30] sm:$0x1] (!%p648_p2), %v2393_v12 }
   0xf   : > { %s2989_s26 = sld [smem:[#allocation10_spill]] (!%p648_p2)  ;;  %728 = vst [vmem:[#allocation2] sm:$0x1f] (!%p648_p2), %v2393_v12  ;;  %732 = vst [vmem:[#allocation2 + $0x8] sm:$0x1] (!%p648_p2), %v2393_v12  ;;  %vm2394_vm0 = vmmov (!%p648_p2), 0  }
  0x10   : > { %733 = vst [vmem:[#allocation2 + $0x10] sm:$0x1] (!%p648_p2), %v2393_v12  ;;  %734 = vst [vmem:[#allocation2 + $0x18] sm:$0x1] (!%p648_p2), %v2393_v12  ;;  %v2356_v16 = vld [vmem:[%s2959_s8 + $0x18] sm:$0xff] (!%p648_p2)   ;;  %v2357_v17 = vld [vmem:[%s2959_s8 + $0x20] sm:$0xff] (!%p648_p2)  }
  0x11   : > { %735 = vst [vmem:[#allocation2 + $0x20] sm:$0x1] (!%p648_p2), %v2393_v12  ;;  %738 = vst [vmem:[#allocation2 + $0x38] sm:$0x1] (!%p648_p2), %v2393_v12  ;;  %v2358_v18 = vld [vmem:[%s2959_s8 + $0x28] sm:$0xff] (!%p648_p2)   ;;  %v2359_v19 = vld [vmem:[%s2959_s8 + $0x30] sm:$0xff] (!%p648_p2)  }
  0x12   : > { %739 = vst [vmem:[#allocation2 + $0x40] sm:$0x1] (!%p648_p2), %v2393_v12  ;;  %741 = vst [vmem:[#allocation3] sm:$0xf] (!%p648_p2), %v2393_v12  ;;  %v2360_v20 = vld [vmem:[%s2959_s8 + $0x38] sm:$0xff] (!%p648_p2)   ;;  %v2361_v21 = vld [vmem:[%s2962_s11] sm:$0xff] (!%p648_p2)  }
  0x13   : > { %v2341_v0 = vld [vmem:[%s2987_s5] sm:$0xff] (!%p648_p2)   ;;  %v2342_v1 = vld [vmem:[%s2987_s5 + $0x8] sm:$0xff] (!%p648_p2)   ;;  %v2343_v2 = vld [vmem:[%s2987_s5 + $0x10] sm:$0xff] (!%p648_p2)   ;;  %1378 = vst [vmem:[#allocation6] sm:$0x3f] (!%p648_p2), %v2393_v12  ;;  %v2651_v28 = vshrl.u32 (!%p648_p2), %v1022_v27, 7 }
  0x14   : > { %2211 = vmatprep.subr.bf16.mxu0 (!%p648_p2), %v2341_v0  ;;  %2231 = vmatprep.subr.bf16.mxu1 (!%p648_p2), %v2341_v0  ;;  %v2344_v3 = vld [vmem:[%s2987_s5 + $0x18] sm:$0xff] (!%p648_p2)   ;;  %v2345_v6 = vld [vmem:[%s2987_s5 + $0x20] sm:$0xff] (!%p648_p2)   ;;  %v2346_v7 = vld [vmem:[%s2987_s5 + $0x28] sm:$0xff] (!%p648_p2)   ;;  %1380 = vst [vmem:[#allocation6 + $0x28] sm:$0x3f] (!%p648_p2), %v2393_v12  ;;  %s2991_s7 = sld [smem:[#allocation14_spill]] (!%p648_p2) }
  0x15   : > { %s2997_s30 = smov (!%p714_p3, %s2082_s30), 1  ;;  %2212 = vmatpush3.bf16.msra.mxu0 %v2341_v0  ;;  %2232 = vmatpush3.bf16.msra.mxu1 %v2341_v0  ;;  %v2347_v8 = vld [vmem:[%s2987_s5 + $0x30] sm:$0xff]   ;;  %v2348_v9 = vld [vmem:[%s2987_s5 + $0x38] sm:$0xff]   ;;  %1382 = vst [vmem:[#allocation6 + $0x8] sm:$0x1] %v2393_v12  ;;  %v2362_v22 = vld [vmem:[%s2962_s11 + $0x8] sm:$0xff]  }
  0x16   : > { %2213 = vmatprep.subr.bf16.mxu0 %v2342_v1  ;;  %2233 = vmatprep.subr.bf16.mxu1 %v2342_v1  ;;  %s2153_s27 = sshll.u32 %s2997_s30, 4  ;;  %1383 = vst [vmem:[#allocation6 + $0x10] sm:$0x1] %v2393_v12  ;;  %1384 = vst [vmem:[#allocation6 + $0x18] sm:$0x1] %v2393_v12  ;;  %v2363_v23 = vld [vmem:[%s2962_s11 + $0x10] sm:$0xff]  }
  0x17   : > { %s2538_s3 = scalar_lea.vmem %s2988_s29, %s2153_s27  ;;  %s2546_s4 = scalar_lea.vmem %s2989_s26, %s2153_s27  ;;  %1385 = vst [vmem:[#allocation6 + $0x20] sm:$0x1] %v2393_v12  ;;  %1388 = vst [vmem:[#allocation6 + $0xd] sm:$0x1] %v2393_v12  ;;  %v2364_v24 = vld [vmem:[%s2962_s11 + $0x18] sm:$0xff]   ;;  %v2365_v25 = vld [vmem:[%s2962_s11 + $0x20] sm:$0xff]  }
  0x18   : > { %v2349_v4 = vld [vmem:[%s2538_s3] sm:$0xff]   ;;  %v2351_v10 = vld [vmem:[%s2538_s3 + $0x8] sm:$0xff]   ;;  %1389 = vst [vmem:[#allocation6 + $0x15] sm:$0x1] %v2393_v12  ;;  %1390 = vst [vmem:[#allocation6 + $0x1d] sm:$0x1] %v2393_v12  ;;  %s726_s27 = scalar_lea.vmem %s2974_s23, %s2997_s30 }
  0x19   : > { %2214 = vmatpush3.bf16.msra.mxu0 %v2342_v1  ;;  %2234 = vmatpush3.bf16.msra.mxu1 %v2342_v1  ;;  %v2350_v5 = vld [vmem:[%s2546_s4] sm:$0xff]   ;;  %v2352_v11 = vld [vmem:[%s2546_s4 + $0x8] sm:$0xff]   ;;  %1391 = vst [vmem:[#allocation6 + $0x25] sm:$0x1] %v2393_v12  ;;  %731 = vst [vmem:[#allocation2] sm:$0x1] %v2393_v12 }
  0x1a   : > { %2215 = vmatprep.subr.bf16.mxu0 %v2343_v2  ;;  %2235 = vmatprep.subr.bf16.mxu1 %v2343_v2  ;;  %1381 = vst [vmem:[#allocation6] sm:$0x1] %v2393_v12  ;;  %1386 = vst [vmem:[#allocation6 + $0x28] sm:$0x1] %v2393_v12  ;;  %v2366_v26 = vld [vmem:[%s2962_s11 + $0x28] sm:$0xff]   ;;  %v1030_v29 = vsub.s32 1, %v2651_v28 }
  0x1b   : > { %2227 = vmatprep.mubr.bf16.mxu0 %v2349_v4  ;;  %2247 = vmatprep.mubr.bf16.mxu1 %v2350_v5  ;;  %1387 = vst [vmem:[#allocation6 + $0x5] sm:$0x1] %v2393_v12  ;;  %1392 = vst [vmem:[#allocation6 + $0x2d] sm:$0x1] %v2393_v12  ;;  %s2990_s26 = sld [smem:[#allocation12_spill]]  ;;  %v2660_v31 = vld [vmem:[%s2991_s7] sm:$0xff] }
  0x1c   : > { %v1024_v32 = vsub.s32 0, %v2651_v28  ;;  %v1036_v33 = vsub.s32 2, %v2651_v28  ;;  %s2992_s29 = sld [smem:[#allocation13_spill]]  ;;  %v2670_v38 = vrot.slane %v2660_v31, %v1030_v29  ;;  %v1021_v5 = vld [vmem:[#allocation3] sm:$0xf]  ;;  %s2993_s25 = sld [smem:[#allocation15_spill]] }
  0x1d   : > { %2216 = vmatpush3.bf16.msra.mxu0 %v2343_v2  ;;  %2236 = vmatpush3.bf16.msra.mxu1 %v2343_v2  ;;  %s2994_s2 = sld [smem:[#allocation16_spill]]  ;;  %vm2017_vm1 = vcmask 1040384   ;;  %vm2018_vm2 = vsmask.f32 256 }
  0x1e   : > { %2217 = vmatprep.subr.bf16.mxu0 %v2344_v3  ;;  %2237 = vmatprep.subr.bf16.mxu1 %v2344_v3  ;;  %v2675_v42 = vrot.slane %v2660_v31, %v1024_v32  ;;  %v2680_v43 = vrot.slane %v2660_v31, %v1036_v33  ;;  %vm2019_vm3 = vmand %vm2017_vm1, %vm2018_vm2 }
  0x20   : > { %v1020_v0 = vld [vmem:[#allocation2] sm:$0x1f] }
  0x21   : > { %2218 = vmatpush3.bf16.msra.mxu0 %v2344_v3  ;;  %2238 = vmatpush3.bf16.msra.mxu1 %v2344_v3  ;;  %v2101_v30 = vld [vmem:[%s2990_s26] ss:$0 sm:$0xff] }
  0x22   : > { %2219 = vmatprep.subr.bf16.mxu0 %v2345_v6  ;;  %2239 = vmatprep.subr.bf16.mxu1 %v2345_v6  ;;  %v2102_v34 = vld [vmem:[%s2992_s29] ss:$0 sm:$0xff] }
  0x25   : > { %2220 = vmatpush3.bf16.msra.mxu0 %v2345_v6  ;;  %2240 = vmatpush3.bf16.msra.mxu1 %v2345_v6 }
  0x26   : > { %2221 = vmatprep.subr.bf16.mxu0 %v2346_v7  ;;  %2241 = vmatprep.subr.bf16.mxu1 %v2346_v7 }
  0x29   : > { %2222 = vmatpush3.bf16.msra.mxu0 %v2346_v7  ;;  %2242 = vmatpush3.bf16.msra.mxu1 %v2346_v7 }
  0x2a   : > { %2223 = vmatprep.subr.bf16.mxu0 %v2347_v8  ;;  %2243 = vmatprep.subr.bf16.mxu1 %v2347_v8 }
  0x2d   : > { %2224 = vmatpush3.bf16.msra.mxu0 %v2347_v8  ;;  %2244 = vmatpush3.bf16.msra.mxu1 %v2347_v8 }
  0x2e   : > { %2225 = vmatprep.subr.bf16.mxu0 %v2348_v9  ;;  %2245 = vmatprep.subr.bf16.mxu1 %v2348_v9 }
  0x31   : > { %2226 = vmatpush3.bf16.msra.mxu0 %v2348_v9  ;;  %2246 = vmatpush3.bf16.msra.mxu1 %v2348_v9 }
  0x32   : > { %2251 = vmatprep.subr.bf16.mxu0 %v2393_v12  ;;  %2271 = vmatprep.subr.bf16.mxu1 %v2393_v12 }
  0x34   : > { %2228 = vmatmul.mubr.bf16.vlgmr.msra.gmra.mrb[0].mxu0 %v2351_v10  ;;  %2248 = vmatmul.mubr.bf16.vlgmr.msra.gmra.mrb[0].mxu1 %v2352_v11 }
  0x35   : > { %2252 = vmatpush3.bf16.msra.mxu0 %v2353_v13  ;;  %2267 = vmatprep.mubr.msk.bf16.mxu0 %vm2394_vm0, %v2393_v12  ;;  %v1026_v13 = vmul.f32 %v2675_v42, %v1020_v0 }
  0x36   : > { %2253 = vmatprep.subr.bf16.mxu0 %v2393_v12  ;;  %2287 = vmatprep.mubr.msk.bf16.mxu1 %vm2394_vm0, %v2393_v12 }
  0x37   : > { %2272 = vmatpush3.bf16.msra.mxu1 %v2361_v21  ;;  %v1059_v21 = vsub.s32 5, %v2651_v28 }
  0x38   : > { %2273 = vmatprep.subr.bf16.mxu1 %v2393_v12 }
  0x39   : > { %2254 = vmatpush3.bf16.msra.mxu0 %v2354_v14 }
  0x3a   : > { %2255 = vmatprep.subr.bf16.mxu0 %v2393_v12 }
  0x3b   : > { %2274 = vmatpush3.bf16.msra.mxu1 %v2362_v22  ;;  %v1053_v22 = vsub.s32 4, %v2651_v28 }
  0x3c   : > { %2275 = vmatprep.subr.bf16.mxu1 %v2393_v12 }
  0x3d   : > { %2256 = vmatpush3.bf16.msra.mxu0 %v2355_v15 }
  0x3e   : > { %2257 = vmatprep.subr.bf16.mxu0 %v2393_v12 }
  0x3f   : > { %2276 = vmatpush3.bf16.msra.mxu1 %v2363_v23 }
  0x40   : > { %2277 = vmatprep.subr.bf16.mxu1 %v2393_v12 }
  0x41   : > { %2258 = vmatpush3.bf16.msra.mxu0 %v2356_v16  ;;  %v1032_v16 = vmul.f32 %v2670_v38, %v1021_v5 }
  0x42   : > { %2259 = vmatprep.subr.bf16.mxu0 %v2393_v12 }
  0x43   : > { %2278 = vmatpush3.bf16.msra.mxu1 %v2364_v24  ;;  %v1033_v23 = vadd.f32 %v1032_v16, %v1026_v13 }
  0x44   : > { %2279 = vmatprep.subr.bf16.mxu1 %v2393_v12 }
  0x45   : > { %2260 = vmatpush3.bf16.msra.mxu0 %v2357_v17  ;;  %v1038_v17 = vmul.f32 %v2680_v43, %v1020_v0 }
  0x46   : > { %2261 = vmatprep.subr.bf16.mxu0 %v2393_v12 }
  0x47   : > { %2280 = vmatpush3.bf16.msra.mxu1 %v2365_v25  ;;  %v1040_v24 = vrot.slane %v1038_v17, 1 }
  0x48   : > { %2281 = vmatprep.subr.bf16.mxu1 %v2393_v12 }
  0x49   : > { %2262 = vmatpush3.bf16.msra.mxu0 %v2358_v18 }
  0x4a   : > { %2263 = vmatprep.subr.bf16.mxu0 %v2393_v12 }
  0x4b   : > { %2282 = vmatpush3.bf16.msra.mxu1 %v2366_v26 }
  0x4c   : > { %2283 = vmatprep.subr.bf16.mxu1 %v2393_v12 }
  0x4d   : > { %2264 = vmatpush3.bf16.msra.mxu0 %v2359_v19 }
  0x4e   : > { %2265 = vmatprep.subr.bf16.mxu0 %v2393_v12 }
  0x51   : > { %2266 = vmatpush3.bf16.msra.mxu0 %v2360_v20  ;;  %v1047_v20 = vsub.s32 3, %v2651_v28 }
  0x52   : > { %2291 = vmatprep.subr.bf16.mxu0 %v2393_v12 }
  0x53   : > { %v2691_v26 = vrot.slane %v2660_v31, %v1047_v20 }
 0x107   : > { %v2229_v35 = vpop.f32.mrb[0].mxu0  ;;  %v2249_v36 = vpop.f32.mrb[0].mxu1 }
 0x108   : > { %v883_v37 = vmul.f32 %v2229_v35, %v2101_v30  ;;  %v970_v39 = vmul.f32 %v2249_v36, %v2101_v30  ;;  %v860_v40 = vpop.f32.mrb[1].mxu0  ;;  %v953_v41 = vpop.f32.mrb[1].mxu1  ;;  %v2703_v36 = vrot.slane %v2660_v31, %v1053_v22 }
 0x109   : > { %v881_v44 = vmul.f32 %v2101_v30, %v860_v40  ;;  %v968_v45 = vmul.f32 %v2101_v30, %v953_v41  ;;  %v2230_v46 = vpop.f32.mrb[2].mxu0  ;;  %v2250_v47 = vpop.f32.mrb[2].mxu1  ;;  %v1042_v40 = vadd.f32 %v1040_v24, %v1033_v23 }
 0x10a   : > { %v893_v48 = vadd.f32 %v2102_v34, %v883_v37  ;;  %v974_v49 = vadd.f32 %v2102_v34, %v970_v39  ;;  %v884_v50 = vmul.f32 %v2230_v46, %v2101_v30  ;;  %v971_v51 = vmul.f32 %v2250_v47, %v2101_v30  ;;  %v863_v52 = vpop.f32.mrb[3].mxu0  ;;  %v956_v53 = vpop.f32.mrb[3].mxu1 }
 0x10b   : > { %v891_v54 = vadd.f32 %v2102_v34, %v881_v44  ;;  %v972_v55 = vadd.f32 %v2102_v34, %v968_v45  ;;  %v882_v56 = vmul.f32 %v2101_v30, %v863_v52  ;;  %v969_v57 = vmul.f32 %v2101_v30, %v956_v53 }
 0x10c   : > { %v897_v58 = vmax.f32 %v893_v48, 0.0  ;;  %v978_v59 = vmax.f32 %v974_v49, 0.0  ;;  %v894_v60 = vadd.f32 %v2102_v34, %v884_v50  ;;  %v975_v61 = vadd.f32 %v2102_v34, %v971_v51  ;;  %v2711_v48 = vld [vmem:[%s2991_s7 + $0x8] ss:$0 sm:$0xff] }
 0x10d   : > { %v895_v62 = vmax.f32 %v891_v54, 0.0  ;;  %v976_v63 = vmax.f32 %v972_v55, 0.0  ;;  %v892_v1 = vadd.f32 %v2102_v34, %v882_v56  ;;  %v973_v2 = vadd.f32 %v2102_v34, %v969_v57 }
 0x10e   : > { %v901_v3 = vmin.f32 %v897_v58, 6.0  ;;  %v982_v4 = vmin.f32 %v978_v59, 6.0  ;;  %v898_v6 = vmax.f32 %v894_v60, 0.0  ;;  %v979_v7 = vmax.f32 %v975_v61, 0.0 }
 0x10f   : > { %v899_v8 = vmin.f32 %v895_v62, 6.0  ;;  %v980_v9 = vmin.f32 %v976_v63, 6.0  ;;  %v896_v10 = vmax.f32 %v892_v1, 0.0  ;;  %v977_v11 = vmax.f32 %v973_v2, 0.0 }
 0x110   : > { %1001 = vst [vmem:[#allocation3 + $0x14] sm:$0xff] %v901_v3   ;;  %1003 = vst [vmem:[#allocation2 + $0x29] ss:$8 sps:$4 sm:$0xff] %v982_v4   ;;  %v902_v14 = vmin.f32 %v898_v6, 6.0  ;;  %v983_v15 = vmin.f32 %v979_v7, 6.0  ;;  %v2697_v30 = vrot.slane %v2660_v31, %v1059_v21  ;;  %v1070_v34 = vsub.s32 6, %v2651_v28 }
 0x111   : > { %985 = vst [vmem:[#allocation3 + $0x4] sm:$0xff] %v899_v8   ;;  %987 = vst [vmem:[#allocation2 + $0x9] ss:$8 sps:$4 sm:$0xff] %v980_v9   ;;  %v900_v18 = vmin.f32 %v896_v10, 6.0  ;;  %v981_v19 = vmin.f32 %v977_v11, 6.0  ;;  %v1076_v37 = vsub.s32 7, %v2651_v28 }
 0x112   : > { %1009 = vst [vmem:[#allocation3 + $0x1c] sm:$0xff] %v902_v14   ;;  %1011 = vst [vmem:[#allocation2 + $0x39] ss:$8 sps:$4 sm:$0xff] %v983_v15   ;;  %v2718_v52 = vrot.slane %v2660_v31, %v1070_v34 }
 0x113   : > { %993 = vst [vmem:[#allocation3 + $0xc] sm:$0xff] %v900_v18   ;;  %995 = vst [vmem:[#allocation2 + $0x19] ss:$8 sps:$4 sm:$0xff] %v981_v19   ;;  %v2727_v61 = vrot.slane %v2660_v31, %v1076_v37 }
 0x117   : > { %v1192_v25 = vld [vmem:[#allocation3 + $0x18] sm:$0xf]  ;;  %v1191_v35 = vld [vmem:[#allocation2 + $0x30] sm:$0x1f] }
 0x118   : > { %v1195_v27 = vmul.f32 %v1192_v25, %v2670_v38  ;;  %v1108_v39 = vld [vmem:[#allocation3 + $0x8] sm:$0xf]  ;;  %v1193_v41 = vmul.f32 %v1191_v35, %v2675_v42  ;;  %v1197_v44 = vmul.f32 %v1191_v35, %v2680_v43  ;;  %v1044_v45 = vld [vmem:[#allocation3 + $0x4] sm:$0xf]  ;;  %v1043_v46 = vld [vmem:[#allocation2 + $0x8] sm:$0x1f] }
 0x119   : > { %v1107_v47 = vld [vmem:[#allocation2 + $0x10] sm:$0x1f]  ;;  %v1111_v49 = vmul.f32 %v1108_v39, %v2670_v38  ;;  %v1049_v50 = vmul.f32 %v2691_v26, %v1043_v46  ;;  %v1061_v55 = vmul.f32 %v2697_v30, %v1043_v46  ;;  %v1055_v56 = vmul.f32 %v2703_v36, %v1044_v45  ;;  %v1202_v60 = vld [vmem:[#allocation2 + $0x38] sm:$0x1f]  ;;  %v1203_v5 = vld [vmem:[#allocation3 + $0x1c] sm:$0xf] }
 0x11a   : > { %v1066_v51 = vld [vmem:[#allocation2 + $0x10] sm:$0x1f]  ;;  %v1196_v53 = vadd.f32 %v1195_v27, %v1193_v41  ;;  %v1199_v54 = vrot.slane %v1197_v44, 1  ;;  %v1109_v58 = vmul.f32 %v1107_v47, %v2675_v42  ;;  %v1113_v59 = vmul.f32 %v1107_v47, %v2680_v43  ;;  %v1067_v63 = vld [vmem:[#allocation3 + $0x8] sm:$0xf] }
 0x11b   : > { %v1050_v57 = vadd.f32 %v1049_v50, %v1042_v40  ;;  %v1084_v0 = vmul.f32 %v2711_v48, %v1066_v51  ;;  %v1063_v2 = vrot.slane %v1061_v55, 1  ;;  %v1150_v6 = vld [vmem:[#allocation3 + $0x10] sm:$0xf]  ;;  %v1204_v7 = vmul.f32 %v1202_v60, %v2691_v26  ;;  %v1118_v9 = vld [vmem:[#allocation2 + $0x18] sm:$0x1f] }
 0x11c   : > { %v1201_v62 = vadd.f32 %v1199_v54, %v1196_v53  ;;  %v1112_v3 = vadd.f32 %v1111_v49, %v1109_v58  ;;  %v1115_v4 = vrot.slane %v1113_v59, 1  ;;  %v1208_v8 = vmul.f32 %v1202_v60, %v2697_v30  ;;  %v1149_v13 = vld [vmem:[#allocation2 + $0x20] sm:$0x1f]  ;;  %v1119_v18 = vld [vmem:[#allocation3 + $0xc] sm:$0xf] }
 0x11d   : > { %v1056_v1 = vadd.f32 %v1055_v56, %v1050_v57  ;;  %v1072_v11 = vmul.f32 %v2718_v52, %v1066_v51  ;;  %v1078_v14 = vmul.f32 %v2727_v61, %v1067_v63  ;;  %v1206_v15 = vmul.f32 %v1203_v5, %v2703_v36  ;;  %v1213_v17 = vld [vmem:[#allocation2 + $0x40] sm:$0x1f]  ;;  %v1160_v35 = vld [vmem:[#allocation2 + $0x28] sm:$0x1f]  ;;  %v1214_v46 = vld [vmem:[#allocation3 + $0x20] sm:$0xf] }
 0x11e   : > { %v1117_v31 = vadd.f32 %v1115_v4, %v1112_v3  ;;  %v1205_v16 = vadd.f32 %v1204_v7, %v1201_v62  ;;  %v1153_v19 = vmul.f32 %v1150_v6, %v2670_v38  ;;  %v1086_v24 = vrot.slane %v1084_v0, 1  ;;  %v1129_v53 = vld [vmem:[#allocation2 + $0x20] sm:$0x1f] }
 0x11f   : > { %v1065_v10 = vadd.f32 %v1063_v2, %v1056_v1  ;;  %v1120_v25 = vmul.f32 %v1118_v9, %v2691_v26  ;;  %v1124_v27 = vmul.f32 %v1118_v9, %v2697_v30  ;;  %v1210_v40 = vrot.slane %v1208_v8, 1  ;;  %v2106_v56 = vld [vmem:[%s2993_s25] ss:$0 sm:$0xff]  ;;  %v1171_v9 = vld [vmem:[#allocation2 + $0x30] sm:$0x1f] }
 0x120   : > { %v1207_v39 = vadd.f32 %v1206_v15, %v1205_v16  ;;  %v1151_v41 = vmul.f32 %v1149_v13, %v2675_v42  ;;  %v1155_v44 = vmul.f32 %v1149_v13, %v2680_v43  ;;  %v1215_v47 = vmul.f32 %v1213_v17, %v2718_v52  ;;  %v1161_v42 = vld [vmem:[#allocation3 + $0x14] sm:$0xf]  ;;  %v1130_v0 = vld [vmem:[#allocation3 + $0x10] sm:$0xf]  ;;  %v1172_v16 = vld [vmem:[#allocation3 + $0x18] sm:$0xf] }
 0x121   : > { %v1073_v23 = vadd.f32 %v1072_v11, %v1065_v10  ;;  %v1122_v49 = vmul.f32 %v1119_v18, %v2703_v36  ;;  %v1121_v38 = vadd.f32 %v1120_v25, %v1117_v31  ;;  %v1219_v51 = vmul.f32 %v2711_v48, %v1213_v17  ;;  %v2107_v2 = vld [vmem:[%s2994_s2] ss:$0 sm:$0xff] }
 0x122   : > { %v1212_v50 = vadd.f32 %v1210_v40, %v1207_v39  ;;  %v1154_v54 = vadd.f32 %v1153_v19, %v1151_v41  ;;  %v1157_v55 = vrot.slane %v1155_v44, 1  ;;  %v1162_v43 = vmul.f32 %v1160_v35, %v2691_v26 }
 0x123   : > { %v1079_v45 = vadd.f32 %v1078_v14, %v1073_v23  ;;  %v1123_v58 = vadd.f32 %v1122_v49, %v1121_v38  ;;  %v1126_v59 = vrot.slane %v1124_v27, 1  ;;  %v1166_v60 = vmul.f32 %v1160_v35, %v2697_v30 }
 0x124   : > { %v1217_v62 = vmul.f32 %v1214_v46, %v2727_v61  ;;  %v1216_v63 = vadd.f32 %v1215_v47, %v1212_v50  ;;  %v1159_v1 = vadd.f32 %v1157_v55, %v1154_v54  ;;  %v1131_v4 = vmul.f32 %v1129_v53, %v2718_v52 }
 0x125   : > { %v1088_v57 = vadd.f32 %v1086_v24, %v1079_v45  ;;  %v1128_v3 = vadd.f32 %v1126_v59, %v1123_v58  ;;  %v1135_v5 = vmul.f32 %v2711_v48, %v1129_v53  ;;  %v1164_v6 = vmul.f32 %v1161_v42, %v2703_v36 }
 0x126   : > { %v1218_v7 = vadd.f32 %v1217_v62, %v1216_v63  ;;  %v1221_v8 = vrot.slane %v1219_v51, 1  ;;  %v1163_v30 = vadd.f32 %v1162_v43, %v1159_v1  ;;  %v1133_v10 = vmul.f32 %v1130_v0, %v2727_v61  ;;  %v2368_v63 = vld [vmem:[%s2962_s11 + $0x38] sm:$0xff]   ;;  %v2116_v0 = vld [vmem:[%s2960_s9] ss:$0 sm:$0xff] }
 0x127   : > { %v1095_v26 = vmul.f32 %v2106_v56, %v1088_v57  ;;  %v1132_v11 = vadd.f32 %v1131_v4, %v1128_v3  ;;  %v1168_v13 = vrot.slane %v1166_v60, 1  ;;  %v1137_v18 = vrot.slane %v1135_v5, 1  ;;  %v2117_v4 = vld [vmem:[%s2961_s10] ss:$0 sm:$0xff] }
 0x128   : > { %v1223_v14 = vadd.f32 %v1221_v8, %v1218_v7  ;;  %v1165_v15 = vadd.f32 %v1164_v6, %v1163_v30  ;;  %v1173_v23 = vmul.f32 %v1171_v9, %v2718_v52  ;;  %v1177_v24 = vmul.f32 %v2711_v48, %v1171_v9  ;;  %v2369_v9 = vld [vmem:[%s2968_s17] sm:$0xff]  }
 0x129   : > { %v1102_v31 = vadd.f32 %v2107_v2, %v1095_v26  ;;  %v1134_v17 = vadd.f32 %v1133_v10, %v1132_v11  ;;  %v1175_v39 = vmul.f32 %v1172_v16, %v2727_v61  ;;  %v2370_v10 = vld [vmem:[%s2968_s17 + $0x8] sm:$0xff]   ;;  %v2371_v11 = vld [vmem:[%s2968_s17 + $0x10] sm:$0xff]   ;;  %v2376_v16 = vld [vmem:[%s2968_s17 + $0x38] sm:$0xff]  }
 0x12a   : > { %v1170_v36 = vadd.f32 %v1168_v13, %v1165_v15  ;;  %v1224_v25 = vmul.f32 %v2106_v56, %v1223_v14  ;;  %v1179_v46 = vrot.slane %v1177_v24, 1  ;;  %v2373_v13 = vld [vmem:[%s2968_s17 + $0x20] sm:$0xff]   ;;  %v2374_v14 = vld [vmem:[%s2968_s17 + $0x28] sm:$0xff]   ;;  %v2375_v15 = vld [vmem:[%s2968_s17 + $0x30] sm:$0xff]  }
 0x12b   : > { %v1103_v19 = vmax.f32 %v1102_v31, 0.0  ;;  %v1139_v27 = vadd.f32 %v1137_v18, %v1134_v17  ;;  %v2372_v31 = vld [vmem:[%s2968_s17 + $0x18] sm:$0xff]   ;;  %v2377_v17 = vld [vmem:[%s2971_s20] sm:$0xff]   ;;  %v2378_v18 = vld [vmem:[%s2971_s20 + $0x8] sm:$0xff]  }
 0x12c   : > { %v1174_v40 = vadd.f32 %v1173_v23, %v1170_v36  ;;  %v1225_v41 = vadd.f32 %v2107_v2, %v1224_v25  ;;  %v2380_v23 = vld [vmem:[%s2971_s20 + $0x18] sm:$0xff]   ;;  %v2381_v24 = vld [vmem:[%s2971_s20 + $0x20] sm:$0xff]  }
 0x12d   : > { %v1104_v35 = vmin.f32 %v1103_v19, 6.0  ;;  %v1140_v45 = vmul.f32 %v2106_v56, %v1139_v27  ;;  %v2379_v19 = vld [vmem:[%s2971_s20 + $0x10] sm:$0xff]   ;;  %v1510_v36 = vld [vmem:[%s2965_s14] sm:$0xff] }
 0x12e   : > { %v1176_v47 = vadd.f32 %v1175_v39, %v1174_v40  ;;  %v1226_v49 = vmax.f32 %v1225_v41, 0.0  ;;  %v2126_v25 = vld [vmem:[%s2963_s12] ss:$0 sm:$0xff]  ;;  %v2839_v27 = vrot.slane %v1510_v36, %v1030_v29  ;;  %v2851_v29 = vrot.slane %v1510_v36, %v1036_v33 }
 0x12f   : > { %v1105_v44 = vpack.c.bf16 %v1104_v35, %v1104_v35  ;;  %v1141_v38 = vadd.f32 %v2107_v2, %v1140_v45  ;;  %v2127_v35 = vld [vmem:[%s2964_s13] ss:$0 sm:$0xff]  ;;  %v2846_v45 = vrot.slane %v1510_v36, %v1024_v32  ;;  %v2857_v33 = vrot.slane %v1510_v36, %v1047_v20 }
 0x130   : > { %v1181_v50 = vadd.f32 %v1179_v46, %v1176_v47  ;;  %v1227_v51 = vmin.f32 %v1226_v49, 6.0  ;;  %v1514_v40 = vld [vmem:[#allocation6] sm:$0x3f]  ;;  %v2872_v20 = vrot.slane %v1510_v36, %v1076_v37 }
 0x131   : > { %1106 = vst [vmem:[#allocation4] sm:$0x3] %v1105_v44  ;;  %v1142_v52 = vmax.f32 %v1141_v38, 0.0  ;;  %v1525_v49 = vmul.f32 %v2839_v27, %v1514_v40 }
 0x132   : > { %v1182_v53 = vmul.f32 %v2106_v56, %v1181_v50  ;;  %v1228_v48 = vpack.c.bf16 %v1227_v51, %v1227_v51  ;;  %v2367_v56 = vld [vmem:[%s2962_s11 + $0x30] sm:$0xff]  }
 0x133   : > { %v1143_v54 = vmin.f32 %v1142_v52, 6.0  ;;  %2284 = vmatpush3.bf16.msra.mxu1 %v2367_v56 }
 0x134   : > { %v1183_v55 = vadd.f32 %v2107_v2, %v1182_v53  ;;  %v1230_v42 = vrot.slane %v1228_v48, 2  ;;  %2285 = vmatprep.subr.bf16.mxu1 %v2393_v12  ;;  %v1519_v53 = vmul.f32 %v2846_v45, %v1514_v40 }
 0x135   : > { %v1144_v43 = vpack.c.bf16 %v1143_v54, %v1143_v54  ;;  %v1527_v54 = vrot.slane %v1525_v49, 1 }
 0x136   : > { %v1184_v57 = vmax.f32 %v1183_v55, 0.0  ;;  %1232 = vst [vmem:[#allocation4] sm:$0xc0] %v1230_v42  ;;  %v1534_v55 = vmul.f32 %v2851_v29, %v1514_v40 }
 0x137   : > { %v1146_v61 = vrot.slane %v1144_v43, 6  ;;  %2286 = vmatpush3.bf16.msra.mxu1 %v2368_v63  ;;  %v1529_v43 = vadd.f32 %v1527_v54, %v1519_v53 }
 0x138   : > { %v1185_v58 = vmin.f32 %v1184_v57, 6.0  ;;  %2311 = vmatprep.subr.bf16.mxu1 %v2393_v12  ;;  %v1536_v57 = vrot.slane %v1534_v55, 2 }
 0x139   : > { %1148 = vst [vmem:[#allocation4] sm:$0xc] %v1146_v61  ;;  %v2861_v61 = vrot.slane %v1510_v36, %v1053_v22 }
 0x13a   : > { %v1186_v59 = vpack.c.bf16 %v1185_v58, %v1185_v58  ;;  %v2865_v58 = vrot.slane %v1510_v36, %v1059_v21 }
 0x13c   : > { %v1188_v60 = vrot.slane %v1186_v59, 4  ;;  %v1538_v59 = vadd.f32 %v1536_v57, %v1529_v43 }
 0x13e   : > { %1190 = vst [vmem:[#allocation4] sm:$0x30] %v1188_v60 }
 0x145   : > { %v1233_v62 = vld [vmem:[#allocation4] sm:$0xff] }
 0x146   : > { %2268 = vmatmul.mubr.bf16.vlgmr.msra.gmra.mrb[4].mxu0 %v1233_v62 }
 0x147   : > { %2307 = vmatprep.mubr.msk.bf16.mxu0 %vm2394_vm0, %v2393_v12  ;;  %2292 = vmatpush3.bf16.msra.mxu0 %v2369_v9 }
 0x148   : > { %2293 = vmatprep.subr.bf16.mxu0 %v2393_v12 }
 0x14b   : > { %2294 = vmatpush3.bf16.msra.mxu0 %v2370_v10 }
 0x14c   : > { %2295 = vmatprep.subr.bf16.mxu0 %v2393_v12 }
 0x14f   : > { %2296 = vmatpush3.bf16.msra.mxu0 %v2371_v11 }
 0x150   : > { %2297 = vmatprep.subr.bf16.mxu0 %v2393_v12 }
 0x153   : > { %2298 = vmatpush3.bf16.msra.mxu0 %v2372_v31 }
 0x154   : > { %2299 = vmatprep.subr.bf16.mxu0 %v2393_v12 }
 0x157   : > { %2300 = vmatpush3.bf16.msra.mxu0 %v2373_v13 }
 0x158   : > { %2301 = vmatprep.subr.bf16.mxu0 %v2393_v12 }
 0x15b   : > { %2302 = vmatpush3.bf16.msra.mxu0 %v2374_v14 }
 0x15c   : > { %2303 = vmatprep.subr.bf16.mxu0 %v2393_v12 }
 0x15f   : > { %2304 = vmatpush3.bf16.msra.mxu0 %v2375_v15 }
 0x160   : > { %2305 = vmatprep.subr.bf16.mxu0 %v2393_v12 }
 0x163   : > { %2306 = vmatpush3.bf16.msra.mxu0 %v2376_v16 }
 0x219   : > { %v1332_v1 = vpop.f32.mrb[4].mxu0 }
 0x21a   : > { %v1346_v2 = vmul.f32 %v2116_v0, %v1332_v1  ;;  %v2269_v3 = vpop.f32.mrb[5].mxu0 }
 0x21b   : > { %v1335_v5 = vpop.f32.mrb[6].mxu0 }
 0x21c   : > { %v1347_v26 = vmul.f32 %v2116_v0, %v1335_v5  ;;  %v2270_v6 = vpop.f32.mrb[7].mxu0  ;;  %v1355_v7 = vadd.f32 %v2117_v4, %v1346_v2 }
 0x21d   : > { %v2883_v6 = vld [vmem:[%s2965_s14 + $0x8] ss:$0 sm:$0xff] }
 0x21e   : > { %v1356_v8 = vadd.f32 %v2117_v4, %v1347_v26  ;;  %v2877_v4 = vrot.slane %v1510_v36, %v1070_v34 }
 0x220   : > { %v2775_v30 = vpack.c.bf16 %v1356_v8, %v1355_v7 }
 0x222   : > { %2288 = vmatmul.mubr.bf16.vlgmr.msra.gmra.mrb[4].mxu1 %v2775_v30 }
 0x223   : > { %2327 = vmatprep.mubr.msk.bf16.mxu1 %vm2394_vm0, %v2393_v12  ;;  %2312 = vmatpush3.bf16.msra.mxu1 %v2377_v17 }
 0x224   : > { %2313 = vmatprep.subr.bf16.mxu1 %v2393_v12 }
 0x227   : > { %2314 = vmatpush3.bf16.msra.mxu1 %v2378_v18 }
 0x228   : > { %2315 = vmatprep.subr.bf16.mxu1 %v2393_v12 }
 0x22b   : > { %2316 = vmatpush3.bf16.msra.mxu1 %v2379_v19 }
 0x22c   : > { %2317 = vmatprep.subr.bf16.mxu1 %v2393_v12 }
 0x22f   : > { %2318 = vmatpush3.bf16.msra.mxu1 %v2380_v23 }
 0x230   : > { %2319 = vmatprep.subr.bf16.mxu1 %v2393_v12 }
 0x233   : > { %2320 = vmatpush3.bf16.msra.mxu1 %v2381_v24 }
 0x234   : > { %2321 = vmatprep.subr.bf16.mxu1 %v2393_v12 }
 0x2f5   : > { %v1475_v39 = vpop.f32.mrb[4].mxu1 }
 0x2f6   : > { %v1488_v41 = vmul.f32 %v2126_v25, %v1475_v39  ;;  %v2289_v44 = vpop.f32.mrb[5].mxu1 }
 0x2f7   : > { %v1478_v46 = vpop.f32.mrb[6].mxu1 }
 0x2f8   : > { %v1496_v47 = vadd.f32 %v2127_v35, %v1488_v41  ;;  %v1489_v38 = vmul.f32 %v2126_v25, %v1478_v46  ;;  %v2290_v50 = vpop.f32.mrb[7].mxu1 }
 0x2fa   : > { %v1498_v51 = vmax.f32 %v1496_v47, 0.0  ;;  %v1497_v52 = vadd.f32 %v2127_v35, %v1489_v38 }
 0x2fc   : > { %v1500_v48 = vmin.f32 %v1498_v51, 6.0  ;;  %v1499_v32 = vmax.f32 %v1497_v52, 0.0 }
 0x2fe   : > { %1503 = vst [vmem:[#allocation6 + $0x9] ss:$8 sps:$4 sm:$0xff] %v1500_v48   ;;  %v1501_v42 = vmin.f32 %v1499_v32, 6.0 }
 0x300   : > { %1507 = vst [vmem:[#allocation6 + $0x19] ss:$8 sps:$4 sm:$0xff] %v1501_v42  }
 0x305   : > { %v1539_v60 = vld [vmem:[#allocation6 + $0x8] sm:$0x3f]  ;;  %v1564_v1 = vld [vmem:[#allocation6 + $0x10] sm:$0x3f] }
 0x306   : > { %v1607_v62 = vld [vmem:[#allocation6 + $0x8] sm:$0x3f]  ;;  %v1544_v56 = vmul.f32 %v2857_v33, %v1539_v60  ;;  %v1550_v63 = vmul.f32 %v2861_v61, %v1539_v60  ;;  %v1559_v0 = vmul.f32 %v2865_v58, %v1539_v60  ;;  %v1620_v2 = vld [vmem:[#allocation6 + $0x10] sm:$0x3f]  ;;  %v1575_v10 = vmul.f32 %v2872_v20, %v1564_v1 }
 0x307   : > { %v1610_v22 = vmul.f32 %v1607_v62, %v2839_v27  ;;  %v1615_v5 = vmul.f32 %v1607_v62, %v2851_v29  ;;  %v1655_v26 = vld [vmem:[#allocation6 + $0x10] sm:$0x3f]  ;;  %v1608_v37 = vmul.f32 %v1607_v62, %v2846_v45  ;;  %v1623_v11 = vmul.f32 %v1620_v2, %v2861_v61  ;;  %v1633_v18 = vld [vmem:[#allocation6 + $0x18] sm:$0x3f]  ;;  %v1681_v43 = vld [vmem:[#allocation6 + $0x20] sm:$0x3f] }
 0x308   : > { %v1545_v3 = vadd.f32 %v1544_v56, %v1538_v59  ;;  %v1552_v21 = vrot.slane %v1550_v63, 1  ;;  %v1561_v9 = vrot.slane %v1559_v0, 2  ;;  %v1658_v31 = vmul.f32 %v1655_v26, %v2839_v27  ;;  %v1668_v19 = vld [vmem:[#allocation6 + $0x18] sm:$0x3f]  ;;  %v1716_v0 = vld [vmem:[#allocation6 + $0x20] sm:$0x3f] }
 0x309   : > { %v1612_v7 = vrot.slane %v1610_v22, 1  ;;  %v1617_v34 = vrot.slane %v1615_v5, 2  ;;  %v1663_v13 = vmul.f32 %v1655_v26, %v2851_v29  ;;  %v1569_v15 = vmul.f32 %v2877_v4, %v1564_v1  ;;  %v1703_v38 = vld [vmem:[#allocation6 + $0x18] sm:$0x3f] }
 0x30a   : > { %v1554_v8 = vadd.f32 %v1552_v21, %v1545_v3  ;;  %v1584_v16 = vmul.f32 %v2883_v6, %v1564_v1  ;;  %v1628_v17 = vmul.f32 %v1620_v2, %v2865_v58  ;;  %v1621_v24 = vmul.f32 %v1620_v2, %v2857_v33  ;;  %v2129_v21 = vld [vmem:[%s2966_s15] ss:$0 sm:$0xff] }
 0x30b   : > { %v1614_v28 = vadd.f32 %v1612_v7, %v1608_v37  ;;  %v1656_v36 = vmul.f32 %v1655_v26, %v2846_v45  ;;  %v1660_v25 = vrot.slane %v1658_v31, 1  ;;  %v1577_v39 = vrot.slane %v1575_v10, 1 }
 0x30c   : > { %v1563_v14 = vadd.f32 %v1561_v9, %v1554_v8  ;;  %v1625_v40 = vrot.slane %v1623_v11, 1  ;;  %v1665_v41 = vrot.slane %v1663_v13, 2  ;;  %v1636_v47 = vmul.f32 %v1633_v18, %v2872_v20 }
 0x30d   : > { %v1619_v23 = vadd.f32 %v1617_v34, %v1614_v28  ;;  %v1662_v46 = vadd.f32 %v1660_v25, %v1656_v36  ;;  %v1671_v49 = vmul.f32 %v1668_v19, %v2861_v61  ;;  %v1630_v50 = vrot.slane %v1628_v17, 2  ;;  %v1729_v34 = vld [vmem:[#allocation6 + $0x28] sm:$0x3f] }
 0x30e   : > { %v1570_v35 = vadd.f32 %v1569_v15, %v1563_v14  ;;  %v1641_v51 = vmul.f32 %v2883_v6, %v1633_v18  ;;  %v1676_v52 = vmul.f32 %v1668_v19, %v2865_v58  ;;  %v1669_v55 = vmul.f32 %v1668_v19, %v2857_v33 }
 0x30f   : > { %v1622_v44 = vadd.f32 %v1621_v24, %v1619_v23  ;;  %v1667_v54 = vadd.f32 %v1665_v41, %v1662_v46  ;;  %v1586_v32 = vrot.slane %v1584_v16, 2  ;;  %v1634_v42 = vmul.f32 %v1633_v18, %v2877_v4 }
 0x310   : > { %v1579_v53 = vadd.f32 %v1577_v39, %v1570_v35  ;;  %v1706_v57 = vmul.f32 %v1703_v38, %v2839_v27  ;;  %v1711_v59 = vmul.f32 %v1703_v38, %v2851_v29  ;;  %v1638_v62 = vrot.slane %v1636_v47, 1 }
 0x311   : > { %v1627_v48 = vadd.f32 %v1625_v40, %v1622_v44  ;;  %v1670_v56 = vadd.f32 %v1669_v55, %v1667_v54  ;;  %v1673_v63 = vrot.slane %v1671_v49, 1  ;;  %v1643_v1 = vrot.slane %v1641_v51, 2 }
 0x312   : > { %v1678_v22 = vrot.slane %v1676_v52, 2  ;;  %v1704_v2 = vmul.f32 %v1703_v38, %v2846_v45  ;;  %v1708_v3 = vrot.slane %v1706_v57, 1  ;;  %v1684_v27 = vmul.f32 %v1681_v43, %v2872_v20  ;;  %v2130_v45 = vld [vmem:[%s2967_s16] ss:$0 sm:$0xff] }
 0x313   : > { %v1632_v60 = vadd.f32 %v1630_v50, %v1627_v48  ;;  %v1675_v26 = vadd.f32 %v1673_v63, %v1670_v56  ;;  %v1588_v37 = vadd.f32 %v1586_v32, %v1579_v53  ;;  %v1682_v29 = vmul.f32 %v1681_v43, %v2877_v4 }
 0x314   : > { %v1710_v7 = vadd.f32 %v1708_v3, %v1704_v2  ;;  %v1713_v8 = vrot.slane %v1711_v59, 2  ;;  %v1719_v9 = vmul.f32 %v1716_v0, %v2861_v61  ;;  %v1689_v28 = vmul.f32 %v2883_v6, %v1681_v43  ;;  %v2382_v2 = vld [vmem:[%s2971_s20 + $0x28] sm:$0xff]   ;;  %v2383_v3 = vld [vmem:[%s2971_s20 + $0x30] sm:$0xff]  }
 0x315   : > { %v1635_v5 = vadd.f32 %v1634_v42, %v1632_v60  ;;  %v1680_v11 = vadd.f32 %v1678_v22, %v1675_v26  ;;  %v1595_v31 = vmul.f32 %v2129_v21, %v1588_v37  ;;  %v1717_v14 = vmul.f32 %v1716_v0, %v2857_v33  ;;  %2322 = vmatpush3.bf16.msra.mxu1 %v2382_v2 }
 0x316   : > { %v1715_v13 = vadd.f32 %v1713_v8, %v1710_v7  ;;  %v1724_v15 = vmul.f32 %v1716_v0, %v2865_v58  ;;  %v1686_v17 = vrot.slane %v1684_v27, 1  ;;  %v1721_v23 = vrot.slane %v1719_v9, 1  ;;  %2323 = vmatprep.subr.bf16.mxu1 %v2393_v12  ;;  %v2140_v27 = vld [vmem:[%s2970_s19] ss:$0 sm:$0xff] }
 0x317   : > { %v1640_v10 = vadd.f32 %v1638_v62, %v1635_v5  ;;  %v1683_v16 = vadd.f32 %v1682_v29, %v1680_v11  ;;  %v1602_v18 = vadd.f32 %v2130_v45, %v1595_v31  ;;  %v1732_v24 = vmul.f32 %v1729_v34, %v2872_v20  ;;  %v2139_v5 = vld [vmem:[%s2969_s18] ss:$0 sm:$0xff] }
 0x318   : > { %v1718_v61 = vadd.f32 %v1717_v14, %v1715_v13  ;;  %v1691_v25 = vrot.slane %v1689_v28, 2  ;;  %v1726_v41 = vrot.slane %v1724_v15, 2  ;;  %v1730_v44 = vmul.f32 %v1729_v34, %v2877_v4  ;;  %v2149_v13 = vld [vmem:[%s2972_s21] ss:$0 sm:$0xff] }
 0x319   : > { %v1645_v19 = vadd.f32 %v1643_v1, %v1640_v10  ;;  %v1688_v36 = vadd.f32 %v1686_v17, %v1683_v16  ;;  %v1603_v35 = vmax.f32 %v1602_v18, 0.0  ;;  %v1737_v33 = vmul.f32 %v2883_v6, %v1729_v34  ;;  %2324 = vmatpush3.bf16.msra.mxu1 %v2383_v3  ;;  %v2150_v15 = vld [vmem:[%s2973_s22] ss:$0 sm:$0xff] }
 0x31a   : > { %v1723_v40 = vadd.f32 %v1721_v23, %v1718_v61  ;;  %v1734_v38 = vrot.slane %v1732_v24, 1  ;;  %2325 = vmatprep.subr.bf16.mxu1 %v2393_v12  ;;  %v1876_v12 = vunpack.c.l.bf16 %v2775_v30  ;;  %v1877_v28 = vunpack.c.h.bf16 %v2775_v30 }
 0x31b   : > { %v1646_v39 = vmul.f32 %v2129_v21, %v1645_v19  ;;  %v1604_v46 = vmin.f32 %v1603_v35, 6.0  ;;  %v1693_v47 = vadd.f32 %v1691_v25, %v1688_v36  ;;  %v1739_v20 = vrot.slane %v1737_v33, 2 }
 0x31c   : > { %v1728_v49 = vadd.f32 %v1726_v41, %v1723_v40 }
 0x31d   : > { %v1647_v58 = vadd.f32 %v2130_v45, %v1646_v39  ;;  %v1605_v50 = vpack.c.bf16 %v1604_v46, %v1604_v46  ;;  %v1694_v52 = vmul.f32 %v2129_v21, %v1693_v47 }
 0x31e   : > { %v1731_v53 = vadd.f32 %v1730_v44, %v1728_v49  ;;  %v2020_v49 = vld [vmem:[%s726_s27] sm:$0x1] }
 0x31f   : > { %v1648_v51 = vmax.f32 %v1647_v58, 0.0  ;;  %1606 = vst [vmem:[#allocation7] sm:$0x3] %v1605_v50  ;;  %v1695_v54 = vadd.f32 %v2130_v45, %v1694_v52 }
 0x320   : > { %v1736_v55 = vadd.f32 %v1734_v38, %v1731_v53 }
 0x321   : > { %v1649_v48 = vmin.f32 %v1648_v51, 6.0  ;;  %v1696_v42 = vmax.f32 %v1695_v54, 0.0 }
 0x322   : > { %v1741_v43 = vadd.f32 %v1739_v20, %v1736_v55 }
 0x323   : > { %v1650_v32 = vpack.c.bf16 %v1649_v48, %v1649_v48  ;;  %v1697_v57 = vmin.f32 %v1696_v42, 6.0 }
 0x324   : > { %v1742_v6 = vmul.f32 %v2129_v21, %v1741_v43  ;;  %v2384_v21 = vld [vmem:[%s2971_s20 + $0x38] sm:$0xff]  }
 0x325   : > { %v1652_v4 = vrot.slane %v1650_v32, 6  ;;  %v1698_v59 = vpack.c.bf16 %v1697_v57, %v1697_v57  ;;  %2326 = vmatpush3.bf16.msra.mxu1 %v2384_v21 }
 0x326   : > { %v1743_v60 = vadd.f32 %v2130_v45, %v1742_v6 }
 0x327   : > { %1654 = vst [vmem:[#allocation7] sm:$0xc] %v1652_v4  ;;  %v1700_v62 = vrot.slane %v1698_v59, 4 }
 0x328   : > { %v1744_v56 = vmax.f32 %v1743_v60, 0.0 }
 0x329   : > { %1702 = vst [vmem:[#allocation7] sm:$0x30] %v1700_v62 }
 0x32a   : > { %v1745_v63 = vmin.f32 %v1744_v56, 6.0 }
 0x32c   : > { %v1746_v0 = vpack.c.bf16 %v1745_v63, %v1745_v63 }
 0x32e   : > { %v1748_v1 = vrot.slane %v1746_v0, 2 }
 0x330   : > { %1750 = vst [vmem:[#allocation7] sm:$0xc0] %v1748_v1 }
 0x337   : > { %v1751_v22 = vld [vmem:[#allocation7] sm:$0xff] }
 0x338   : > { %2308 = vmatmul.mubr.bf16.vlgmr.msra.gmra.mrb[8].mxu0 %v1751_v22 }
 0x40b   : > { %v1850_v26 = vpop.f32.mrb[8].mxu0 }
 0x40c   : > { %v1864_v37 = vmul.f32 %v2139_v5, %v1850_v26  ;;  %v2309_v29 = vpop.f32.mrb[9].mxu0 }
 0x40d   : > { %v1853_v7 = vpop.f32.mrb[10].mxu0 }
 0x40e   : > { %v1873_v8 = vadd.f32 %v2140_v27, %v1864_v37  ;;  %v1865_v9 = vmul.f32 %v2139_v5, %v1853_v7  ;;  %v2310_v45 = vpop.f32.mrb[11].mxu0 }
 0x410   : > { %v1878_v10 = vadd.f32 %v1876_v12, %v1873_v8  ;;  %v1874_v11 = vadd.f32 %v2140_v27, %v1865_v9 }
 0x412   : > { %v1879_v34 = vadd.f32 %v1877_v28, %v1874_v11 }
 0x414   : > { %v1880_v31 = vpack.c.bf16 %v1879_v34, %v1878_v10 }
 0x416   : > { %2328 = vmatmul.mubr.bf16.vlgmr.msra.gmra.mrb[8].mxu1 %v1880_v31 }
 0x4e9   : > { %v1979_v14 = vpop.f32.mrb[8].mxu1 }
 0x4ea   : > { %v1993_v16 = vmul.f32 %v2149_v13, %v1979_v14  ;;  %v2329_v17 = vpop.f32.mrb[9].mxu1 }
 0x4eb   : > { %v1982_v18 = vpop.f32.mrb[10].mxu1 }
 0x4ec   : > { %v2002_v19 = vadd.f32 %v2150_v15, %v1993_v16  ;;  %v1994_v61 = vmul.f32 %v2149_v13, %v1982_v18  ;;  %v2330_v23 = vpop.f32.mrb[11].mxu1 }
 0x4ee   : > { %v2004_v30 = vmax.f32 %v2002_v19, 0.0  ;;  %v2003_v24 = vadd.f32 %v2150_v15, %v1994_v61 }
 0x4f0   : > { %v2005_v36 = vmax.f32 %v2003_v24, 0.0  ;;  %v2006_v25 = vmin.f32 %v2004_v30, 6.0 }
 0x4f2   : > { %v2007_v35 = vmin.f32 %v2005_v36, 6.0 }
 0x4f4   : > { %v2008_v39 = vadd.f32 %v2007_v35, %v2006_v25 }
 0x4f6   : > { %v2009_v40 = vrot.slane %v2008_v39, 4 }
 0x4f8   : > { %v2010_v41 = vadd.f32 %v2009_v40, %v2008_v39 }
 0x4fa   : > { %v2011_v44 = vrot.slane %v2010_v41, 2 }
 0x4fc   : > { %v2012_v33 = vadd.f32 %v2011_v44, %v2010_v41 }
 0x4fe   : > { %v2013_v46 = vrot.slane %v2012_v33, 1 }
 0x500   : > { %v2014_v58 = vadd.f32 %v2013_v46, %v2012_v33 }
 0x502   : > { %v2015_v47 = vmul.f32 0.0625, %v2014_v58 }
 0x504   : > { %v2016_v38 = vpack.c.bf16 %v2015_v47, %v2015_v47 }
 0x506   : > { %v2021_v50 = vsel %vm2019_vm3, %v2016_v38, %v2020_v49 }
 0x507   : > { %2022 = vst [vmem:[%s726_s27] sm:$0x1] %v2021_v50 }
 0x508 PF: > { %s2995_s29 = sld [smem:[#allocation8_spill]] }
 0x50e   : > { %s33_s4 = sadd.s32 1, %s2995_s29  }
 0x50f   : > { %p30_p4 = scmp.ge.s32.totalorder %s33_s4, 4  }
 0x511   :  { %32 = sbr.rel (!%p30_p4) target bundleno = 9 (0x9), region = 168 }

</bundles_post_ra>
